<compile_context>
chip_gen: v7x
topology: tpu7x:2x2x1
jax: 0.10.0
libtpu: 0.0.40
codegen_flags: <defaults>
</compile_context>

<pallas_src>
import functools

import numpy as np
import jax
import jax.numpy as jnp
from jax.experimental import pallas as pl
from jax.experimental.pallas import tpu as pltpu

_MIN_CIN_PALLAS = 16     # Cin=3 (conv1) -> XLA; lane-padding 3->128 was ~42x DMA


# ----------------------------------------------------------------------------
# chip-aware sizing
# ----------------------------------------------------------------------------
@functools.lru_cache(maxsize=1)
def _chip_config():
    """Per-generation sizing: Cout tile cap + VMEM limit handed to Mosaic."""
    kind = ""
    try:
        kind = jax.devices()[0].device_kind.lower()
    except Exception:
        pass
    if "v5 lite" in kind or "v5e" in kind:
        return {"tco_cap": 128, "vmem_limit": 100 * 1024 * 1024}  # 128 MiB, 128-wide MXU
    if "v6" in kind:
        return {"tco_cap": 256, "vmem_limit": 100 * 1024 * 1024}  # 128 MiB, 256-wide MXU
    if "v7" in kind or "7x" in kind:
        return {"tco_cap": 256, "vmem_limit": 48 * 1024 * 1024}   # only 64 MiB physical
    return {"tco_cap": 256, "vmem_limit": 64 * 1024 * 1024}       # unknown: conservative


def _pick_cout_tile(cout, cap):
    """Largest divisor of cout <= cap that is lane-friendly (== cout or %128 == 0)."""
    for t in range(min(cap, cout), 0, -1):
        if cout % t == 0 and (t == cout or t % 128 == 0):
            return t
    return cout


def _vmem_est(th, out_w, cin, tco, isz, in_rows):
    """Rough per-grid-step VMEM footprint of the fused 3x3 conv kernel."""
    wp = out_w + 2
    m = th * out_w
    col = 3 * m * 3 * cin * isz           # im2col slabs (scratch, not buffered)
    xin = 2 * in_rows * wp * cin * isz    # double-buffered input block(s)
    wgt = 2 * 9 * cin * tco * isz         # double-buffered weight block
    outb = 2 * m * tco * isz              # double-buffered output block
    acc = m * tco * 4                     # f32 accumulator value
    return col + xin + wgt + outb + acc


def _choose_strip(out_h, out_w, cin, tco, isz, budget):
    """Pick the output-row strip height.  Returns (th, use_halo) or (None, None)."""
    if out_h % 2 == 0:
        cap = min(out_h, max(8, 2048 // max(out_w, 1)))   # bigger strips when narrow
        for th in range(cap - (cap % 2), 1, -2):
            if out_h % th == 0 and _vmem_est(th, out_w, cin, tco, isz, th + 2) <= budget:
                return th, True
    if _vmem_est(out_h, out_w, cin, tco, isz, out_h + 2) <= budget:
        return out_h, False                               # single-strip (odd out_h)
    return None, None                                      # -> XLA fallback


def _route_conv3x3(dtype, cin, cout, out_h, out_w):
    """Decide Pallas vs XLA for a 3x3 conv; returns (th, use_halo, tco, cfg) or None."""
    if cin < _MIN_CIN_PALLAS or out_w < 8 or out_w % 8 != 0:
        return None
    cfg = _chip_config()
    isz = np.dtype(dtype).itemsize
    tco = _pick_cout_tile(cout, cfg["tco_cap"])
    th, use_halo = _choose_strip(out_h, out_w, cin, tco, isz,
                                 int(cfg["vmem_limit"] * 0.6))
    if th is None:
        return None
    return th, use_halo, tco, cfg


# ----------------------------------------------------------------------------
# fused 3x3 conv (+bias, +optional ReLU) Pallas kernel
# ----------------------------------------------------------------------------
def _make_conv3x3_kernel(relu, split_halo):
    """One (batch, Cout-block, row-strip) grid cell of a fused 3x3 conv.

    Per dy: build an (M, 3*Cin) im2col slab straight from the strip / halo refs,
    then one accumulating K=3*Cin MXU matmul, so the slab copies of dy+1 overlap
    the matmul pushes of dy.  Bias + ReLU fused into the single output store.
    """
    if split_halo:
        def kernel(xm_ref, xh_ref, w_ref, b_ref, o_ref, col_ref):
            _, th, ow, _ = o_ref.shape
            c = xm_ref.shape[3]
            m = th * ow
            acc = None
            for dy in range(3):
                for dx in range(3):
                    off = dx * c
                    nm = (th - dy) * ow
                    if nm > 0:
                        col_ref[dy, 0:nm, off:off + c] = (
                            xm_ref[0, dy:th, dx:dx + ow, :].reshape(nm, c))
                    if dy > 0:
                        col_ref[dy, nm:m, off:off + c] = (
                            xh_ref[0, 0:dy, dx:dx + ow, :].reshape(dy * ow, c))
                part = jnp.dot(col_ref[dy], w_ref[dy],
                               preferred_element_type=jnp.float32)
                acc = part if acc is None else acc + part
            acc = acc + b_ref[...]
            if relu:
                acc = jnp.maximum(acc, 0.0)
            o_ref[...] = acc.reshape(o_ref.shape).astype(o_ref.dtype)
        return kernel

    def kernel(x_ref, w_ref, b_ref, o_ref, col_ref):
        _, th, ow, _ = o_ref.shape
        c = x_ref.shape[3]
        m = th * ow
        acc = None
        for dy in range(3):
            for dx in range(3):
                col_ref[dy, :, dx * c:(dx + 1) * c] = (
                    x_ref[0, dy:dy + th, dx:dx + ow, :].reshape(m, c))
            part = jnp.dot(col_ref[dy], w_ref[dy],
                           preferred_element_type=jnp.float32)
            acc = part if acc is None else acc + part
        acc = acc + b_ref[...]
        if relu:
            acc = jnp.maximum(acc, 0.0)
        o_ref[...] = acc.reshape(o_ref.shape).astype(o_ref.dtype)
    return kernel


def _conv3x3_pallas(xp, w_hwio, b, out_h, out_w, relu, th, use_halo, tco, cfg):
    """3x3 "valid" conv over a spatially pre-padded NHWC input.

    xp     : (N, out_h+2, out_w+2, Cin)
    w_hwio : (3, 3, Cin, Cout)
    b      : (Cout,)
    """
    n, hp, wp, cin = xp.shape
    assert hp == out_h + 2 and wp == out_w + 2
    cout = w_hwio.shape[3]
    xdt = xp.dtype
    # TODO(synk): weights could be pre-packed once at init instead of per-call.
    w_slab = w_hwio.reshape(3, 3 * cin, cout).astype(xdt)   # per-dy (3*Cin, Cout)
    b2 = b.reshape(1, cout).astype(jnp.float32)
    n_co = cout // tco
    m = th * out_w

    if use_halo:
        n_h = out_h // th
        hb = th // 2   # halo block-index step (halo block height is 2 rows)
        grid = (n, n_co, n_h)
        in_specs = [
            pl.BlockSpec((1, th, wp, cin), lambda bi, co, h: (bi, h, 0, 0)),
            pl.BlockSpec((1, 2, wp, cin),
                         lambda bi, co, h, hb=hb: (bi, (h + 1) * hb, 0, 0)),
            pl.BlockSpec((3, 3 * cin, tco), lambda bi, co, h: (0, 0, co)),
            pl.BlockSpec((1, tco), lambda bi, co, h: (0, co)),
        ]
        operands = (xp, xp, w_slab, b2)
    else:
        grid = (n, n_co, 1)
        in_specs = [
            pl.BlockSpec((1, hp, wp, cin), lambda bi, co, h: (bi, 0, 0, 0)),
            pl.BlockSpec((3, 3 * cin, tco), lambda bi, co, h: (0, 0, co)),
            pl.BlockSpec((1, tco), lambda bi, co, h: (0, co)),
        ]
        operands = (xp, w_slab, b2)

    return pl.pallas_call(
        _make_conv3x3_kernel(relu, use_halo),
        out_shape=jax.ShapeDtypeStruct((n, out_h, out_w, cout), xdt),
        grid_spec=pltpu.PrefetchScalarGridSpec(
            num_scalar_prefetch=0,
            grid=grid,
            in_specs=in_specs,
            out_specs=pl.BlockSpec((1, th, out_w, tco),
                                   lambda bi, co, h: (bi, h, 0, co)),
            scratch_shapes=[pltpu.VMEM((3, m, 3 * cin), xdt)],
        ),
        compiler_params=pltpu.CompilerParams(
            dimension_semantics=("parallel", "parallel", "parallel"),
            vmem_limit_bytes=cfg["vmem_limit"],
        ),
    )(*operands)


# ----------------------------------------------------------------------------
# 1x1 conv (the `final` layer) Pallas kernel -- lane-dense (N, H, W) output
# ----------------------------------------------------------------------------
def _conv1x1_kernel(x_ref, w_ref, b_ref, o_ref):
    x = x_ref[0].astype(jnp.float32)                 # (th, W, Cin)
    w = w_ref[...].astype(jnp.float32)               # (1, Cin)
    y = jnp.sum(x * w[None, :, :], axis=-1)          # VPU mul + lane reduce -> (th, W)
    o_ref[...] = (y + b_ref[...])[None, :, :].astype(o_ref.dtype)


def _pick_rows_1x1(h, w):
    cap = min(h, max(8, 4096 // max(w, 1)))
    for t in range(cap, 0, -1):
        if h % t == 0 and (t % 8 == 0 or t == h):
            return t
    return h


def _conv1x1_pallas(x, w, b, cfg):
    n, h, wd, cin = x.shape
    th = _pick_rows_1x1(h, wd)
    wt = w.reshape(cin, -1)[:, 0:1].T.astype(x.dtype)       # (1, Cin)
    b2 = jnp.asarray(b, jnp.float32).reshape(1, 1)
    out = pl.pallas_call(
        _conv1x1_kernel,
        out_shape=jax.ShapeDtypeStruct((n, h, wd), x.dtype),  # lane-dense
        grid_spec=pltpu.PrefetchScalarGridSpec(
            num_scalar_prefetch=0,
            grid=(n, h // th),
            in_specs=[
                pl.BlockSpec((1, th, wd, cin), lambda bi, hi: (bi, hi, 0, 0)),
                pl.BlockSpec((1, cin), lambda bi, hi: (0, 0)),
                pl.BlockSpec((1, 1), lambda bi, hi: (0, 0)),
            ],
            out_specs=pl.BlockSpec((1, th, wd), lambda bi, hi: (bi, hi, 0)),
        ),
        compiler_params=pltpu.CompilerParams(
            dimension_semantics=("parallel", "parallel"),
            vmem_limit_bytes=cfg["vmem_limit"],
        ),
    )(x, wt, b2)
    return out[..., None]   # (N, H, W, 1) -- metadata-only expand


# ----------------------------------------------------------------------------
# layer wrappers (NHWC).  use_pallas=False routes everything to XLA reference.
# ----------------------------------------------------------------------------
def conv3x3(x, p, *, relu, use_pallas):
    """nn.Conv2d(k=3, padding=1) [+ ReLU]."""
    _, h, w, cin = x.shape
    cout = p["w"].shape[3]
    route = _route_conv3x3(x.dtype, cin, cout, h, w) if use_pallas else None
    if route is not None:
        th, use_halo, tco, cfg = route
        # TODO(synk): the 1-px border pad is an extra HBM round trip; removing it
        # would require writing the producing layer into a pre-padded buffer.
        xp = jnp.pad(x, ((0, 0), (1, 1), (1, 1), (0, 0)))
        return _conv3x3_pallas(xp, p["w"], p["b"], h, w, relu, th, use_halo, tco, cfg)
    # XLA fallback: conv1's 3-channel input, tiny/odd spatial maps, reference path.
    y = jax.lax.conv_general_dilated(
        x, p["w"], window_strides=(1, 1), padding=((1, 1), (1, 1)),
        dimension_numbers=("NHWC", "HWIO", "NHWC"),
        preferred_element_type=jnp.float32)
    y = y + p["b"].astype(jnp.float32)[None, None, None, :]
    if relu:
        y = jnp.maximum(y, 0.0)
    return y.astype(x.dtype)


def deconv3x3_relu(x, p, *, use_pallas):
    """nn.ConvTranspose2d(k=3, s=2, p=1, output_padding=1) + ReLU.

    Expressed as a regular 3x3 conv over the zero-dilated input with the
    (already flipped, HWIO) kernel stored in params; spatial output = 2x input.
    """
    _, h, w, cin = x.shape
    cout = p["w"].shape[3]
    oh, ow = 2 * h, 2 * w
    route = _route_conv3x3(x.dtype, cin, cout, oh, ow) if use_pallas else None
    if route is not None:
        th, use_halo, tco, cfg = route
        # one lax.pad: interior zero-dilation (stride 2) + (1, 2) border.
        xp = jax.lax.pad(x, jnp.zeros((), x.dtype),
                         ((0, 0, 0), (1, 2, 1), (1, 2, 1), (0, 0, 0)))
        return _conv3x3_pallas(xp, p["w"], p["b"], oh, ow, True, th, use_halo, tco, cfg)
    y = jax.lax.conv_general_dilated(
        x, p["w"], window_strides=(1, 1), padding=((1, 2), (1, 2)),
        lhs_dilation=(2, 2),
        dimension_numbers=("NHWC", "HWIO", "NHWC"),
        preferred_element_type=jnp.float32)
    y = jnp.maximum(y + p["b"].astype(jnp.float32)[None, None, None, :], 0.0)
    return y.astype(x.dtype)


def conv1x1(x, p, *, use_pallas):
    """nn.Conv2d(k=1) -- the `final` layer (no ReLU)."""
    cout = p["w"].shape[-1]
    if use_pallas and cout == 1:
        return _conv1x1_pallas(x, p["w"], p["b"], _chip_config())
    y = jnp.einsum("nhwc,co->nhwo", x, p["w"],
                   preferred_element_type=jnp.float32)
    y = y + p["b"].astype(jnp.float32)[None, None, None, :]
    return y.astype(x.dtype)


def max_pool_2x2(x):
    # TODO(synk): could be fused into the producing conv kernel's epilogue to
    # save a full-resolution HBM round trip; kept as an XLA reshape-max.
    n, h, w, c = x.shape
    return jnp.max(x.reshape(n, h // 2, 2, w // 2, 2, c), axis=(2, 4))


def decoder_block(x, p, *, use_pallas):
    y = conv3x3(x, p["conv"], relu=True, use_pallas=use_pallas)
    return deconv3x3_relu(y, p["deconv"], use_pallas=use_pallas)


# ----------------------------------------------------------------------------
# UNet11 parameters + forward
# ----------------------------------------------------------------------------
def init_unet11_params(key, num_filters=32, dtype=jnp.float32):
    """Deterministic init (PyTorch-style uniform(+-1/sqrt(fan_in))).

    All conv weights are stored in HWIO.  ConvTranspose weights are stored
    ALREADY FLIPPED + transposed into the forward-conv HWIO layout; importing
    real PyTorch ConvTranspose2d weights requires the flip/transpose first.
    (kernels are dtype-agnostic: pass dtype=jnp.bfloat16 for bf16 operands)
    """
    keys = iter(jax.random.split(key, 64))

    def conv_p(cin, cout):
        bound = 1.0 / float(cin * 9) ** 0.5
        w = jax.random.uniform(next(keys), (3, 3, cin, cout), dtype, -bound, bound)
        bb = jax.random.uniform(next(keys), (cout,), dtype, -bound, bound)
        return {"w": w, "b": bb}

    nf = num_filters
    p = {
        "conv1": conv_p(3, 64),
        "conv2": conv_p(64, 128),
        "conv3s": conv_p(128, 256),
        "conv3": conv_p(256, 256),
        "conv4s": conv_p(256, 512),
        "conv4": conv_p(512, 512),
        "conv5s": conv_p(512, 512),
        "conv5": conv_p(512, 512),
        "center": {"conv": conv_p(nf * 16, nf * 16), "deconv": conv_p(nf * 16, nf * 8)},
        "dec5": {"conv": conv_p(nf * 24, nf * 16), "deconv": conv_p(nf * 16, nf * 8)},
        "dec4": {"conv": conv_p(nf * 24, nf * 16), "deconv": conv_p(nf * 16, nf * 4)},
        "dec3": {"conv": conv_p(nf * 12, nf * 8), "deconv": conv_p(nf * 8, nf * 2)},
        "dec2": {"conv": conv_p(nf * 6, nf * 4), "deconv": conv_p(nf * 4, nf)},
        "dec1": conv_p(nf * 3, nf),
    }
    fb = 1.0 / float(nf) ** 0.5
    p["final"] = {
        "w": jax.random.uniform(next(keys), (nf, 1), dtype, -fb, fb),
        "b": jax.random.uniform(next(keys), (1,), dtype, -fb, fb),
    }
    return p


def unet11_forward(params, x_nchw, *, use_pallas=True):
    """UNet11.forward -- NCHW in / NCHW out, NHWC internally."""
    x = jnp.transpose(x_nchw, (0, 2, 3, 1))          # NHWC once at entry
    cat = lambda a, b: jnp.concatenate([a, b], axis=-1)
    cr = lambda t, name: conv3x3(t, params[name], relu=True, use_pallas=use_pallas)
    dec = lambda t, name: decoder_block(t, params[name], use_pallas=use_pallas)

    conv1 = cr(x, "conv1")
    conv2 = cr(max_pool_2x2(conv1), "conv2")
    conv3s = cr(max_pool_2x2(conv2), "conv3s")
    conv3_ = cr(conv3s, "conv3")
    conv4s = cr(max_pool_2x2(conv3_), "conv4s")
    conv4 = cr(conv4s, "conv4")
    conv5s = cr(max_pool_2x2(conv4), "conv5s")
    conv5 = cr(conv5s, "conv5")

    center = dec(max_pool_2x2(conv5), "center")
    dec5 = dec(cat(center, conv5), "dec5")
    dec4 = dec(cat(dec5, conv4), "dec4")
    dec3 = dec(cat(dec4, conv3_), "dec3")
    dec2 = dec(cat(dec3, conv2), "dec2")
    dec1 = conv3x3(cat(dec2, conv1), params["dec1"], relu=True, use_pallas=use_pallas)
    out = conv1x1(dec1, params["final"], use_pallas=use_pallas)
    return jnp.transpose(out, (0, 3, 1, 2))          # back to NCHW


# ----------------------------------------------------------------------------
# demo / checks
# ----------------------------------------------------------------------------
if __name__ == "__main__":
    root = jax.random.PRNGKey(0)
    k_params, k_x, k_w, k_b, k_xu = jax.random.split(root, 5)

    # 1) single fused ConvRelu layer vs XLA reference (f32)
    N, Cin, Cout, H, W = 2, 64, 128, 16, 16
    x1 = jax.random.normal(k_x, (N, H, W, Cin), jnp.float32)
    bnd = 1.0 / float(Cin * 9) ** 0.5
    p1 = {"w": jax.random.uniform(k_w, (3, 3, Cin, Cout), jnp.float32, -bnd, bnd),
          "b": jax.random.uniform(k_b, (Cout,), jnp.float32, -bnd, bnd)}
    y_pl = jax.block_until_ready(conv3x3(x1, p1, relu=True, use_pallas=True))
    y_rf = conv3x3(x1, p1, relu=True, use_pallas=False)
    assert jnp.allclose(y_pl, y_rf, atol=2e-3, rtol=2e-3)

    # 2) same layer with native bf16 MXU operands (f32 accumulation)
    x1b = x1.astype(jnp.bfloat16)
    p1b = {"w": p1["w"].astype(jnp.bfloat16), "b": p1["b"].astype(jnp.bfloat16)}
    yb_pl = jax.block_until_ready(conv3x3(x1b, p1b, relu=True, use_pallas=True))
    yb_rf = conv3x3(x1b, p1b, relu=True, use_pallas=False)
    assert jnp.allclose(yb_pl.astype(jnp.float32), yb_rf.astype(jnp.float32),
                        atol=5e-2, rtol=5e-2)

    # 3) transposed-conv (DecoderBlock upsample) path
    xd = jax.random.normal(k_x, (2, 8, 8, 64), jnp.float32)
    pd = {"w": jax.random.uniform(k_w, (3, 3, 64, 32), jnp.float32, -bnd, bnd),
          "b": jax.random.uniform(k_b, (32,), jnp.float32, -bnd, bnd)}
    z_pl = jax.block_until_ready(deconv3x3_relu(xd, pd, use_pallas=True))
    z_rf = deconv3x3_relu(xd, pd, use_pallas=False)
    assert z_pl.shape == (2, 16, 16, 32)
    assert jnp.allclose(z_pl, z_rf, atol=2e-3, rtol=2e-3)

    # 4) full UNet11 forward (f32), Pallas vs XLA reference
    params = init_unet11_params(k_params, num_filters=32)
    x = jax.random.normal(k_xu, (2, 3, 64, 64), jnp.float32)

    fwd_pl = jax.jit(lambda p, t: unet11_forward(p, t, use_pallas=True))
    fwd_rf = jax.jit(lambda p, t: unet11_forward(p, t, use_pallas=False))

    out = jax.block_until_ready(fwd_pl(params, x))
    ref = jax.block_until_ready(fwd_rf(params, x))

    assert out.shape == (2, 1, 64, 64)
    assert bool(jnp.all(jnp.isfinite(out)))
    scale = float(jnp.max(jnp.abs(ref))) + 1e-30
    err = float(jnp.max(jnp.abs(out - ref)))
    assert err <= 2e-2 * scale, (err, scale)

    print("KERNEL_OK")
</pallas_src>

<mosaic_0001>
module attributes {stable_mosaic.version = 11 : i64} {
  func.func @kernel(%arg0: i32, %arg1: i32, %arg2: i32, %arg3: memref<1x16x18x64xf32, #tpu.memory_space<vmem>>, %arg4: memref<1x2x18x64xf32, #tpu.memory_space<vmem>>, %arg5: memref<3x192x128xf32, #tpu.memory_space<vmem>>, %arg6: memref<1x128xf32, #tpu.memory_space<vmem>>, %arg7: memref<1x16x16x128xf32, #tpu.memory_space<vmem>>, %arg8: memref<3x256x192xf32, #tpu.memory_space<vmem>>) attributes {dimension_semantics = [#tpu.dimension_semantics<parallel>, #tpu.dimension_semantics<parallel>, #tpu.dimension_semantics<parallel>], iteration_bounds = array<i64: 2, 1, 1>, scalar_prefetch = 0 : i64, scratch_operands = 1 : i64, tpu.core_type = #tpu.core_type<tc>, window_params = [{transform_indices = @transform_0, window_bounds = array<i64: 1, 16, 18, 64>}, {transform_indices = @transform_1, window_bounds = array<i64: 1, 2, 18, 64>}, {transform_indices = @transform_2, window_bounds = array<i64: 3, 192, 128>}, {transform_indices = @transform_3, window_bounds = array<i64: 1, 128>}, {transform_indices = @transform_4, window_bounds = array<i64: 1, 16, 16, 128>}]} {
    %c0 = arith.constant 0 : index
    %c0_0 = arith.constant 0 : index
    %c0_1 = arith.constant 0 : index
    %c0_2 = arith.constant 0 : index
    %0 = vector.load %arg3[%c0, %c0_0, %c0_1, %c0_2] : memref<1x16x18x64xf32, #tpu.memory_space<vmem>>, vector<1x16x16x64xf32>
    %1 = vector.shape_cast %0 : vector<1x16x16x64xf32> to vector<16x16x64xf32>
    %2 = vector.shape_cast %1 : vector<16x16x64xf32> to vector<256x64xf32>
    %c0_3 = arith.constant 0 : index
    %c0_4 = arith.constant 0 : index
    %c0_5 = arith.constant 0 : index
    %3 = vector.load %arg8[%c0_3, %c0_4, %c0_5] : memref<3x256x192xf32, #tpu.memory_space<vmem>>, vector<1x256x64xf32>
    %4 = vector.shape_cast %3 : vector<1x256x64xf32> to vector<256x64xf32>
    %5 = vector.shape_cast %2 : vector<256x64xf32> to vector<1x256x64xf32>
    tpu.vector_store %arg8[%c0_3, %c0_4, %c0_5], %5 {strides = array<i32>} : memref<3x256x192xf32, #tpu.memory_space<vmem>>, vector<1x256x64xf32>,
    %c0_6 = arith.constant 0 : index
    %c0_7 = arith.constant 0 : index
    %c1 = arith.constant 1 : index
    %c0_8 = arith.constant 0 : index
    %6 = vector.load %arg3[%c0_6, %c0_7, %c1, %c0_8] : memref<1x16x18x64xf32, #tpu.memory_space<vmem>>, vector<1x16x16x64xf32>
    %7 = vector.shape_cast %6 : vector<1x16x16x64xf32> to vector<16x16x64xf32>
    %8 = vector.shape_cast %7 : vector<16x16x64xf32> to vector<256x64xf32>
    %c0_9 = arith.constant 0 : index
    %c0_10 = arith.constant 0 : index
    %c64 = arith.constant 64 : index
    %9 = vector.load %arg8[%c0_9, %c0_10, %c64] : memref<3x256x192xf32, #tpu.memory_space<vmem>>, vector<1x256x64xf32>
    %10 = vector.shape_cast %9 : vector<1x256x64xf32> to vector<256x64xf32>
    %11 = vector.shape_cast %8 : vector<256x64xf32> to vector<1x256x64xf32>
    tpu.vector_store %arg8[%c0_9, %c0_10, %c64], %11 {strides = array<i32>} : memref<3x256x192xf32, #tpu.memory_space<vmem>>, vector<1x256x64xf32>,
    %c0_11 = arith.constant 0 : index
    %c0_12 = arith.constant 0 : index
    %c2 = arith.constant 2 : index
    %c0_13 = arith.constant 0 : index
    %12 = vector.load %arg3[%c0_11, %c0_12, %c2, %c0_13] : memref<1x16x18x64xf32, #tpu.memory_space<vmem>>, vector<1x16x16x64xf32>
    %13 = vector.shape_cast %12 : vector<1x16x16x64xf32> to vector<16x16x64xf32>
    %14 = vector.shape_cast %13 : vector<16x16x64xf32> to vector<256x64xf32>
    %c0_14 = arith.constant 0 : index
    %c0_15 = arith.constant 0 : index
    %c128 = arith.constant 128 : index
    %15 = vector.load %arg8[%c0_14, %c0_15, %c128] : memref<3x256x192xf32, #tpu.memory_space<vmem>>, vector<1x256x64xf32>
    %16 = vector.shape_cast %15 : vector<1x256x64xf32> to vector<256x64xf32>
    %17 = vector.shape_cast %14 : vector<256x64xf32> to vector<1x256x64xf32>
    tpu.vector_store %arg8[%c0_14, %c0_15, %c128], %17 {strides = array<i32>} : memref<3x256x192xf32, #tpu.memory_space<vmem>>, vector<1x256x64xf32>,
    %c0_16 = arith.constant 0 : index
    %c0_17 = arith.constant 0 : index
    %c0_18 = arith.constant 0 : index
    %18 = vector.load %arg8[%c0_16, %c0_17, %c0_18] : memref<3x256x192xf32, #tpu.memory_space<vmem>>, vector<1x256x192xf32>
    %19 = vector.shape_cast %18 : vector<1x256x192xf32> to vector<256x192xf32>
    %c0_19 = arith.constant 0 : index
    %c0_20 = arith.constant 0 : index
    %c0_21 = arith.constant 0 : index
    %20 = vector.load %arg5[%c0_19, %c0_20, %c0_21] : memref<3x192x128xf32, #tpu.memory_space<vmem>>, vector<1x192x128xf32>
    %21 = vector.shape_cast %20 : vector<1x192x128xf32> to vector<192x128xf32>
    %cst = arith.constant dense<0.000000e+00> : vector<256x128xf32>
    %22 = tpu.matmul %19, %21, %cst {dimension_numbers = #tpu.dot_dimension_numbers<[1], [0], [0], [1], [0, 0, 1, 1], [], []>} : vector<256x192xf32>, vector<192x128xf32>, vector<256x128xf32> -> vector<256x128xf32>
    %c0_22 = arith.constant 0 : index
    %c1_23 = arith.constant 1 : index
    %c0_24 = arith.constant 0 : index
    %c0_25 = arith.constant 0 : index
    %23 = vector.load %arg3[%c0_22, %c1_23, %c0_24, %c0_25] : memref<1x16x18x64xf32, #tpu.memory_space<vmem>>, vector<1x15x16x64xf32>
    %24 = vector.shape_cast %23 : vector<1x15x16x64xf32> to vector<15x16x64xf32>
    %25 = vector.shape_cast %24 : vector<15x16x64xf32> to vector<240x64xf32>
    %c1_26 = arith.constant 1 : index
    %c0_27 = arith.constant 0 : index
    %c0_28 = arith.constant 0 : index
    %26 = vector.load %arg8[%c1_26, %c0_27, %c0_28] : memref<3x256x192xf32, #tpu.memory_space<vmem>>, vector<1x240x64xf32>
    %27 = vector.shape_cast %26 : vector<1x240x64xf32> to vector<240x64xf32>
    %28 = vector.shape_cast %25 : vector<240x64xf32> to vector<1x240x64xf32>
    tpu.vector_store %arg8[%c1_26, %c0_27, %c0_28], %28 {strides = array<i32>} : memref<3x256x192xf32, #tpu.memory_space<vmem>>, vector<1x240x64xf32>,
    %c0_29 = arith.constant 0 : index
    %c0_30 = arith.constant 0 : index
    %c0_31 = arith.constant 0 : index
    %c0_32 = arith.constant 0 : index
    %29 = vector.load %arg4[%c0_29, %c0_30, %c0_31, %c0_32] : memref<1x2x18x64xf32, #tpu.memory_space<vmem>>, vector<1x1x16x64xf32>
    %30 = vector.shape_cast %29 : vector<1x1x16x64xf32> to vector<1x16x64xf32>
    %31 = vector.shape_cast %30 : vector<1x16x64xf32> to vector<16x64xf32>
    %c1_33 = arith.constant 1 : index
    %c240 = arith.constant 240 : index
    %c0_34 = arith.constant 0 : index
    %32 = vector.load %arg8[%c1_33, %c240, %c0_34] : memref<3x256x192xf32, #tpu.memory_space<vmem>>, vector<1x16x64xf32>
    %33 = vector.shape_cast %32 : vector<1x16x64xf32> to vector<16x64xf32>
    %34 = vector.shape_cast %31 : vector<16x64xf32> to vector<1x16x64xf32>
    tpu.vector_store %arg8[%c1_33, %c240, %c0_34], %34 {strides = array<i32>} : memref<3x256x192xf32, #tpu.memory_space<vmem>>, vector<1x16x64xf32>,
    %c0_35 = arith.constant 0 : index
    %c1_36 = arith.constant 1 : index
    %c1_37 = arith.constant 1 : index
    %c0_38 = arith.constant 0 : index
    %35 = vector.load %arg3[%c0_35, %c1_36, %c1_37, %c0_38] : memref<1x16x18x64xf32, #tpu.memory_space<vmem>>, vector<1x15x16x64xf32>
    %36 = vector.shape_cast %35 : vector<1x15x16x64xf32> to vector<15x16x64xf32>
    %37 = vector.shape_cast %36 : vector<15x16x64xf32> to vector<240x64xf32>
    %c1_39 = arith.constant 1 : index
    %c0_40 = arith.constant 0 : index
    %c64_41 = arith.constant 64 : index
    %38 = vector.load %arg8[%c1_39, %c0_40, %c64_41] : memref<3x256x192xf32, #tpu.memory_space<vmem>>, vector<1x240x64xf32>
    %39 = vector.shape_cast %38 : vector<1x240x64xf32> to vector<240x64xf32>
    %40 = vector.shape_cast %37 : vector<240x64xf32> to vector<1x240x64xf32>
    tpu.vector_store %arg8[%c1_39, %c0_40, %c64_41], %40 {strides = array<i32>} : memref<3x256x192xf32, #tpu.memory_space<vmem>>, vector<1x240x64xf32>,
    %c0_42 = arith.constant 0 : index
    %c0_43 = arith.constant 0 : index
    %c1_44 = arith.constant 1 : index
    %c0_45 = arith.constant 0 : index
    %41 = vector.load %arg4[%c0_42, %c0_43, %c1_44, %c0_45] : memref<1x2x18x64xf32, #tpu.memory_space<vmem>>, vector<1x1x16x64xf32>
    %42 = vector.shape_cast %41 : vector<1x1x16x64xf32> to vector<1x16x64xf32>
    %43 = vector.shape_cast %42 : vector<1x16x64xf32> to vector<16x64xf32>
    %c1_46 = arith.constant 1 : index
    %c240_47 = arith.constant 240 : index
    %c64_48 = arith.constant 64 : index
    %44 = vector.load %arg8[%c1_46, %c240_47, %c64_48] : memref<3x256x192xf32, #tpu.memory_space<vmem>>, vector<1x16x64xf32>
    %45 = vector.shape_cast %44 : vector<1x16x64xf32> to vector<16x64xf32>
    %46 = vector.shape_cast %43 : vector<16x64xf32> to vector<1x16x64xf32>
    tpu.vector_store %arg8[%c1_46, %c240_47, %c64_48], %46 {strides = array<i32>} : memref<3x256x192xf32, #tpu.memory_space<vmem>>, vector<1x16x64xf32>,
    %c0_49 = arith.constant 0 : index
    %c1_50 = arith.constant 1 : index
    %c2_51 = arith.constant 2 : index
    %c0_52 = arith.constant 0 : index
    %47 = vector.load %arg3[%c0_49, %c1_50, %c2_51, %c0_52] : memref<1x16x18x64xf32, #tpu.memory_space<vmem>>, vector<1x15x16x64xf32>
    %48 = vector.shape_cast %47 : vector<1x15x16x64xf32> to vector<15x16x64xf32>
    %49 = vector.shape_cast %48 : vector<15x16x64xf32> to vector<240x64xf32>
    %c1_53 = arith.constant 1 : index
    %c0_54 = arith.constant 0 : index
    %c128_55 = arith.constant 128 : index
    %50 = vector.load %arg8[%c1_53, %c0_54, %c128_55] : memref<3x256x192xf32, #tpu.memory_space<vmem>>, vector<1x240x64xf32>
    %51 = vector.shape_cast %50 : vector<1x240x64xf32> to vector<240x64xf32>
    %52 = vector.shape_cast %49 : vector<240x64xf32> to vector<1x240x64xf32>
    tpu.vector_store %arg8[%c1_53, %c0_54, %c128_55], %52 {strides = array<i32>} : memref<3x256x192xf32, #tpu.memory_space<vmem>>, vector<1x240x64xf32>,
    %c0_56 = arith.constant 0 : index
    %c0_57 = arith.constant 0 : index
    %c2_58 = arith.constant 2 : index
    %c0_59 = arith.constant 0 : index
    %53 = vector.load %arg4[%c0_56, %c0_57, %c2_58, %c0_59] : memref<1x2x18x64xf32, #tpu.memory_space<vmem>>, vector<1x1x16x64xf32>
    %54 = vector.shape_cast %53 : vector<1x1x16x64xf32> to vector<1x16x64xf32>
    %55 = vector.shape_cast %54 : vector<1x16x64xf32> to vector<16x64xf32>
    %c1_60 = arith.constant 1 : index
    %c240_61 = arith.constant 240 : index
    %c128_62 = arith.constant 128 : index
    %56 = vector.load %arg8[%c1_60, %c240_61, %c128_62] : memref<3x256x192xf32, #tpu.memory_space<vmem>>, vector<1x16x64xf32>
    %57 = vector.shape_cast %56 : vector<1x16x64xf32> to vector<16x64xf32>
    %58 = vector.shape_cast %55 : vector<16x64xf32> to vector<1x16x64xf32>
    tpu.vector_store %arg8[%c1_60, %c240_61, %c128_62], %58 {strides = array<i32>} : memref<3x256x192xf32, #tpu.memory_space<vmem>>, vector<1x16x64xf32>,
    %c1_63 = arith.constant 1 : index
    %c0_64 = arith.constant 0 : index
    %c0_65 = arith.constant 0 : index
    %59 = vector.load %arg8[%c1_63, %c0_64, %c0_65] : memref<3x256x192xf32, #tpu.memory_space<vmem>>, vector<1x256x192xf32>
    %60 = vector.shape_cast %59 : vector<1x256x192xf32> to vector<256x192xf32>
    %c1_66 = arith.constant 1 : index
    %c0_67 = arith.constant 0 : index
    %c0_68 = arith.constant 0 : index
    %61 = vector.load %arg5[%c1_66, %c0_67, %c0_68] : memref<3x192x128xf32, #tpu.memory_space<vmem>>, vector<1x192x128xf32>
    %62 = vector.shape_cast %61 : vector<1x192x128xf32> to vector<192x128xf32>
    %cst_69 = arith.constant dense<0.000000e+00> : vector<256x128xf32>
    %63 = tpu.matmul %60, %62, %cst_69 {dimension_numbers = #tpu.dot_dimension_numbers<[1], [0], [0], [1], [0, 0, 1, 1], [], []>} : vector<256x192xf32>, vector<192x128xf32>, vector<256x128xf32> -> vector<256x128xf32>
    %64 = arith.addf %22, %63 : vector<256x128xf32>
    %c0_70 = arith.constant 0 : index
    %c2_71 = arith.constant 2 : index
    %c0_72 = arith.constant 0 : index
    %c0_73 = arith.constant 0 : index
    %65 = vector.load %arg3[%c0_70, %c2_71, %c0_72, %c0_73] : memref<1x16x18x64xf32, #tpu.memory_space<vmem>>, vector<1x14x16x64xf32>
    %66 = vector.shape_cast %65 : vector<1x14x16x64xf32> to vector<14x16x64xf32>
    %67 = vector.shape_cast %66 : vector<14x16x64xf32> to vector<224x64xf32>
    %c2_74 = arith.constant 2 : index
    %c0_75 = arith.constant 0 : index
    %c0_76 = arith.constant 0 : index
    %68 = vector.load %arg8[%c2_74, %c0_75, %c0_76] : memref<3x256x192xf32, #tpu.memory_space<vmem>>, vector<1x224x64xf32>
    %69 = vector.shape_cast %68 : vector<1x224x64xf32> to vector<224x64xf32>
    %70 = vector.shape_cast %67 : vector<224x64xf32> to vector<1x224x64xf32>
    tpu.vector_store %arg8[%c2_74, %c0_75, %c0_76], %70 {strides = array<i32>} : memref<3x256x192xf32, #tpu.memory_space<vmem>>, vector<1x224x64xf32>,
    %c0_77 = arith.constant 0 : index
    %c0_78 = arith.constant 0 : index
    %c0_79 = arith.constant 0 : index
    %c0_80 = arith.constant 0 : index
    %71 = vector.load %arg4[%c0_77, %c0_78, %c0_79, %c0_80] : memref<1x2x18x64xf32, #tpu.memory_space<vmem>>, vector<1x2x16x64xf32>
    %72 = vector.shape_cast %71 : vector<1x2x16x64xf32> to vector<2x16x64xf32>
    %73 = vector.shape_cast %72 : vector<2x16x64xf32> to vector<32x64xf32>
    %c2_81 = arith.constant 2 : index
    %c224 = arith.constant 224 : index
    %c0_82 = arith.constant 0 : index
    %74 = vector.load %arg8[%c2_81, %c224, %c0_82] : memref<3x256x192xf32, #tpu.memory_space<vmem>>, vector<1x32x64xf32>
    %75 = vector.shape_cast %74 : vector<1x32x64xf32> to vector<32x64xf32>
    %76 = vector.shape_cast %73 : vector<32x64xf32> to vector<1x32x64xf32>
    tpu.vector_store %arg8[%c2_81, %c224, %c0_82], %76 {strides = array<i32>} : memref<3x256x192xf32, #tpu.memory_space<vmem>>, vector<1x32x64xf32>,
    %c0_83 = arith.constant 0 : index
    %c2_84 = arith.constant 2 : index
    %c1_85 = arith.constant 1 : index
    %c0_86 = arith.constant 0 : index
    %77 = vector.load %arg3[%c0_83, %c2_84, %c1_85, %c0_86] : memref<1x16x18x64xf32, #tpu.memory_space<vmem>>, vector<1x14x16x64xf32>
    %78 = vector.shape_cast %77 : vector<1x14x16x64xf32> to vector<14x16x64xf32>
    %79 = vector.shape_cast %78 : vector<14x16x64xf32> to vector<224x64xf32>
    %c2_87 = arith.constant 2 : index
    %c0_88 = arith.constant 0 : index
    %c64_89 = arith.constant 64 : index
    %80 = vector.load %arg8[%c2_87, %c0_88, %c64_89] : memref<3x256x192xf32, #tpu.memory_space<vmem>>, vector<1x224x64xf32>
    %81 = vector.shape_cast %80 : vector<1x224x64xf32> to vector<224x64xf32>
    %82 = vector.shape_cast %79 : vector<224x64xf32> to vector<1x224x64xf32>
    tpu.vector_store %arg8[%c2_87, %c0_88, %c64_89], %82 {strides = array<i32>} : memref<3x256x192xf32, #tpu.memory_space<vmem>>, vector<1x224x64xf32>,
    %c0_90 = arith.constant 0 : index
    %c0_91 = arith.constant 0 : index
    %c1_92 = arith.constant 1 : index
    %c0_93 = arith.constant 0 : index
    %83 = vector.load %arg4[%c0_90, %c0_91, %c1_92, %c0_93] : memref<1x2x18x64xf32, #tpu.memory_space<vmem>>, vector<1x2x16x64xf32>
    %84 = vector.shape_cast %83 : vector<1x2x16x64xf32> to vector<2x16x64xf32>
    %85 = vector.shape_cast %84 : vector<2x16x64xf32> to vector<32x64xf32>
    %c2_94 = arith.constant 2 : index
    %c224_95 = arith.constant 224 : index
    %c64_96 = arith.constant 64 : index
    %86 = vector.load %arg8[%c2_94, %c224_95, %c64_96] : memref<3x256x192xf32, #tpu.memory_space<vmem>>, vector<1x32x64xf32>
    %87 = vector.shape_cast %86 : vector<1x32x64xf32> to vector<32x64xf32>
    %88 = vector.shape_cast %85 : vector<32x64xf32> to vector<1x32x64xf32>
    tpu.vector_store %arg8[%c2_94, %c224_95, %c64_96], %88 {strides = array<i32>} : memref<3x256x192xf32, #tpu.memory_space<vmem>>, vector<1x32x64xf32>,
    %c0_97 = arith.constant 0 : index
    %c2_98 = arith.constant 2 : index
    %c2_99 = arith.constant 2 : index
    %c0_100 = arith.constant 0 : index
    %89 = vector.load %arg3[%c0_97, %c2_98, %c2_99, %c0_100] : memref<1x16x18x64xf32, #tpu.memory_space<vmem>>, vector<1x14x16x64xf32>
    %90 = vector.shape_cast %89 : vector<1x14x16x64xf32> to vector<14x16x64xf32>
    %91 = vector.shape_cast %90 : vector<14x16x64xf32> to vector<224x64xf32>
    %c2_101 = arith.constant 2 : index
    %c0_102 = arith.constant 0 : index
    %c128_103 = arith.constant 128 : index
    %92 = vector.load %arg8[%c2_101, %c0_102, %c128_103] : memref<3x256x192xf32, #tpu.memory_space<vmem>>, vector<1x224x64xf32>
    %93 = vector.shape_cast %92 : vector<1x224x64xf32> to vector<224x64xf32>
    %94 = vector.shape_cast %91 : vector<224x64xf32> to vector<1x224x64xf32>
    tpu.vector_store %arg8[%c2_101, %c0_102, %c128_103], %94 {strides = array<i32>} : memref<3x256x192xf32, #tpu.memory_space<vmem>>, vector<1x224x64xf32>,
    %c0_104 = arith.constant 0 : index
    %c0_105 = arith.constant 0 : index
    %c2_106 = arith.constant 2 : index
    %c0_107 = arith.constant 0 : index
    %95 = vector.load %arg4[%c0_104, %c0_105, %c2_106, %c0_107] : memref<1x2x18x64xf32, #tpu.memory_space<vmem>>, vector<1x2x16x64xf32>
    %96 = vector.shape_cast %95 : vector<1x2x16x64xf32> to vector<2x16x64xf32>
    %97 = vector.shape_cast %96 : vector<2x16x64xf32> to vector<32x64xf32>
    %c2_108 = arith.constant 2 : index
    %c224_109 = arith.constant 224 : index
    %c128_110 = arith.constant 128 : index
    %98 = vector.load %arg8[%c2_108, %c224_109, %c128_110] : memref<3x256x192xf32, #tpu.memory_space<vmem>>, vector<1x32x64xf32>
    %99 = vector.shape_cast %98 : vector<1x32x64xf32> to vector<32x64xf32>
    %100 = vector.shape_cast %97 : vector<32x64xf32> to vector<1x32x64xf32>
    tpu.vector_store %arg8[%c2_108, %c224_109, %c128_110], %100 {strides = array<i32>} : memref<3x256x192xf32, #tpu.memory_space<vmem>>, vector<1x32x64xf32>,
    %c2_111 = arith.constant 2 : index
    %c0_112 = arith.constant 0 : index
    %c0_113 = arith.constant 0 : index
    %101 = vector.load %arg8[%c2_111, %c0_112, %c0_113] : memref<3x256x192xf32, #tpu.memory_space<vmem>>, vector<1x256x192xf32>
    %102 = vector.shape_cast %101 : vector<1x256x192xf32> to vector<256x192xf32>
    %c2_114 = arith.constant 2 : index
    %c0_115 = arith.constant 0 : index
    %c0_116 = arith.constant 0 : index
    %103 = vector.load %arg5[%c2_114, %c0_115, %c0_116] : memref<3x192x128xf32, #tpu.memory_space<vmem>>, vector<1x192x128xf32>
    %104 = vector.shape_cast %103 : vector<1x192x128xf32> to vector<192x128xf32>
    %cst_117 = arith.constant dense<0.000000e+00> : vector<256x128xf32>
    %105 = tpu.matmul %102, %104, %cst_117 {dimension_numbers = #tpu.dot_dimension_numbers<[1], [0], [0], [1], [0, 0, 1, 1], [], []>} : vector<256x192xf32>, vector<192x128xf32>, vector<256x128xf32> -> vector<256x128xf32>
    %106 = arith.addf %64, %105 : vector<256x128xf32>
    %c0_118 = arith.constant 0 : index
    %c0_119 = arith.constant 0 : index
    %107 = vector.load %arg6[%c0_118, %c0_119] : memref<1x128xf32, #tpu.memory_space<vmem>>, vector<1x128xf32>
    %108 = vector.broadcast %107 : vector<1x128xf32> to vector<256x128xf32>
    %109 = arith.addf %106, %108 : vector<256x128xf32>
    %cst_120 = arith.constant 0.000000e+00 : f32
    %110 = vector.broadcast %cst_120 : f32 to vector<256x128xf32>
    %111 = arith.maximumf %109, %110 : vector<256x128xf32>
    %112 = vector.shape_cast %111 : vector<256x128xf32> to vector<1x16x16x128xf32>
    %c0_121 = arith.constant 0 : index
    %c0_122 = arith.constant 0 : index
    %c0_123 = arith.constant 0 : index
    %c0_124 = arith.constant 0 : index
    %113 = vector.load %arg7[%c0_121, %c0_122, %c0_123, %c0_124] : memref<1x16x16x128xf32, #tpu.memory_space<vmem>>, vector<1x16x16x128xf32>
    tpu.vector_store %arg7[%c0_121, %c0_122, %c0_123, %c0_124], %112 {strides = array<i32>} : memref<1x16x16x128xf32, #tpu.memory_space<vmem>>, vector<1x16x16x128xf32>,
    return
  }
  func.func @transform_0(%arg0: i32, %arg1: i32, %arg2: i32) -> (i32, i32, i32, i32) {
    %c0_i32 = arith.constant 0 : i32
    %c0_i32_0 = arith.constant 0 : i32
    %c0_i32_1 = arith.constant 0 : i32
    return %arg0, %arg2, %c0_i32, %c0_i32_0 : i32, i32, i32, i32
  }
  func.func @transform_1(%arg0: i32, %arg1: i32, %arg2: i32) -> (i32, i32, i32, i32) {
    %c1_i32 = arith.constant 1 : i32
    %0 = arith.addi %arg2, %c1_i32 : i32
    %c8_i32 = arith.constant 8 : i32
    %1 = arith.muli %0, %c8_i32 : i32
    %c0_i32 = arith.constant 0 : i32
    %c0_i32_0 = arith.constant 0 : i32
    %c0_i32_1 = arith.constant 0 : i32
    return %arg0, %1, %c0_i32, %c0_i32_0 : i32, i32, i32, i32
  }
  func.func @transform_2(%arg0: i32, %arg1: i32, %arg2: i32) -> (i32, i32, i32) {
    %c0_i32 = arith.constant 0 : i32
    %c0_i32_0 = arith.constant 0 : i32
    %c0_i32_1 = arith.constant 0 : i32
    return %c0_i32, %c0_i32_0, %arg1 : i32, i32, i32
  }
  func.func @transform_3(%arg0: i32, %arg1: i32, %arg2: i32) -> (i32, i32) {
    %c0_i32 = arith.constant 0 : i32
    %c0_i32_0 = arith.constant 0 : i32
    return %c0_i32, %arg1 : i32, i32
  }
  func.func @transform_4(%arg0: i32, %arg1: i32, %arg2: i32) -> (i32, i32, i32, i32) {
    %c0_i32 = arith.constant 0 : i32
    %c0_i32_0 = arith.constant 0 : i32
    return %arg0, %arg2, %c0_i32, %arg1 : i32, i32, i32, i32
  }
}

</mosaic_0001>

<bundles_post_ra>
// kernel: tpu_custom_call.1
= control target key start
LH: loop header
LB: loop body
LE: loop exit
PB: predicated region body
PF: predicated region fallthrough
CT: control target
= control target key end

     0   :  { %s4908_s0 = inlined_call_operand.hbm [shape: f32[2,18,18,64], index: 0, kind: input, shape index: {}]   ;;  %s4909_s1 = inlined_call_operand.hbm [shape: f32[2,18,18,64], index: 1, kind: input, shape index: {}]   ;;  %s4910_s2 = inlined_call_operand.hbm [shape: f32[3,192,128], index: 2, kind: input, shape index: {}]   ;;  %s4911_s3 = inlined_call_operand.hbm [shape: f32[1,128], index: 3, kind: input, shape index: {}]   ;;  %s4912_s4 = inlined_call_operand.hbm [shape: f32[2,16,16,128], index: 4, kind: output, shape index: {}]  }
   0x1   :  { %4920 = sst [smem:[#allocation19_spill]] %s4908_s0 }
   0x2   :  { %4921 = sst [smem:[#allocation20_spill]] %s4910_s2 }
   0x3   :  { %4922 = sst [smem:[#allocation21_spill]] %s4911_s3 }
   0x4   :  { %9 = vsyncpa [#allocation4], 0 }
   0x5   :  { %11 = vsyncpa [#allocation4 + $0x1], 0 }
   0x6   :  { %12 = vsyncpa [#allocation7], 0 }
   0x7   :  { %14 = vsyncpa [#allocation7 + $0x1], 0 }
   0x8   :  { %15 = vsyncpa [#allocation10], 0 }
   0x9   :  { %16 = vsyncpa [#allocation5], 0 }
   0xa   :  { %18 = vsyncpa [#allocation5 + $0x1], 0  ;;  %s3622_s15 = smov 0   ;;  %s3624_s16 = smov 0  }
   0xb   :  { %s3626_s17 = smov 0   ;;  %s3628_s18 = smov 0  }
   0xc   :  { %s3630_s19 = smov 0   ;;  %s3632_s20 = smov 0  }
   0xd LB: > { %s3653_s21 = sadd.s32 4294967295, %s3584_s20   ;;  %s2844_s22 = sadd.s32 4294967294, %s3584_s20   ;;  %s3584_s20 = sphi %s3632_s20, %s24_s20   ;;  %s3580_s19 = sphi %s3630_s19, %s4951_s19   ;;  %s3576_s18 = sphi %s3628_s18, %s4950_s18   ;;  %s3572_s17 = sphi %s3626_s17, %s4949_s17   ;;  %s3568_s16 = sphi %s3624_s16, %s4948_s16   ;;  %s3564_s15 = sphi %s3622_s15, %s4947_s15  }
   0xe   : > { %p65_p0 = scmp.ne.s32.totalorder %s3568_s16, %s3564_s15  ;;  %p4913_p1 = scmp.eq.s32.totalorder %s3653_s21, 0 }
   0xf   : > { %p183_p3 = scmp.eq.s32.totalorder %s2844_s22, 1  ;;  %p2845_p5 = scmp.ge.s32.totalorder %s3584_s20, 1 }
  0x10   : > { %p3662_p4 = por %p4913_p1, %p65_p0  ;;  %p190_p7 = scmp.lt.s32.totalorder %s3584_s20, 3 }
  0x11   : > { %p3667_p6 = por %p183_p3, %p65_p0  ;;  %s3586_s26 = smov [#allocation8]  }
  0x12   : > { %s4923_s23 = scalar_select %p3662_p4, 1, 0 }
  0x13   : > { %s4924_s24 = scalar_select %p3667_p6, 1, 0 }
  0x14   : > { %p3672_p8 = pnand %p2845_p5, %p190_p7  ;;  %s204_s27 = sshll.u32 %s3586_s26, 4  ;;  %s3676_s27 = int_to_ptr.vmem [resolvable:$true] %s204_s27 }
  0x15   : > { %s3587_s29 = smov [#allocation9]   ;;  %s4927_s2 = sld [smem:[#allocation20_spill]] }
  0x16   : > { %p3283_p9 = pneg %p3672_p8  ;;  %s220_s30 = sshll.u32 %s3587_s29, 4  ;;  %s3687_s30 = int_to_ptr.vmem [resolvable:$true] %s220_s30 }
  0x18   : > { %p3683_p11 = pnand %p3283_p9, %p4913_p1 }
  0x1a   : > { %p3375_p13 = pneg %p3683_p11 }
  0x1b   : > { %s3373_s7 = scalar_lea.hbm %s4927_s2, 9216 }
  0x1c   : > { %p3374_p12 = scmp.ne.s32.totalorder %s4927_s2, %s3373_s7  ;;  %p3380_p5 = scmp.lt.u32.totalorder %s3373_s7, %s4927_s2 }
  0x1e   : > { %p3376_p0 = pnand %p3375_p13, %p3374_p12 }
  0x20   : > { %p3377_p3 = pneg %p3376_p0 }
  0x22   : > { %p3382_p7 = pnand %p3380_p5, %p3377_p3 }
  0x24   : > { %3385 = shalt.err (!%p3382_p7)
}
  0x25   : > { %s3386_s12 = scalar_lea.vmem %s3676_s27, 9216  ;;  %p3394_p2 = scmp.lt.s32.totalorder %s3676_s27, %s3676_s27 }
  0x26   : > { %p3387_p9 = scmp.ne.s32.totalorder %s3676_s27, %s3386_s12  ;;  %p3395_p12 = scmp.lt.s32.totalorder %s3386_s12, %s3386_s12 }
  0x28   : > { %p3389_p10 = pnand %p3387_p9, %p3375_p13  ;;  %p3396_p0 = por %p3395_p12, %p3394_p2 }
  0x2a   : > { %p3390_p1 = pneg %p3389_p10 }
  0x2c   : > { %p3397_p6 = pnand %p3396_p0, %p3390_p1 }
  0x2e   : > { %3400 = shalt.err (!%p3397_p6)
}
  0x2f   : > { %s4914_s13 = smov 128   ;;  %s3589_s14 = smov 8  }
  0x30   : > { %3286 = dma.hbm_to_vmem [thread:$0]  (!%p3683_p11), %s4927_s2, 9216, %s3676_s27, [#allocation7], %s4914_s13, %s4914_s13, %s3589_s14  }
  0x31   : > { %s4928_s3 = sld [smem:[#allocation21_spill]] }
  0x37   : > { %s3401_s6 = scalar_lea.hbm %s4928_s3, 16 }
  0x38   : > { %p3402_p1 = scmp.ne.s32.totalorder %s4928_s3, %s3401_s6  ;;  %p3408_p10 = scmp.lt.u32.totalorder %s3401_s6, %s4928_s3 }
  0x3a   : > { %p3404_p2 = pnand %p3402_p1, %p3375_p13 }
  0x3c   : > { %p3405_p6 = pneg %p3404_p2 }
  0x3e   : > { %p3410_p3 = pnand %p3408_p10, %p3405_p6 }
  0x40   : > { %3413 = shalt.err (!%p3410_p3)
}
  0x41   : > { %s3414_s27 = scalar_lea.vmem %s3687_s30, 16  ;;  %s3421_s11 = scalar_lea.vmem %s3687_s30, 32 }
  0x42   : > { %p3415_p5 = scmp.ne.s32.totalorder %s3687_s30, %s3414_s27  ;;  %p3422_p12 = scmp.lt.s32.totalorder %s3687_s30, %s3687_s30 }
  0x43   : > { %p3423_p0 = scmp.lt.s32.totalorder %s3421_s11, %s3414_s27 }
  0x44   : > { %p3417_p7 = pnand %p3415_p5, %p3375_p13 }
  0x45   : > { %p3424_p1 = por %p3423_p0, %p3422_p12 }
  0x46   : > { %p3418_p9 = pneg %p3417_p7 }
  0x48   : > { %p3425_p2 = pnand %p3424_p1, %p3418_p9 }
  0x4a   : > { %3428 = shalt.err (!%p3425_p2)
}
  0x4b   : > { %3289 = dma.hbm_to_vmem [thread:$0]  (!%p3683_p11), %s4928_s3, 16, %s3687_s30, [#allocation10]  }
  0x4c   : > { %s43_s26 = sadd.s32 1, %s3580_s19  ;;  %s52_s29 = sadd.s32 1, %s3572_s17 }
  0x4d   : > { %p45_p13 = scmp.ge.s32.totalorder %s43_s26, 2  ;;  %p59_p6 = scmp.ne.s32.totalorder %s3572_s17, %s3568_s16 }
  0x4e   : > { %p60_p10 = scmp.eq.s32.totalorder %s3584_s20, 0  ;;  %p3303_p3 = scmp.lt.s32.totalorder %s3584_s20, 2 }
  0x4f   : > { %s4953_s26 = smov (%p45_p13, %s43_s26), 0  ;;  %p4930_p7 = scmp.eq.s32.totalorder %s3653_s21, 1 }
  0x50   : > { %4929 = sst [smem:[#allocation17_spill]] %s4953_s26  ;;  %p61_p5 = por %p60_p10, %p59_p6 }
  0x51   : > { %p3755_p9 = por %p4930_p7, %p59_p6  ;;  %s47_s5 = ssub.s32 %s3580_s19, %s4953_s26 }
  0x52   : > { %s3762_s6 = sand.u32 1, %s3572_s17   ;;  %p50_p11 = scmp.eq.s32.totalorder %s47_s5, 0 }
  0x53   : > { %s4931_s28 = scalar_select %p3755_p9, 1, 0 }
  0x54   : > { %s3264_s30 = smul.u32 384, %s3762_s6  ;;  %p3765_p12 = pnand %p3303_p3, %p61_p5 }
  0x55   : > { %s3770_s8 = scalar_select %p50_p11, %s3572_s17, %s52_s29  }
  0x56   : > { %s4916_s9 = smul.u32 6912, %s3580_s19  ;;  %s235_s10 = scalar_lea.vmem [#allocation3], %s3264_s30 }
  0x57   : > { %4933 = sst [smem:[#allocation18_spill]] %s3770_s8  ;;  %s253_s27 = sshll.u32 %s235_s10, 4  ;;  %s3780_s27 = int_to_ptr.vmem [resolvable:$true] %s253_s27 }
  0x58   : > { %s4934_s0 = sld [smem:[#allocation19_spill]]  ;;  %s232_s5 = scalar_lea.sflag [#allocation4], %s3762_s6 }
  0x59   : > { %p3431_p1 = pneg %p3765_p12 }
  0x5e   : > { %s3778_s22 = scalar_lea.hbm %s4934_s0, %s4916_s9  ;;  %s3434_s10 = scalar_lea.hbm %s4934_s0, 13824 }
  0x5f   : > { %s3429_s13 = scalar_lea.hbm %s3778_s22, 6144  ;;  %p3435_p6 = scmp.lt.u32.totalorder %s3778_s22, %s4934_s0 }
  0x60   : > { %p3430_p0 = scmp.ne.s32.totalorder %s3778_s22, %s3429_s13  ;;  %p3436_p10 = scmp.lt.u32.totalorder %s3434_s10, %s3429_s13 }
  0x61   : > { %p3438_p5 = scmp.lt.u32.totalorder %s3429_s13, %s3778_s22 }
  0x62   : > { %p3432_p2 = pnand %p3431_p1, %p3430_p0  ;;  %p3437_p3 = por %p3436_p10, %p3435_p6 }
  0x64   : > { %p3433_p13 = pneg %p3432_p2  ;;  %p3439_p7 = por %p3438_p5, %p3437_p3 }
  0x66   : > { %p3440_p11 = pnand %p3439_p7, %p3433_p13 }
  0x68   : > { %3443 = shalt.err (!%p3440_p11)
}
  0x69   : > { %s3444_s9 = scalar_lea.vmem %s3780_s27, 6144  ;;  %s3590_s29 = smov [#allocation3]  }
  0x6a   : > { %p3445_p0 = scmp.ne.s32.totalorder %s3780_s27, %s3444_s9  ;;  %s3449_s30 = sshll.u32 %s3590_s29, 4  ;;  %s3450_s30 = int_to_ptr.vmem [resolvable:$false] %s3449_s30 }
  0x6b   : > { %s3451_s11 = scalar_lea.vmem %s3450_s30, 12288  ;;  %p3452_p4 = scmp.lt.s32.totalorder %s3780_s27, %s3450_s30 }
  0x6c   : > { %p3447_p2 = pnand %p3445_p0, %p3431_p1  ;;  %p3453_p6 = scmp.lt.s32.totalorder %s3451_s11, %s3444_s9 }
  0x6e   : > { %p3448_p9 = pneg %p3447_p2  ;;  %p3454_p10 = por %p3453_p6, %p3452_p4 }
  0x70   : > { %p3455_p3 = pnand %p3454_p10, %p3448_p9 }
  0x72   : > { %3458 = shalt.err (!%p3455_p3)
}
  0x73   : > { %s4935_s13 = smov 128   ;;  %s263_s10 = sand.u32 1, %s3584_s20  }
  0x74   : > { %3293 = dma.hbm_to_vmem [thread:$0]  (!%p3765_p12), %s3778_s22, 6144, %s3780_s27, %s232_s5, %s4935_s13, %s4935_s13, %s3589_s14  }
  0x75   : > { %s3266_s12 = smul.u32 48, %s3762_s6  ;;  %s3824_s26 = scalar_lea.sflag [#allocation7], %s263_s10 }
  0x76   : > { %s4936_s9 = smul.u32 6912, %s3580_s19  ;;  %s3464_s22 = scalar_lea.hbm %s4909_s1, 13824 }
  0x77   : > { %s267_s2 = scalar_lea.vmem [#allocation6], %s3266_s12 }
  0x78   : > { %s2752_s11 = scalar_lea.hbm %s4909_s1, %s4936_s9  ;;  %s279_s3 = sshll.u32 %s267_s2, 4  ;;  %s3822_s3 = int_to_ptr.vmem [resolvable:$true] %s279_s3 }
  0x79   : > { %s3820_s0 = scalar_lea.hbm %s2752_s11, 6144  ;;  %s3489_s8 = scalar_lea.hbm %s2752_s11, 6912 }
  0x7a   : > { %p3460_p4 = scmp.ne.s32.totalorder %s3820_s0, %s3489_s8  ;;  %p3465_p5 = scmp.lt.u32.totalorder %s3820_s0, %s4909_s1 }
  0x7b   : > { %p3466_p7 = scmp.lt.u32.totalorder %s3464_s22, %s3489_s8  ;;  %p3468_p0 = scmp.lt.u32.totalorder %s3489_s8, %s3820_s0 }
  0x7c   : > { %p3462_p9 = pnand %p3460_p4, %p3431_p1 }
  0x7d   : > { %p3467_p11 = por %p3466_p7, %p3465_p5 }
  0x7e   : > { %p3463_p13 = pneg %p3462_p9 }
  0x7f   : > { %p3469_p2 = por %p3468_p0, %p3467_p11 }
  0x81   : > { %p3470_p6 = pnand %p3469_p2, %p3463_p13 }
  0x83   : > { %3473 = shalt.err (!%p3470_p6)
}
  0x84   : > { %s3474_s2 = scalar_lea.vmem %s3822_s3, 768  ;;  %s3591_s10 = smov [#allocation6]  }
  0x85   : > { %p3475_p10 = scmp.ne.s32.totalorder %s3822_s3, %s3474_s2  ;;  %s3479_s12 = sshll.u32 %s3591_s10, 4  ;;  %s3480_s12 = int_to_ptr.vmem [resolvable:$false] %s3479_s12 }
  0x86   : > { %s3481_s29 = scalar_lea.vmem %s3480_s12, 1536  ;;  %p3482_p9 = scmp.lt.s32.totalorder %s3822_s3, %s3480_s12 }
  0x87   : > { %p3477_p3 = pnand %p3475_p10, %p3431_p1  ;;  %p3483_p5 = scmp.lt.s32.totalorder %s3481_s29, %s3474_s2 }
  0x89   : > { %p3478_p4 = pneg %p3477_p3  ;;  %p3484_p7 = por %p3483_p5, %p3482_p9 }
  0x8b   : > { %p3485_p11 = pnand %p3484_p7, %p3478_p4 }
  0x8d   : > { %3488 = shalt.err (!%p3485_p11)
}
  0x8e   : > { %3296 = dma.hbm_to_vmem [thread:$0]  (!%p3765_p12), %s3820_s0, 768, %s3822_s3, %s3824_s26, %s4935_s13, %s4935_s13, %s3589_s14  }
  0x8f   : > { %291 = sbr.rel (%p3672_p8) target bundleno = 718 (0x2ce), region = 36  ;;  %s3855_s8 = sand.u32 (!%p3672_p8), 1, %s3568_s16  }
  0x90   : > { %s3267_s30 = smul.u32 (!%p3672_p8), 384, %s3855_s8  ;;  %s294_s11 = scalar_lea.sflag (!%p3672_p8), [#allocation4], %s3855_s8 }
  0x91   : > { %p4937_p1 = scmp.ne.s32.totalorder (!%p3672_p8), %s4923_s23, 0 }
  0x92   : > { %s3859_s6 = scalar_lea.vmem (!%p3672_p8), [#allocation3], %s3267_s30 }
  0x96   : > { %3543 = dma.done.wait (%p4937_p1), %s294_s11, 6144  }
  0x97   : > { %3545 = vsyncadd (%p4937_p1), %s294_s11, 4294961152  ;;  %s302_s0 = sand.u32 1, %s3653_s21   ;;  %s3268_s3 = smul.u32 48, %s3855_s8 }
  0x98   : > { %s303_s25 = scalar_lea.sflag [#allocation7], %s302_s0 }
  0x99   : > { %s3867_s14 = scalar_lea.vmem [#allocation6], %s3268_s3 }
  0x9a   : > { %3547 = dma.done.wait (%p4937_p1), %s303_s25, 768  }
  0x9b   : > { %3549 = vsyncadd (%p4937_p1), %s303_s25, 4294966528  ;;  %p4938_p8 = scmp.eq.s32.totalorder %s3653_s21, 0 }
  0x9d   : > { %3551 = dma.done.wait (%p4938_p8), [#allocation7], 9216   ;;  %p4939_p12 = pmov %p4938_p8 }
  0x9e   : > { %p4940_p13 = pmov %p4938_p8 }
  0x9f   : > { %3553 = vsyncadd (%p4939_p12), [#allocation7], 4294958080 }
  0xa0   : > { %3555 = dma.done.wait (%p4940_p13), [#allocation10], 16   ;;  %p4941_p0 = pmov %p4938_p8 }
  0xa1   : > { %v3592_v0 = vmov 0.0|0.0   ;;  %v3884_v1 = vld [vmem:[%s3859_s6 + $0xd9] sm:$0xff]  ;;  %v3887_v2 = vld [vmem:[%s3859_s6 + $0xe1] sm:$0xff]  ;;  %s3593_s23 = smov 64   ;;  %v3904_v7 = vld [vmem:[%s3859_s6 + $0xf1] sm:$0xff]  ;;  %vm386_vm0 = vcmask 523264  }
  0xa2   : > { %3557 = vsyncadd (%p4941_p0), [#allocation10], 4294967280  ;;  %3240 = vmatprep.subr.bf16.mxu1 %v3592_v0  ;;  %3132 = vmatprep.subr.bf16.mxu0 %v3592_v0  ;;  %v3894_v3 = vld [vmem:[%s3859_s6 + $0x19] sm:$0xff]  ;;  %v3897_v4 = vld [vmem:[%s3859_s6 + $0x21] sm:$0xff]  ;;  %vm579_vm1 = vcmask 1048064   ;;  %s2854_s21 = sshll.u32 %s3855_s8, 8 }
  0xa3   : > { %922 = vrot.lane.b32.xlu0 %v3884_v1, %s3593_s23  ;;  %924 = vrot.lane.b32.xlu1 %v3887_v2, %s3593_s23  ;;  %v1151_v5 = vld [vmem:[#allocation8 + $0xc0] sm:$0xff]  ;;  %v1152_v6 = vld [vmem:[#allocation8 + $0xc8] sm:$0xff]  ;;  %v3907_v8 = vld [vmem:[%s3859_s6 + $0x31] sm:$0xff]  ;;  %s4758_s26 = scalar_lea.vmem [#allocation11], %s2854_s21  ;;  %s3131_s7 = sshll.u32 %s3576_s18, 12 }
  0xa4   : > { %v3133_v9 = vpack.c.bf16 %v1152_v6, %v1151_v5  ;;  %v3914_v10 = vld [vmem:[%s3859_s6 + $0xf9] sm:$0xff]  ;;  %v1153_v12 = vld [vmem:[#allocation8 + $0xd0] sm:$0xff]  ;;  %v1156_v16 = vld [vmem:[#allocation8 + $0xe8] sm:$0xff]  ;;  %s2702_s13 = sshll.u32 %s4758_s26, 4  ;;  %s4856_s5 = scalar_lea.hbm %s4912_s4, %s3131_s7  ;;  %s4858_s13 = int_to_ptr.vmem [resolvable:$true] %s2702_s13 }
  0xa5   : > { %v3917_v11 = vld [vmem:[%s3859_s6 + $0x39] sm:$0xff]  ;;  %v3926_v17 = vld [vmem:[%s3859_s6 + $0x109] sm:$0xff]  ;;  %v2906_v22 = vld [vmem:[%s3859_s6 + $0x111] sm:$0xff]  ;;  %s2685_s9 = scalar_lea.sflag [#allocation5], %s3855_s8  ;;  %s3490_s2 = scalar_lea.vmem %s4858_s13, 4096 }
  0xa6   : > { %3252 = vmatpush1.bf16.msra.mxu1 %v3133_v9  ;;  %3134 = vmatpush1.bf16.msra.mxu0 %v3133_v9  ;;  %v1154_v13 = vld [vmem:[#allocation8 + $0xd8] sm:$0xff]  ;;  %v1155_v14 = vld [vmem:[#allocation8 + $0xe0] sm:$0xff]  ;;  %v3929_v18 = vld [vmem:[%s3859_s6 + $0x49] sm:$0xff]  ;;  %p3491_p2 = scmp.ne.s32.totalorder %s4858_s13, %s3490_s2  ;;  %p4942_p6 = scmp.ne.s32.totalorder %s4931_s28, 0 }
  0xa7   : > { %890 = vrot.lane.b32.xlu0 %v3894_v3, %s3593_s23  ;;  %892 = vrot.lane.b32.xlu1 %v3897_v4, %s3593_s23  ;;  %v3136_v15 = vpack.c.bf16 %v1154_v13, %v1153_v12  ;;  %v3139_v19 = vpack.c.bf16 %v1156_v16, %v1155_v14  ;;  %v1157_v20 = vld [vmem:[#allocation8 + $0xf0] sm:$0xff]  ;;  %v1158_v21 = vld [vmem:[#allocation8 + $0xf8] sm:$0xff]  ;;  %v1159_v26 = vld [vmem:[#allocation8 + $0x100] sm:$0xff]  ;;  %s3594_s18 = smov [#allocation11]  }
  0xa8   : > { %3241 = vmatprep.subr.bf16.mxu1 %v3592_v0  ;;  %3135 = vmatprep.subr.bf16.mxu0 %v3592_v0  ;;  %v3939_v23 = vld [vmem:[%s3859_s6 + $0x51] sm:$0xff]  ;;  %v3142_v25 = vpack.c.bf16 %v1158_v21, %v1157_v20  ;;  %v2872_v27 = vld [vmem:[%s3859_s6 + $0xe0] sm:$0xff]  ;;  %v1160_v30 = vld [vmem:[#allocation8 + $0x108] sm:$0xff]  ;;  %p3492_p10 = pnand %p3491_p2, %p4942_p6  ;;  %s3494_s10 = sshll.u32 %s3594_s18, 4  ;;  %s3495_s10 = int_to_ptr.vmem [resolvable:$false] %s3494_s10 }
  0xa9   : > { %v2871_v24 = vld [vmem:[%s3859_s6 + $0xd8] sm:$0xff]  ;;  %v2907_v29 = vld [vmem:[%s3859_s6 + $0x121] sm:$0xff]  ;;  %813 = vst.msk [vmem:[#allocation2 + $0x310] sm:$0xff] %vm386_vm0, %v2872_v27  ;;  %v2873_v34 = vld [vmem:[%s3859_s6 + $0xf0] sm:$0xff]  ;;  %v3145_v38 = vpack.c.bf16 %v1160_v30, %v1159_v26  ;;  %s3496_s12 = scalar_lea.vmem %s3495_s10, 8192  ;;  %p3497_p4 = scmp.lt.s32.totalorder %s4858_s13, %s3495_s10 }
  0xaa   : > { %3253 = vmatpush1.bf16.msra.mxu1 %v3136_v15  ;;  %3137 = vmatpush1.bf16.msra.mxu0 %v3136_v15  ;;  %812 = vst.msk [vmem:[#allocation2 + $0x300] sm:$0xff] %vm386_vm0, %v2871_v24  ;;  %v2855_v28 = vld [vmem:[%s3859_s6 + $0x18] sm:$0xff]  ;;  %v2856_v32 = vld [vmem:[%s3859_s6 + $0x20] sm:$0xff]  ;;  %814 = vst.msk [vmem:[#allocation2 + $0x320] sm:$0xff] %vm386_vm0, %v2873_v34  ;;  %p3493_p3 = pneg %p3492_p10  ;;  %p3498_p9 = scmp.lt.s32.totalorder %s3496_s12, %s3490_s2 }
  0xab   : > { %926 = vrot.lane.b32.xlu0 %v3904_v7, %s3593_s23  ;;  %894 = vrot.lane.b32.xlu1 %v3907_v8, %s3593_s23  ;;  %796 = vst.msk [vmem:[#allocation2 + $0x200] sm:$0xff] %vm386_vm0, %v2855_v28  ;;  %v2931_v31 = vld [vmem:[%s3859_s6 + $0xda] sm:$0xff]  ;;  %797 = vst.msk [vmem:[#allocation2 + $0x210] sm:$0xff] %vm386_vm0, %v2856_v32  ;;  %v2857_v36 = vld [vmem:[%s3859_s6 + $0x30] sm:$0xff] }
  0xac   : > { %3242 = vmatprep.subr.bf16.mxu1 %v3592_v0  ;;  %3138 = vmatprep.subr.bf16.mxu0 %v3592_v0  ;;  %v3956_v33 = vld [vmem:[%s3859_s6 + $0x61] sm:$0xff]  ;;  %1068 = vst.msk [vmem:[#allocation2 + $0x308] sm:$0xff] %vm386_vm0, %v2931_v31  ;;  %v2874_v37 = vld [vmem:[%s3859_s6 + $0xf8] sm:$0xff]  ;;  %v1161_v39 = vld [vmem:[#allocation8 + $0x110] sm:$0xff]  ;;  %p3499_p5 = por %p3498_p9, %p3497_p4 }
  0xad   : > { %v2915_v35 = vld [vmem:[%s3859_s6 + $0x1a] sm:$0xff]  ;;  %798 = vst.msk [vmem:[#allocation2 + $0x220] sm:$0xff] %vm386_vm0, %v2857_v36  ;;  %815 = vst.msk [vmem:[#allocation2 + $0x330] sm:$0xff] %vm386_vm0, %v2874_v37  ;;  %v2932_v41 = vld [vmem:[%s3859_s6 + $0xe2] sm:$0xff] }
  0xae   : > { %3254 = vmatpush1.bf16.msra.mxu1 %v3139_v19  ;;  %3140 = vmatpush1.bf16.msra.mxu0 %v3139_v19  ;;  %v1162_v40 = vld [vmem:[#allocation8 + $0x118] sm:$0xff]  ;;  %1052 = vst.msk [vmem:[#allocation2 + $0x208] sm:$0xff] %vm386_vm0, %v2915_v35  ;;  %1847 = vst.msk [vmem:[#allocation2 + $0x400] sm:$0xff] %vm386_vm0, %v2857_v36  ;;  %v2875_v43 = vld [vmem:[%s3859_s6 + $0x108] sm:$0xff]  ;;  %p3500_p7 = pnand %p3499_p5, %p3493_p3 }
  0xaf   : > { %928 = vrot.lane.b32.xlu0 %v3914_v10, %s3593_s23  ;;  %896 = vrot.lane.b32.xlu1 %v3917_v11, %s3593_s23  ;;  %1069 = vst.msk [vmem:[#allocation2 + $0x318] sm:$0xff] %vm386_vm0, %v2932_v41  ;;  %v2858_v42 = vld [vmem:[%s3859_s6 + $0x38] sm:$0xff]  ;;  %v2916_v44 = vld [vmem:[%s3859_s6 + $0x22] sm:$0xff]  ;;  %816 = vst.msk [vmem:[#allocation2 + $0x340] sm:$0xff] %vm386_vm0, %v2875_v43  ;;  %v3148_v49 = vpack.c.bf16 %v1162_v40, %v1161_v39 }
  0xb0   : > { %3243 = vmatprep.subr.bf16.mxu1 %v3592_v0  ;;  %3141 = vmatprep.subr.bf16.mxu0 %v3592_v0  ;;  %799 = vst.msk [vmem:[#allocation2 + $0x230] sm:$0xff] %vm386_vm0, %v2858_v42  ;;  %1053 = vst.msk [vmem:[#allocation2 + $0x218] sm:$0xff] %vm386_vm0, %v2916_v44  ;;  %v2933_v45 = vld [vmem:[%s3859_s6 + $0xf2] sm:$0xff]  ;;  %v2908_v46 = vld [vmem:[%s3859_s6 + $0x129] sm:$0xff] }
  0xb1   : > { %1848 = vst.msk [vmem:[#allocation2 + $0x410] sm:$0xff] %vm386_vm0, %v2858_v42  ;;  %v3986_v47 = vld [vmem:[%s3859_s6 + $0x69] sm:$0xff]  ;;  %1070 = vst.msk [vmem:[#allocation2 + $0x328] sm:$0xff] %vm386_vm0, %v2933_v45  ;;  %v2917_v51 = vld [vmem:[%s3859_s6 + $0x32] sm:$0xff] }
  0xb2   : > { %3255 = vmatpush1.bf16.msra.mxu1 %v3142_v25  ;;  %3143 = vmatpush1.bf16.msra.mxu0 %v3142_v25  ;;  %v2859_v48 = vld [vmem:[%s3859_s6 + $0x48] sm:$0xff]  ;;  %v2876_v50 = vld [vmem:[%s3859_s6 + $0x110] sm:$0xff]  ;;  %v2934_v52 = vld [vmem:[%s3859_s6 + $0xfa] sm:$0xff]  ;;  %1054 = vst.msk [vmem:[#allocation2 + $0x228] sm:$0xff] %vm386_vm0, %v2917_v51 }
  0xb3   : > { %930 = vrot.lane.b32.xlu0 %v3926_v17, %s3593_s23  ;;  %898 = vrot.lane.b32.xlu1 %v3929_v18, %s3593_s23  ;;  %800 = vst.msk [vmem:[#allocation2 + $0x240] sm:$0xff] %vm386_vm0, %v2859_v48  ;;  %1849 = vst.msk [vmem:[#allocation2 + $0x420] sm:$0xff] %vm386_vm0, %v2859_v48  ;;  %v2909_v53 = vld [vmem:[%s3859_s6 + $0x139] sm:$0xff]  ;;  %v1164_v55 = vld [vmem:[#allocation8 + $0x128] sm:$0xff] }
  0xb4   : > { %3244 = vmatprep.subr.bf16.mxu1 %v3592_v0  ;;  %3144 = vmatprep.subr.bf16.mxu0 %v3592_v0  ;;  %393 = vst.msk [vmem:[#allocation2 + $0x60] sm:$0xff] %vm386_vm0, %v2859_v48  ;;  %v1163_v54 = vld [vmem:[#allocation8 + $0x120] sm:$0xff]  ;;  %v1119_v56 = vld [vmem:[#allocation2 + $0x308] sm:$0xff]  ;;  %817 = vst.msk [vmem:[#allocation2 + $0x350] sm:$0xff] %vm386_vm0, %v2876_v50 }
  0xb5   : > { %1071 = vst.msk [vmem:[#allocation2 + $0x338] sm:$0xff] %vm386_vm0, %v2934_v52  ;;  %2103 = vst.msk [vmem:[#allocation2 + $0x408] sm:$0xff] %vm386_vm0, %v2917_v51  ;;  %v2860_v57 = vld [vmem:[%s3859_s6 + $0x50] sm:$0xff]  ;;  %v2877_v58 = vld [vmem:[%s3859_s6 + $0x120] sm:$0xff]  ;;  %2961 = vmatprep.mubr.msk.f32.mxu1 %vm386_vm0, %v1119_v56  ;;  %v3151_v62 = vpack.c.bf16 %v1164_v55, %v1163_v54 }
  0xb6   : > { %3256 = vmatpush1.bf16.msra.mxu1 %v3145_v38  ;;  %3146 = vmatpush1.bf16.msra.mxu0 %v3145_v38  ;;  %648 = vst.msk [vmem:[#allocation2 + $0x48] sm:$0xff] %vm386_vm0, %v2917_v51  ;;  %v4010_v59 = vld [vmem:[%s3859_s6 + $0x79] sm:$0xff]  ;;  %801 = vst.msk [vmem:[#allocation2 + $0x250] sm:$0xff] %vm386_vm0, %v2860_v57  ;;  %v2935_v61 = vld [vmem:[%s3859_s6 + $0x10a] sm:$0xff] }
  0xb7   : > { %932 = vrot.lane.b32.xlu0 %v2906_v22, %s3593_s23  ;;  %900 = vrot.lane.b32.xlu1 %v3939_v23, %s3593_s23  ;;  %818 = vst.msk [vmem:[#allocation2 + $0x360] sm:$0xff] %vm386_vm0, %v2877_v58  ;;  %v2918_v60 = vld [vmem:[%s3859_s6 + $0x3a] sm:$0xff]  ;;  %1850 = vst.msk [vmem:[#allocation2 + $0x430] sm:$0xff] %vm386_vm0, %v2860_v57  ;;  %v1087_v63 = vld [vmem:[#allocation2 + $0x208] sm:$0xff] }
  0xb8   : > { %3245 = vmatprep.subr.bf16.mxu1 %v3592_v0  ;;  %3147 = vmatprep.subr.bf16.mxu0 %v3592_v0  ;;  %394 = vst.msk [vmem:[#allocation2 + $0x70] sm:$0xff] %vm386_vm0, %v2860_v57  ;;  %1055 = vst.msk [vmem:[#allocation2 + $0x238] sm:$0xff] %vm386_vm0, %v2918_v60  ;;  %v1165_v5 = vld [vmem:[#allocation8 + $0x130] sm:$0xff]  ;;  %v1166_v6 = vld [vmem:[#allocation8 + $0x138] sm:$0xff] }
  0xb9   : > { %1072 = vst.msk [vmem:[#allocation2 + $0x348] sm:$0xff] %vm386_vm0, %v2935_v61  ;;  %2104 = vst.msk [vmem:[#allocation2 + $0x418] sm:$0xff] %vm386_vm0, %v2918_v60  ;;  %v2861_v9 = vld [vmem:[%s3859_s6 + $0x60] sm:$0xff]  ;;  %v2878_v12 = vld [vmem:[%s3859_s6 + $0x128] sm:$0xff]  ;;  %2945 = vmatprep.mubr.msk.f32.mxu0 %vm386_vm0, %v1087_v63  ;;  %v3154_v19 = vpack.c.bf16 %v1166_v6, %v1165_v5 }
  0xba   : > { %3257 = vmatpush1.bf16.msra.mxu1 %v3148_v49  ;;  %3149 = vmatpush1.bf16.msra.mxu0 %v3148_v49  ;;  %649 = vst.msk [vmem:[#allocation2 + $0x58] sm:$0xff] %vm386_vm0, %v2918_v60  ;;  %802 = vst.msk [vmem:[#allocation2 + $0x260] sm:$0xff] %vm386_vm0, %v2861_v9  ;;  %v2919_v13 = vld [vmem:[%s3859_s6 + $0x4a] sm:$0xff]  ;;  %v2910_v14 = vld [vmem:[%s3859_s6 + $0x141] sm:$0xff] }
  0xbb   : > { %934 = vrot.lane.b32.xlu0 %v2907_v29, %s3593_s23  ;;  %902 = vrot.lane.b32.xlu1 %v3956_v33, %s3593_s23  ;;  %1851 = vst.msk [vmem:[#allocation2 + $0x440] sm:$0xff] %vm386_vm0, %v2861_v9  ;;  %395 = vst.msk [vmem:[#allocation2 + $0x80] sm:$0xff] %vm386_vm0, %v2861_v9  ;;  %v4036_v15 = vld [vmem:[%s3859_s6 + $0x81] sm:$0xff]  ;;  %v2936_v16 = vld [vmem:[%s3859_s6 + $0x112] sm:$0xff] }
  0xbc   : > { %3246 = vmatprep.subr.bf16.mxu1 %v3592_v0  ;;  %3150 = vmatprep.subr.bf16.mxu0 %v3592_v0  ;;  %819 = vst.msk [vmem:[#allocation2 + $0x370] sm:$0xff] %vm386_vm0, %v2878_v12  ;;  %1056 = vst.msk [vmem:[#allocation2 + $0x248] sm:$0xff] %vm386_vm0, %v2919_v13  ;;  %v1167_v20 = vld [vmem:[#allocation8 + $0x140] sm:$0xff]  ;;  %v1168_v21 = vld [vmem:[#allocation8 + $0x148] sm:$0xff] }
  0xbd   : > { %2105 = vst.msk [vmem:[#allocation2 + $0x428] sm:$0xff] %vm386_vm0, %v2919_v13  ;;  %650 = vst.msk [vmem:[#allocation2 + $0x68] sm:$0xff] %vm386_vm0, %v2919_v13  ;;  %v2862_v22 = vld [vmem:[%s3859_s6 + $0x68] sm:$0xff]  ;;  %v2879_v24 = vld [vmem:[%s3859_s6 + $0x138] sm:$0xff]  ;;  %v3157_v29 = vpack.c.bf16 %v1168_v21, %v1167_v20 }
  0xbe   : > { %3258 = vmatpush1.bf16.msra.mxu1 %v3151_v62  ;;  %3152 = vmatpush1.bf16.msra.mxu0 %v3151_v62  ;;  %1073 = vst.msk [vmem:[#allocation2 + $0x358] sm:$0xff] %vm386_vm0, %v2936_v16  ;;  %803 = vst.msk [vmem:[#allocation2 + $0x270] sm:$0xff] %vm386_vm0, %v2862_v22  ;;  %v2920_v25 = vld [vmem:[%s3859_s6 + $0x52] sm:$0xff]  ;;  %v2937_v26 = vld [vmem:[%s3859_s6 + $0x122] sm:$0xff] }
  0xbf   : > { %936 = vrot.lane.b32.xlu0 %v2908_v46, %s3593_s23  ;;  %904 = vrot.lane.b32.xlu1 %v3986_v47, %s3593_s23  ;;  %1852 = vst.msk [vmem:[#allocation2 + $0x450] sm:$0xff] %vm386_vm0, %v2862_v22  ;;  %396 = vst.msk [vmem:[#allocation2 + $0x90] sm:$0xff] %vm386_vm0, %v2862_v22  ;;  %v2911_v27 = vld [vmem:[%s3859_s6 + $0x151] sm:$0xff]  ;;  %v2880_v31 = vld [vmem:[%s3859_s6 + $0x140] sm:$0xff] }
  0xc0   : > { %3247 = vmatprep.subr.bf16.mxu1 %v3592_v0  ;;  %3153 = vmatprep.subr.bf16.mxu0 %v3592_v0  ;;  %820 = vst.msk [vmem:[#allocation2 + $0x380] sm:$0xff] %vm386_vm0, %v2879_v24  ;;  %1057 = vst.msk [vmem:[#allocation2 + $0x258] sm:$0xff] %vm386_vm0, %v2920_v25  ;;  %v4064_v28 = vld [vmem:[%s3859_s6 + $0x91] sm:$0xff]  ;;  %v2921_v32 = vld [vmem:[%s3859_s6 + $0x62] sm:$0xff] }
  0xc1   : > { %1074 = vst.msk [vmem:[#allocation2 + $0x368] sm:$0xff] %vm386_vm0, %v2937_v26  ;;  %2106 = vst.msk [vmem:[#allocation2 + $0x438] sm:$0xff] %vm386_vm0, %v2920_v25  ;;  %v2863_v30 = vld [vmem:[%s3859_s6 + $0x78] sm:$0xff]  ;;  %v1169_v35 = vld [vmem:[#allocation8 + $0x150] sm:$0xff] }
  0xc2   : > { %651 = vst.msk [vmem:[#allocation2 + $0x78] sm:$0xff] %vm386_vm0, %v2920_v25  ;;  %3259 = vmatpush1.bf16.msra.mxu1 %v3154_v19  ;;  %3155 = vmatpush1.bf16.msra.mxu0 %v3154_v19  ;;  %v2912_v34 = vld [vmem:[%s3859_s6 + $0x159] sm:$0xff]  ;;  %804 = vst.msk [vmem:[#allocation2 + $0x280] sm:$0xff] %vm386_vm0, %v2863_v30  ;;  %v2938_v37 = vld [vmem:[%s3859_s6 + $0x12a] sm:$0xff] }
  0xc3   : > { %938 = vrot.lane.b32.xlu0 %v2909_v53, %s3593_s23  ;;  %906 = vrot.lane.b32.xlu1 %v4010_v59, %s3593_s23  ;;  %v1170_v36 = vld [vmem:[#allocation8 + $0x158] sm:$0xff]  ;;  %821 = vst.msk [vmem:[#allocation2 + $0x390] sm:$0xff] %vm386_vm0, %v2880_v31  ;;  %1058 = vst.msk [vmem:[#allocation2 + $0x268] sm:$0xff] %vm386_vm0, %v2921_v32  ;;  %v2864_v38 = vld [vmem:[%s3859_s6 + $0x80] sm:$0xff] }
  0xc4   : > { %3248 = vmatprep.subr.bf16.mxu1 %v3592_v0  ;;  %3156 = vmatprep.subr.bf16.mxu0 %v3592_v0  ;;  %1853 = vst.msk [vmem:[#allocation2 + $0x460] sm:$0xff] %vm386_vm0, %v2863_v30  ;;  %2107 = vst.msk [vmem:[#allocation2 + $0x448] sm:$0xff] %vm386_vm0, %v2921_v32  ;;  %v2881_v39 = vld [vmem:[%s3859_s6 + $0x150] sm:$0xff]  ;;  %v4087_v40 = vld [vmem:[%s3859_s6 + $0x99] sm:$0xff]  ;;  %v3160_v43 = vpack.c.bf16 %v1170_v36, %v1169_v35 }
  0xc5   : > { %397 = vst.msk [vmem:[#allocation2 + $0xa0] sm:$0xff] %vm386_vm0, %v2863_v30  ;;  %652 = vst.msk [vmem:[#allocation2 + $0x88] sm:$0xff] %vm386_vm0, %v2921_v32  ;;  %v2922_v41 = vld [vmem:[%s3859_s6 + $0x6a] sm:$0xff]  ;;  %v2939_v42 = vld [vmem:[%s3859_s6 + $0x13a] sm:$0xff] }
  0xc6   : > { %1075 = vst.msk [vmem:[#allocation2 + $0x378] sm:$0xff] %vm386_vm0, %v2938_v37  ;;  %805 = vst.msk [vmem:[#allocation2 + $0x290] sm:$0xff] %vm386_vm0, %v2864_v38  ;;  %3260 = vmatpush1.bf16.msra.mxu1 %v3157_v29  ;;  %3158 = vmatpush1.bf16.msra.mxu0 %v3157_v29  ;;  %v2913_v44 = vld [vmem:[%s3859_s6 + $0x169] sm:$0xff]  ;;  %v1171_v45 = vld [vmem:[#allocation8 + $0x160] sm:$0xff] }
  0xc7   : > { %940 = vrot.lane.b32.xlu0 %v2910_v14, %s3593_s23  ;;  %908 = vrot.lane.b32.xlu1 %v4036_v15, %s3593_s23  ;;  %822 = vst.msk [vmem:[#allocation2 + $0x3a0] sm:$0xff] %vm386_vm0, %v2881_v39  ;;  %1854 = vst.msk [vmem:[#allocation2 + $0x470] sm:$0xff] %vm386_vm0, %v2864_v38  ;;  %v1172_v46 = vld [vmem:[#allocation8 + $0x168] sm:$0xff]  ;;  %v2865_v48 = vld [vmem:[%s3859_s6 + $0x90] sm:$0xff] }
  0xc8   : > { %398 = vst.msk [vmem:[#allocation2 + $0xb0] sm:$0xff] %vm386_vm0, %v2864_v38  ;;  %1059 = vst.msk [vmem:[#allocation2 + $0x278] sm:$0xff] %vm386_vm0, %v2922_v41  ;;  %3249 = vmatprep.subr.bf16.mxu1 %v3592_v0  ;;  %3159 = vmatprep.subr.bf16.mxu0 %v3592_v0  ;;  %v2882_v49 = vld [vmem:[%s3859_s6 + $0x158] sm:$0xff]  ;;  %v4108_v50 = vld [vmem:[%s3859_s6 + $0xa9] sm:$0xff]  ;;  %v3163_v53 = vpack.c.bf16 %v1172_v46, %v1171_v45 }
  0xc9   : > { %1076 = vst.msk [vmem:[#allocation2 + $0x388] sm:$0xff] %vm386_vm0, %v2939_v42  ;;  %2108 = vst.msk [vmem:[#allocation2 + $0x458] sm:$0xff] %vm386_vm0, %v2922_v41  ;;  %v2923_v51 = vld [vmem:[%s3859_s6 + $0x7a] sm:$0xff]  ;;  %v2940_v52 = vld [vmem:[%s3859_s6 + $0x142] sm:$0xff] }
  0xca   : > { %653 = vst.msk [vmem:[#allocation2 + $0x98] sm:$0xff] %vm386_vm0, %v2922_v41  ;;  %806 = vst.msk [vmem:[#allocation2 + $0x2a0] sm:$0xff] %vm386_vm0, %v2865_v48  ;;  %3261 = vmatpush1.bf16.msra.mxu1 %v3160_v43  ;;  %3161 = vmatpush1.bf16.msra.mxu0 %v3160_v43  ;;  %v1173_v54 = vld [vmem:[#allocation8 + $0x170] sm:$0xff]  ;;  %v2866_v55 = vld [vmem:[%s3859_s6 + $0x98] sm:$0xff] }
  0xcb   : > { %942 = vrot.lane.b32.xlu0 %v2911_v27, %s3593_s23  ;;  %910 = vrot.lane.b32.xlu1 %v4064_v28, %s3593_s23  ;;  %823 = vst.msk [vmem:[#allocation2 + $0x3b0] sm:$0xff] %vm386_vm0, %v2882_v49  ;;  %1855 = vst.msk [vmem:[#allocation2 + $0x480] sm:$0xff] %vm386_vm0, %v2865_v48  ;;  %v2883_v56 = vld [vmem:[%s3859_s6 + $0x168] sm:$0xff]  ;;  %v1174_v57 = vld [vmem:[#allocation8 + $0x178] sm:$0xff] }
  0xcc   : > { %399 = vst.msk [vmem:[#allocation2 + $0xc0] sm:$0xff] %vm386_vm0, %v2865_v48  ;;  %1060 = vst.msk [vmem:[#allocation2 + $0x288] sm:$0xff] %vm386_vm0, %v2923_v51  ;;  %3250 = vmatprep.subr.bf16.mxu1 %v3592_v0  ;;  %3162 = vmatprep.subr.bf16.mxu0 %v3592_v0  ;;  %v2924_v58 = vld [vmem:[%s3859_s6 + $0x82] sm:$0xff]  ;;  %v2941_v60 = vld [vmem:[%s3859_s6 + $0x152] sm:$0xff]  ;;  %v3166_v63 = vpack.c.bf16 %v1174_v57, %v1173_v54 }
  0xcd   : > { %1077 = vst.msk [vmem:[#allocation2 + $0x398] sm:$0xff] %vm386_vm0, %v2940_v52  ;;  %2109 = vst.msk [vmem:[#allocation2 + $0x468] sm:$0xff] %vm386_vm0, %v2923_v51  ;;  %v2914_v61 = vld [vmem:[%s3859_s6 + $0x171] sm:$0xff]  ;;  %v2867_v5 = vld [vmem:[%s3859_s6 + $0xa8] sm:$0xff] }
  0xce   : > { %654 = vst.msk [vmem:[#allocation2 + $0xa8] sm:$0xff] %vm386_vm0, %v2923_v51  ;;  %807 = vst.msk [vmem:[#allocation2 + $0x2b0] sm:$0xff] %vm386_vm0, %v2866_v55  ;;  %v4139_v62 = vld [vmem:[%s3859_s6 + $0xb1] sm:$0xff]  ;;  %3262 = vmatpush1.bf16.msra.mxu1 %v3163_v53  ;;  %3164 = vmatpush1.bf16.msra.mxu0 %v3163_v53  ;;  %v2942_v12 = vld [vmem:[%s3859_s6 + $0x15a] sm:$0xff] }
  0xcf   : > { %944 = vrot.lane.b32.xlu0 %v2912_v34, %s3593_s23  ;;  %912 = vrot.lane.b32.xlu1 %v4087_v40, %s3593_s23  ;;  %824 = vst.msk [vmem:[#allocation2 + $0x3c0] sm:$0xff] %vm386_vm0, %v2883_v56  ;;  %1856 = vst.msk [vmem:[#allocation2 + $0x490] sm:$0xff] %vm386_vm0, %v2866_v55  ;;  %v2884_v6 = vld [vmem:[%s3859_s6 + $0x170] sm:$0xff]  ;;  %v4160_v14 = vld [vmem:[%s3859_s6 + $0xc1] sm:$0xff] }
  0xd0   : > { %400 = vst.msk [vmem:[#allocation2 + $0xd0] sm:$0xff] %vm386_vm0, %v2866_v55  ;;  %1061 = vst.msk [vmem:[#allocation2 + $0x298] sm:$0xff] %vm386_vm0, %v2924_v58  ;;  %3251 = vmatprep.subr.bf16.mxu1 %v3592_v0  ;;  %3165 = vmatprep.subr.bf16.mxu0 %v3592_v0  ;;  %v2925_v9 = vld [vmem:[%s3859_s6 + $0x92] sm:$0xff]  ;;  %v2926_v20 = vld [vmem:[%s3859_s6 + $0x9a] sm:$0xff] }
  0xd1   : > { %1078 = vst.msk [vmem:[#allocation2 + $0x3a8] sm:$0xff] %vm386_vm0, %v2941_v60  ;;  %2110 = vst.msk [vmem:[#allocation2 + $0x478] sm:$0xff] %vm386_vm0, %v2924_v58  ;;  %v1010_v13 = vld [vmem:[%s3867_s14 + $0x1] sm:$0xff]  ;;  %v1011_v22 = vld [vmem:[%s3867_s14 + $0x9] sm:$0xff] }
  0xd2   : > { %655 = vst.msk [vmem:[#allocation2 + $0xb8] sm:$0xff] %vm386_vm0, %v2924_v58  ;;  %808 = vst.msk [vmem:[#allocation2 + $0x2c0] sm:$0xff] %vm386_vm0, %v2867_v5  ;;  %v2868_v16 = vld [vmem:[%s3859_s6 + $0xb0] sm:$0xff]  ;;  %3263 = vmatpush1.bf16.msra.mxu1 %v3166_v63  ;;  %3167 = vmatpush1.bf16.msra.mxu0 %v3166_v63  ;;  %v2869_v25 = vld [vmem:[%s3859_s6 + $0xc0] sm:$0xff] }
  0xd3   : > { %946 = vrot.lane.b32.xlu0 %v2913_v44, %s3593_s23  ;;  %914 = vrot.lane.b32.xlu1 %v4108_v50, %s3593_s23  ;;  %825 = vst.msk [vmem:[#allocation2 + $0x3d0] sm:$0xff] %vm386_vm0, %v2884_v6  ;;  %1857 = vst.msk [vmem:[#allocation2 + $0x4a0] sm:$0xff] %vm386_vm0, %v2867_v5  ;;  %v826_v19 = vld [vmem:[%s3867_s14] sm:$0xff]  ;;  %v827_v26 = vld [vmem:[%s3867_s14 + $0x8] sm:$0xff] }
  0xd4   : > { %401 = vst.msk [vmem:[#allocation2 + $0xe0] sm:$0xff] %vm386_vm0, %v2867_v5  ;;  %1062 = vst.msk [vmem:[#allocation2 + $0x2a8] sm:$0xff] %vm386_vm0, %v2925_v9  ;;  %v2943_v21 = vld [vmem:[%s3859_s6 + $0x16a] sm:$0xff]  ;;  %3168 = vmatprep.subr.bf16.mxu1 %v3592_v0  ;;  %3204 = vmatprep.subr.bf16.mxu0 %v3592_v0  ;;  %v2944_v29 = vld [vmem:[%s3859_s6 + $0x172] sm:$0xff] }
  0xd5   : > { %1079 = vst.msk [vmem:[#allocation2 + $0x3b8] sm:$0xff] %vm386_vm0, %v2942_v12  ;;  %2111 = vst.msk [vmem:[#allocation2 + $0x488] sm:$0xff] %vm386_vm0, %v2925_v9  ;;  %v4181_v24 = vld [vmem:[%s3859_s6 + $0xc9] sm:$0xff]  ;;  %v419_v30 = vld [vmem:[%s3859_s6 + $0x1] sm:$0xff] }
  0xd6   : > { %656 = vst.msk [vmem:[#allocation2 + $0xc8] sm:$0xff] %vm386_vm0, %v2925_v9  ;;  %809 = vst.msk [vmem:[#allocation2 + $0x2d0] sm:$0xff] %vm386_vm0, %v2868_v16  ;;  %v2927_v27 = vld [vmem:[%s3859_s6 + $0xaa] sm:$0xff]  ;;  %v2928_v32 = vld [vmem:[%s3859_s6 + $0xb2] sm:$0xff] }
  0xd7   : > { %948 = vrot.lane.b32.xlu0 %v2914_v61, %s3593_s23  ;;  %916 = vrot.lane.b32.xlu1 %v4139_v62, %s3593_s23  ;;  %1858 = vst.msk [vmem:[#allocation2 + $0x4b0] sm:$0xff] %vm386_vm0, %v2868_v16  ;;  %402 = vst.msk [vmem:[#allocation2 + $0xf0] sm:$0xff] %vm386_vm0, %v2868_v16  ;;  %v2870_v31 = vld [vmem:[%s3859_s6 + $0xc8] sm:$0xff]  ;;  %v354_v35 = vld [vmem:[%s3859_s6] sm:$0xff] }
  0xd8   : > { %828 = vst.msk [vmem:[#allocation2 + $0x3e0] sm:$0xff] %vm386_vm0, %v826_v19  ;;  %1063 = vst.msk [vmem:[#allocation2 + $0x2b8] sm:$0xff] %vm386_vm0, %v2926_v20  ;;  %v1082_v34 = vld [vmem:[%s3867_s14 + $0x2] sm:$0xff]  ;;  %v1083_v38 = vld [vmem:[%s3867_s14 + $0xa] sm:$0xff] }
  0xd9   : > { %1080 = vst.msk [vmem:[#allocation2 + $0x3c8] sm:$0xff] %vm386_vm0, %v2943_v21  ;;  %2112 = vst.msk [vmem:[#allocation2 + $0x498] sm:$0xff] %vm386_vm0, %v2926_v20  ;;  %v2929_v36 = vld [vmem:[%s3859_s6 + $0xc2] sm:$0xff]  ;;  %v2930_v41 = vld [vmem:[%s3859_s6 + $0xca] sm:$0xff] }
  0xda   : > { %657 = vst.msk [vmem:[#allocation2 + $0xd8] sm:$0xff] %vm386_vm0, %v2926_v20  ;;  %810 = vst.msk [vmem:[#allocation2 + $0x2e0] sm:$0xff] %vm386_vm0, %v2869_v25  ;;  %v420_v37 = vld [vmem:[%s3859_s6 + $0x9] sm:$0xff]  ;;  %v356_v43 = vld [vmem:[%s3859_s6 + $0x18] sm:$0xff] }
  0xdb   : > { %1014 = vrot.lane.b32.xlu0 %v1010_v13, %s3593_s23  ;;  %918 = vrot.lane.b32.xlu1 %v4160_v14, %s3593_s23  ;;  %1859 = vst.msk [vmem:[#allocation2 + $0x4c0] sm:$0xff] %vm386_vm0, %v2869_v25  ;;  %403 = vst.msk [vmem:[#allocation2 + $0x100] sm:$0xff] %vm386_vm0, %v2869_v25  ;;  %v355_v39 = vld [vmem:[%s3859_s6 + $0x8] sm:$0xff]  ;;  %v357_v44 = vld [vmem:[%s3859_s6 + $0x20] sm:$0xff] }
  0xdc   : > { %829 = vst.msk [vmem:[#allocation2 + $0x3f0] sm:$0xff] %vm386_vm0, %v827_v26  ;;  %1064 = vst.msk [vmem:[#allocation2 + $0x2c8] sm:$0xff] %vm386_vm0, %v2927_v27  ;;  %v612_v42 = vld [vmem:[%s3859_s6 + $0x2] sm:$0xff]  ;;  %v613_v45 = vld [vmem:[%s3859_s6 + $0xa] sm:$0xff] }
  0xdd   : > { %1081 = vst.msk [vmem:[#allocation2 + $0x3d8] sm:$0xff] %vm386_vm0, %v2944_v29  ;;  %2113 = vst.msk [vmem:[#allocation2 + $0x4a8] sm:$0xff] %vm386_vm0, %v2927_v27  ;;  %v358_v46 = vld [vmem:[%s3859_s6 + $0x30] sm:$0xff]  ;;  %v614_v48 = vld [vmem:[%s3859_s6 + $0x1a] sm:$0xff] }
  0xde   : > { %658 = vst.msk [vmem:[#allocation2 + $0xe8] sm:$0xff] %vm386_vm0, %v2927_v27  ;;  %811 = vst.msk [vmem:[#allocation2 + $0x2f0] sm:$0xff] %vm386_vm0, %v2870_v31  ;;  %v615_v49 = vld [vmem:[%s3859_s6 + $0x22] sm:$0xff]  ;;  %v359_v51 = vld [vmem:[%s3859_s6 + $0x38] sm:$0xff] }
  0xdf   : > { %1016 = vrot.lane.b32.xlu0 %v1011_v22, %s3593_s23  ;;  %920 = vrot.lane.b32.xlu1 %v4181_v24, %s3593_s23  ;;  %1065 = vst.msk [vmem:[#allocation2 + $0x2d8] sm:$0xff] %vm386_vm0, %v2928_v32  ;;  %1084 = vst.msk [vmem:[#allocation2 + $0x3e8] sm:$0xff] %vm386_vm0, %v1082_v34  ;;  %v2205_v52 = vld [vmem:[#allocation8 + $0x188] sm:$0xff]  ;;  %v1121_v56 = vld [vmem:[#allocation2 + $0x318] sm:$0xff] }
  0xe0   : > { %1860 = vst.msk [vmem:[#allocation2 + $0x4d0] sm:$0xff] %vm386_vm0, %v2870_v31  ;;  %2114 = vst.msk [vmem:[#allocation2 + $0x4b8] sm:$0xff] %vm386_vm0, %v2928_v32  ;;  %v3025_v57 = vld [vmem:[%s3859_s6 + $0xf0] sm:$0xff]  ;;  %v743_v58 = vld [vmem:[#allocation8 + $0x18] sm:$0xff] }
  0xe1   : > { %404 = vst.msk [vmem:[#allocation2 + $0x110] sm:$0xff] %vm386_vm0, %v2870_v31  ;;  %659 = vst.msk [vmem:[#allocation2 + $0xf8] sm:$0xff] %vm386_vm0, %v2928_v32  ;;  %v3081_v63 = vld [vmem:[%s3859_s6 + $0xf2] sm:$0xff]  ;;  %v1123_v16 = vld [vmem:[#allocation2 + $0x328] sm:$0xff] }
  0xe2   : > { %387 = vst.msk [vmem:[#allocation2] sm:$0xff] %vm386_vm0, %v354_v35  ;;  %1066 = vst.msk [vmem:[#allocation2 + $0x2e8] sm:$0xff] %vm386_vm0, %v2929_v36  ;;  %v1089_v5 = vld [vmem:[#allocation2 + $0x218] sm:$0xff]  ;;  %v2206_v6 = vld [vmem:[#allocation8 + $0x190] sm:$0xff] }
  0xe3   : > { %483 = vrot.lane.b32.xlu0 %v419_v30, %s3593_s23  ;;  %1939 = vrot.lane.b32.xlu1 %v3907_v8, %s3593_s23  ;;  %2115 = vst.msk [vmem:[#allocation2 + $0x4c8] sm:$0xff] %vm386_vm0, %v2929_v36  ;;  %660 = vst.msk [vmem:[#allocation2 + $0x108] sm:$0xff] %vm386_vm0, %v2929_v36  ;;  %v2207_v9 = vld [vmem:[#allocation8 + $0x198] sm:$0xff]  ;;  %v744_v25 = vld [vmem:[#allocation8 + $0x20] sm:$0xff] }
  0xe4   : > { %1085 = vst.msk [vmem:[#allocation2 + $0x3f8] sm:$0xff] %vm386_vm0, %v1083_v38  ;;  %388 = vst.msk [vmem:[#allocation2 + $0x10] sm:$0xff] %vm386_vm0, %v355_v39  ;;  %v3026_v20 = vld [vmem:[%s3859_s6 + $0xf8] sm:$0xff]  ;;  %v3208_v22 = vpack.c.bf16 %v2207_v9, %v2206_v6  ;;  %v745_v26 = vld [vmem:[#allocation8 + $0x28] sm:$0xff] }
  0xe5   : > { %1067 = vst.msk [vmem:[#allocation2 + $0x2f8] sm:$0xff] %vm386_vm0, %v2930_v41  ;;  %644 = vst.msk [vmem:[#allocation2 + $0x8] sm:$0xff] %vm386_vm0, %v612_v42  ;;  %v3082_v21 = vld [vmem:[%s3859_s6 + $0xfa] sm:$0xff]  ;;  %v1091_v30 = vld [vmem:[#allocation2 + $0x228] sm:$0xff]  ;;  %v3175_v35 = vpack.c.bf16 %v745_v26, %v744_v25 }
  0xe6   : > { %2116 = vst.msk [vmem:[#allocation2 + $0x4d8] sm:$0xff] %vm386_vm0, %v2930_v41  ;;  %661 = vst.msk [vmem:[#allocation2 + $0x118] sm:$0xff] %vm386_vm0, %v2930_v41  ;;  %v3027_v31 = vld [vmem:[%s3859_s6 + $0x108] sm:$0xff]  ;;  %v1125_v32 = vld [vmem:[#allocation2 + $0x338] sm:$0xff] }
  0xe7   : > { %485 = vrot.lane.b32.xlu0 %v420_v37, %s3593_s23  ;;  %1941 = vrot.lane.b32.xlu1 %v3917_v11, %s3593_s23  ;;  %389 = vst.msk [vmem:[#allocation2 + $0x20] sm:$0xff] %vm386_vm0, %v356_v43  ;;  %390 = vst.msk [vmem:[#allocation2 + $0x30] sm:$0xff] %vm386_vm0, %v357_v44  ;;  %v2208_v34 = vld [vmem:[#allocation8 + $0x1a0] sm:$0xff]  ;;  %v2209_v36 = vld [vmem:[#allocation8 + $0x1a8] sm:$0xff] }
  0xe8   : > { %645 = vst.msk [vmem:[#allocation2 + $0x18] sm:$0xff] %vm386_vm0, %v613_v45  ;;  %391 = vst.msk [vmem:[#allocation2 + $0x40] sm:$0xff] %vm386_vm0, %v358_v46  ;;  %v3083_v37 = vld [vmem:[%s3859_s6 + $0x10a] sm:$0xff]  ;;  %v1093_v43 = vld [vmem:[#allocation2 + $0x238] sm:$0xff]  ;;  %v3211_v45 = vpack.c.bf16 %v2209_v36, %v2208_v34 }
  0xe9   : > { %646 = vst.msk [vmem:[#allocation2 + $0x28] sm:$0xff] %vm386_vm0, %v614_v48  ;;  %647 = vst.msk [vmem:[#allocation2 + $0x38] sm:$0xff] %vm386_vm0, %v615_v49  ;;  %v3028_v42 = vld [vmem:[%s3859_s6 + $0x110] sm:$0xff]  ;;  %v1127_v44 = vld [vmem:[#allocation2 + $0x348] sm:$0xff] }
  0xea   : > { %392 = vst.msk [vmem:[#allocation2 + $0x50] sm:$0xff] %vm386_vm0, %v359_v51  ;;  %1863 = vst.msk [vmem:[#allocation2 + $0x500] sm:$0xff] %vm386_vm0, %v3025_v57  ;;  %v747_v46 = vld [vmem:[#allocation8 + $0x38] sm:$0xff]  ;;  %v2210_v51 = vld [vmem:[#allocation8 + $0x1b0] sm:$0xff] }
  0xeb   : > { %487 = vrot.lane.b32.xlu0 %v3894_v3, %s3593_s23  ;;  %1943 = vrot.lane.b32.xlu1 %v3929_v18, %s3593_s23  ;;  %407 = vst.msk [vmem:[#allocation2 + $0x140] sm:$0xff] %vm386_vm0, %v3025_v57  ;;  %2119 = vst.msk [vmem:[#allocation2 + $0x508] sm:$0xff] %vm386_vm0, %v3081_v63  ;;  %v3084_v48 = vld [vmem:[%s3859_s6 + $0x112] sm:$0xff]  ;;  %v1131_v57 = vld [vmem:[#allocation2 + $0x368] sm:$0xff] }
  0xec   : > { %664 = vst.msk [vmem:[#allocation2 + $0x148] sm:$0xff] %vm386_vm0, %v3081_v63  ;;  %1864 = vst.msk [vmem:[#allocation2 + $0x510] sm:$0xff] %vm386_vm0, %v3026_v20  ;;  %v2214_v26 = vld [vmem:[#allocation8 + $0x1d0] sm:$0xff]  ;;  %v3032_v34 = vld [vmem:[%s3859_s6 + $0x140] sm:$0xff] }
  0xed   : > { %408 = vst.msk [vmem:[#allocation2 + $0x150] sm:$0xff] %vm386_vm0, %v3026_v20  ;;  %2120 = vst.msk [vmem:[#allocation2 + $0x518] sm:$0xff] %vm386_vm0, %v3082_v21  ;;  %v1099_v20 = vld [vmem:[#allocation2 + $0x268] sm:$0xff]  ;;  %v1101_v36 = vld [vmem:[#allocation2 + $0x278] sm:$0xff] }
  0xee   : > { %665 = vst.msk [vmem:[#allocation2 + $0x158] sm:$0xff] %vm386_vm0, %v3082_v21  ;;  %1865 = vst.msk [vmem:[#allocation2 + $0x520] sm:$0xff] %vm386_vm0, %v3027_v31  ;;  %v4412_v21 = vld [vmem:[%s3859_s6 + $0x121] sm:$0xff] }
  0xef   : > { %489 = vrot.lane.b32.xlu0 %v3897_v4, %s3593_s23  ;;  %1945 = vrot.lane.b32.xlu1 %v3939_v23, %s3593_s23  ;;  %409 = vst.msk [vmem:[#allocation2 + $0x160] sm:$0xff] %vm386_vm0, %v3027_v31  ;;  %2121 = vst.msk [vmem:[#allocation2 + $0x528] sm:$0xff] %vm386_vm0, %v3083_v37 }
  0xf0   : > { %666 = vst.msk [vmem:[#allocation2 + $0x168] sm:$0xff] %vm386_vm0, %v3083_v37  ;;  %1866 = vst.msk [vmem:[#allocation2 + $0x530] sm:$0xff] %vm386_vm0, %v3028_v42  ;;  %v1135_v37 = vld [vmem:[#allocation2 + $0x388] sm:$0xff] }
  0xf1   : > { %410 = vst.msk [vmem:[#allocation2 + $0x170] sm:$0xff] %vm386_vm0, %v3028_v42  ;;  %2122 = vst.msk [vmem:[#allocation2 + $0x538] sm:$0xff] %vm386_vm0, %v3084_v48 }
  0xf2   : > { %667 = vst.msk [vmem:[#allocation2 + $0x178] sm:$0xff] %vm386_vm0, %v3084_v48  ;;  %1870 = vst.msk [vmem:[#allocation2 + $0x570] sm:$0xff] %vm386_vm0, %v3032_v34 }
  0xf3   : > { %491 = vrot.lane.b32.xlu0 %v3907_v8, %s3593_s23  ;;  %1947 = vrot.lane.b32.xlu1 %v3956_v33, %s3593_s23  ;;  %v3023_v8 = vld [vmem:[%s3859_s6 + $0xd8] sm:$0xff]  ;;  %414 = vst.msk [vmem:[#allocation2 + $0x1b0] sm:$0xff] %vm386_vm0, %v3032_v34  ;;  %v1875_v34 = vld [vmem:[%s3867_s14] sm:$0xff] }
  0xf4   : > { %1861 = vst.msk [vmem:[#allocation2 + $0x4e0] sm:$0xff] %vm386_vm0, %v3023_v8  ;;  %405 = vst.msk [vmem:[#allocation2 + $0x120] sm:$0xff] %vm386_vm0, %v3023_v8 }
  0xf5   : > { %1879 = vst.msk [vmem:[#allocation2 + $0x5c0] sm:$0xff] %vm386_vm0, %v1875_v34  ;;  %v2140_v34 = vld [vmem:[#allocation2 + $0x408] sm:$0xff] }
  0xf7   : > { %493 = vrot.lane.b32.xlu0 %v3917_v11, %s3593_s23  ;;  %1949 = vrot.lane.b32.xlu1 %v3986_v47, %s3593_s23  ;;  %v3079_v11 = vld [vmem:[%s3859_s6 + $0xda] sm:$0xff] }
  0xf8   : > { %2117 = vst.msk [vmem:[#allocation2 + $0x4e8] sm:$0xff] %vm386_vm0, %v3079_v11  ;;  %662 = vst.msk [vmem:[#allocation2 + $0x128] sm:$0xff] %vm386_vm0, %v3079_v11  ;;  %v2211_v11 = vld [vmem:[#allocation8 + $0x1b8] sm:$0xff] }
  0xfb   : > { %495 = vrot.lane.b32.xlu0 %v3929_v18, %s3593_s23  ;;  %1951 = vrot.lane.b32.xlu1 %v4010_v59, %s3593_s23  ;;  %v740_v18 = vld [vmem:[#allocation8] sm:$0xff] }
  0xff   : > { %497 = vrot.lane.b32.xlu0 %v3939_v23, %s3593_s23  ;;  %1953 = vrot.lane.b32.xlu1 %v4036_v15, %s3593_s23  ;;  %v741_v23 = vld [vmem:[#allocation8 + $0x8] sm:$0xff] }
 0x103   : > { %499 = vrot.lane.b32.xlu0 %v3956_v33, %s3593_s23  ;;  %1955 = vrot.lane.b32.xlu1 %v4064_v28, %s3593_s23 }
 0x107   : > { %501 = vrot.lane.b32.xlu0 %v3986_v47, %s3593_s23  ;;  %1957 = vrot.lane.b32.xlu1 %v4087_v40, %s3593_s23 }
 0x10b   : > { %503 = vrot.lane.b32.xlu0 %v4010_v59, %s3593_s23  ;;  %1959 = vrot.lane.b32.xlu1 %v4108_v50, %s3593_s23  ;;  %v3024_v59 = vld [vmem:[%s3859_s6 + $0xe0] sm:$0xff] }
 0x10c   : > { %1862 = vst.msk [vmem:[#allocation2 + $0x4f0] sm:$0xff] %vm386_vm0, %v3024_v59  ;;  %406 = vst.msk [vmem:[#allocation2 + $0x130] sm:$0xff] %vm386_vm0, %v3024_v59 }
 0x10f   : > { %505 = vrot.lane.b32.xlu0 %v4036_v15, %s3593_s23  ;;  %1961 = vrot.lane.b32.xlu1 %v4139_v62, %s3593_s23  ;;  %v3169_v15 = vpack.c.bf16 %v741_v23, %v740_v18  ;;  %v1095_v18 = vld [vmem:[#allocation2 + $0x248] sm:$0xff]  ;;  %v1129_v23 = vld [vmem:[#allocation2 + $0x358] sm:$0xff] }
 0x113   : > { %507 = vrot.lane.b32.xlu0 %v4064_v28, %s3593_s23  ;;  %1963 = vrot.lane.b32.xlu1 %v4160_v14, %s3593_s23  ;;  %v3080_v28 = vld [vmem:[%s3859_s6 + $0xe2] sm:$0xff] }
 0x114   : > { %2118 = vst.msk [vmem:[#allocation2 + $0x4f8] sm:$0xff] %vm386_vm0, %v3080_v28  ;;  %663 = vst.msk [vmem:[#allocation2 + $0x138] sm:$0xff] %vm386_vm0, %v3080_v28  ;;  %v748_v28 = vld [vmem:[#allocation8 + $0x40] sm:$0xff] }
 0x115   : > { %v923_v3 = vpop.permute.xlu0 %922  ;;  %v925_v4 = vpop.permute.xlu1 %924 }
 0x116   : > { %996 = vst.msk [vmem:[#allocation2 + $0x300] sm:$0xff] %vm579_vm1, %v923_v3  ;;  %997 = vst.msk [vmem:[#allocation2 + $0x310] sm:$0xff] %vm579_vm1, %v925_v4 }
 0x117   : > { %509 = vrot.lane.b32.xlu0 %v4087_v40, %s3593_s23  ;;  %1965 = vrot.lane.b32.xlu1 %v4181_v24, %s3593_s23  ;;  %v2204_v40 = vld [vmem:[#allocation8 + $0x180] sm:$0xff] }
 0x118   : > { %v3205_v61 = vpack.c.bf16 %v2205_v52, %v2204_v40 }
 0x119   : > { %v891_v33 = vpop.permute.xlu0 %890  ;;  %v893_v47 = vpop.permute.xlu1 %892 }
 0x11a   : > { %980 = vst.msk [vmem:[#allocation2 + $0x200] sm:$0xff] %vm579_vm1, %v891_v33  ;;  %981 = vst.msk [vmem:[#allocation2 + $0x210] sm:$0xff] %vm579_vm1, %v893_v47  ;;  %v3085_v33 = vld [vmem:[%s3859_s6 + $0x122] sm:$0xff] }
 0x11b   : > { %511 = vrot.lane.b32.xlu0 %v4108_v50, %s3593_s23  ;;  %1967 = vrot.lane.b32.xlu1 %v3884_v1, %s3593_s23  ;;  %v742_v50 = vld [vmem:[#allocation8 + $0x10] sm:$0xff]  ;;  %v3363_v47 = vld [vmem:[%s3859_s6 + $0xe1] sm:$0xff]  ;;  %2123 = vst.msk [vmem:[#allocation2 + $0x548] sm:$0xff] %vm386_vm0, %v3085_v33  ;;  %668 = vst.msk [vmem:[#allocation2 + $0x188] sm:$0xff] %vm386_vm0, %v3085_v33 }
 0x11c   : > { %v3172_v19 = vpack.c.bf16 %v743_v58, %v742_v50  ;;  %v2213_v50 = vld [vmem:[#allocation8 + $0x1c8] sm:$0xff] }
 0x11d   : > { %v927_v53 = vpop.permute.xlu0 %926  ;;  %v1118_v54 = vld [vmem:[#allocation2 + $0x300] sm:$0xff]  ;;  %v895_v55 = vpop.permute.xlu1 %894  ;;  %v1120_v60 = vld [vmem:[#allocation2 + $0x310] sm:$0xff] }
 0x11e   : > { %998 = vst.msk [vmem:[#allocation2 + $0x320] sm:$0xff] %vm579_vm1, %v927_v53  ;;  %1416 = vmatmul.mubr.f32.vlgmr.msra.gmra.mrb[0].mxu1 %v1118_v54  ;;  %982 = vst.msk [vmem:[#allocation2 + $0x220] sm:$0xff] %vm579_vm1, %v895_v55  ;;  %v749_v53 = vld [vmem:[#allocation8 + $0x48] sm:$0xff]  ;;  %v1097_v55 = vld [vmem:[#allocation2 + $0x258] sm:$0xff] }
 0x11f   : > { %513 = vrot.lane.b32.xlu0 %v4139_v62, %s3593_s23  ;;  %3170 = vmatpush1.bf16.msra.mxu1 %v3169_v15  ;;  %v3214_v15 = vpack.c.bf16 %v2211_v11, %v2210_v51  ;;  %v3030_v54 = vld [vmem:[%s3859_s6 + $0x128] sm:$0xff]  ;;  %v3181_v63 = vpack.c.bf16 %v749_v53, %v748_v28  ;;  %v1137_v11 = vld [vmem:[#allocation2 + $0x398] sm:$0xff] }
 0x120   : > { %2962 = vmatprep.mubr.msk.f32.mxu1 %vm386_vm0, %v1121_v56  ;;  %1969 = vrot.lane.b32.xlu1 %v3887_v2, %s3593_s23  ;;  %v2212_v56 = vld [vmem:[#allocation8 + $0x1c0] sm:$0xff]  ;;  %1868 = vst.msk [vmem:[#allocation2 + $0x550] sm:$0xff] %vm386_vm0, %v3030_v54  ;;  %412 = vst.msk [vmem:[#allocation2 + $0x190] sm:$0xff] %vm386_vm0, %v3030_v54  ;;  %v3086_v58 = vld [vmem:[%s3859_s6 + $0x12a] sm:$0xff] }
 0x121   : > { %v929_v12 = vpop.permute.xlu0 %928  ;;  %v1086_v62 = vld [vmem:[#allocation2 + $0x200] sm:$0xff]  ;;  %v897_v13 = vpop.permute.xlu1 %896  ;;  %3171 = vmatprep.subr.bf16.mxu1 %v3592_v0  ;;  %v1088_v2 = vld [vmem:[#allocation2 + $0x210] sm:$0xff]  ;;  %2124 = vst.msk [vmem:[#allocation2 + $0x558] sm:$0xff] %vm386_vm0, %v3086_v58  ;;  %669 = vst.msk [vmem:[#allocation2 + $0x198] sm:$0xff] %vm386_vm0, %v3086_v58 }
 0x122   : > { %999 = vst.msk [vmem:[#allocation2 + $0x330] sm:$0xff] %vm579_vm1, %v929_v12  ;;  %1336 = vmatmul.mubr.f32.vlgmr.msra.gmra.mrb[0].mxu0 %v1086_v62  ;;  %1421 = vmatmul.mubr.f32.gmra.mrb[2].mxu1 %v1120_v60  ;;  %983 = vst.msk [vmem:[#allocation2 + $0x230] sm:$0xff] %vm579_vm1, %v897_v13  ;;  %v4394_v60 = vld [vmem:[%s3859_s6 + $0x111] sm:$0xff]  ;;  %v3217_v13 = vpack.c.bf16 %v2213_v50, %v2212_v56  ;;  %v2217_v51 = vld [vmem:[#allocation8 + $0x1e8] sm:$0xff] }
 0x123   : > { %3206 = vmatpush1.bf16.msra.mxu0 %v3205_v61  ;;  %515 = vrot.lane.b32.xlu0 %v4160_v14, %s3593_s23  ;;  %v3031_v62 = vld [vmem:[%s3859_s6 + $0x138] sm:$0xff]  ;;  %v1139_v53 = vld [vmem:[#allocation2 + $0x3a8] sm:$0xff] }
 0x124   : > { %2946 = vmatprep.mubr.msk.f32.mxu0 %vm386_vm0, %v1089_v5  ;;  %2963 = vmatprep.mubr.msk.f32.mxu1 %vm386_vm0, %v1123_v16  ;;  %v3365_v5 = vld [vmem:[%s3859_s6 + $0xf1] sm:$0xff]  ;;  %1869 = vst.msk [vmem:[#allocation2 + $0x560] sm:$0xff] %vm386_vm0, %v3031_v62  ;;  %413 = vst.msk [vmem:[#allocation2 + $0x1a0] sm:$0xff] %vm386_vm0, %v3031_v62  ;;  %v3090_v28 = vld [vmem:[%s3859_s6 + $0x15a] sm:$0xff] }
 0x125   : > { %v931_v27 = vpop.permute.xlu0 %930  ;;  %v1122_v29 = vld [vmem:[#allocation2 + $0x320] sm:$0xff]  ;;  %3173 = vmatpush1.bf16.msra.mxu1 %v3172_v19  ;;  %1971 = vrot.lane.b32.xlu1 %v3904_v7, %s3593_s23  ;;  %v899_v14 = vpop.permute.xlu1 %898  ;;  %v750_v16 = vld [vmem:[#allocation8 + $0x50] sm:$0xff]  ;;  %v751_v19 = vld [vmem:[#allocation8 + $0x58] sm:$0xff]  ;;  %2128 = vst.msk [vmem:[#allocation2 + $0x598] sm:$0xff] %vm386_vm0, %v3090_v28 }
 0x126   : > { %1000 = vst.msk [vmem:[#allocation2 + $0x340] sm:$0xff] %vm579_vm1, %v931_v27  ;;  %1341 = vmatmul.mubr.f32.gmra.mrb[2].mxu0 %v1088_v2  ;;  %1426 = vmatmul.mubr.f32.gmra.mrb[4].mxu1 %v1122_v29  ;;  %984 = vst.msk [vmem:[#allocation2 + $0x240] sm:$0xff] %vm579_vm1, %v899_v14  ;;  %v1090_v7 = vld [vmem:[#allocation2 + $0x220] sm:$0xff]  ;;  %v2219_v54 = vld [vmem:[#allocation8 + $0x1f8] sm:$0xff] }
 0x127   : > { %3207 = vmatprep.subr.bf16.mxu0 %v3592_v0  ;;  %517 = vrot.lane.b32.xlu0 %v4181_v24, %s3593_s23  ;;  %v746_v24 = vld [vmem:[#allocation8 + $0x30] sm:$0xff]  ;;  %v3087_v2 = vld [vmem:[%s3859_s6 + $0x13a] sm:$0xff]  ;;  %673 = vst.msk [vmem:[#allocation2 + $0x1d8] sm:$0xff] %vm386_vm0, %v3090_v28  ;;  %v3035_v56 = vld [vmem:[%s3859_s6 + $0x168] sm:$0xff] }
 0x128   : > { %3209 = vmatpush1.bf16.msra.mxu0 %v3208_v22  ;;  %2947 = vmatprep.mubr.msk.f32.mxu0 %vm386_vm0, %v1091_v30  ;;  %v3178_v4 = vpack.c.bf16 %v747_v46, %v746_v24  ;;  %v1133_v22 = vld [vmem:[#allocation2 + $0x378] sm:$0xff]  ;;  %2125 = vst.msk [vmem:[#allocation2 + $0x568] sm:$0xff] %vm386_vm0, %v3087_v2  ;;  %670 = vst.msk [vmem:[#allocation2 + $0x1a8] sm:$0xff] %vm386_vm0, %v3087_v2  ;;  %v3184_v30 = vpack.c.bf16 %v751_v19, %v750_v16  ;;  %v1107_v62 = vld [vmem:[#allocation2 + $0x2a8] sm:$0xff] }
 0x129   : > { %v933_v38 = vpop.permute.xlu0 %932  ;;  %2964 = vmatprep.mubr.msk.f32.mxu1 %vm386_vm0, %v1125_v32  ;;  %v1124_v39 = vld [vmem:[#allocation2 + $0x330] sm:$0xff]  ;;  %3174 = vmatprep.subr.bf16.mxu1 %v3592_v0  ;;  %v901_v41 = vpop.permute.xlu1 %900  ;;  %v3367_v27 = vld [vmem:[%s3859_s6 + $0xf9] sm:$0xff]  ;;  %1873 = vst.msk [vmem:[#allocation2 + $0x5a0] sm:$0xff] %vm386_vm0, %v3035_v56  ;;  %417 = vst.msk [vmem:[#allocation2 + $0x1e0] sm:$0xff] %vm386_vm0, %v3035_v56 }
 0x12a   : > { %1001 = vst.msk [vmem:[#allocation2 + $0x350] sm:$0xff] %vm579_vm1, %v933_v38  ;;  %1346 = vmatmul.mubr.f32.gmra.mrb[4].mxu0 %v1090_v7  ;;  %1431 = vmatmul.mubr.f32.gmra.mrb[6].mxu1 %v1124_v39  ;;  %985 = vst.msk [vmem:[#allocation2 + $0x250] sm:$0xff] %vm579_vm1, %v901_v41  ;;  %v1092_v49 = vld [vmem:[#allocation2 + $0x230] sm:$0xff]  ;;  %v2215_v32 = vld [vmem:[#allocation8 + $0x1d8] sm:$0xff] }
 0x12b   : > { %1973 = vrot.lane.b32.xlu1 %v3914_v10, %s3593_s23  ;;  %3176 = vmatpush1.bf16.msra.mxu1 %v3175_v35  ;;  %v752_v7 = vld [vmem:[#allocation8 + $0x60] sm:$0xff]  ;;  %v3220_v38 = vpack.c.bf16 %v2215_v32, %v2214_v26  ;;  %v753_v39 = vld [vmem:[#allocation8 + $0x68] sm:$0xff]  ;;  %v3036_v16 = vld [vmem:[%s3859_s6 + $0x170] sm:$0xff] }
 0x12c   : > { %519 = vrot.lane.b32.xlu0 %v3884_v1, %s3593_s23  ;;  %3210 = vmatprep.subr.bf16.mxu0 %v3592_v0  ;;  %v3029_v1 = vld [vmem:[%s3859_s6 + $0x120] sm:$0xff]  ;;  %v3368_v41 = vld [vmem:[%s3859_s6 + $0x129] sm:$0xff]  ;;  %v3187_v48 = vpack.c.bf16 %v753_v39, %v752_v7  ;;  %v3372_v19 = vld [vmem:[%s3859_s6 + $0x151] sm:$0xff]  ;;  %1874 = vst.msk [vmem:[#allocation2 + $0x5b0] sm:$0xff] %vm386_vm0, %v3036_v16 }
 0x12d   : > { %v935_v3 = vpop.permute.xlu0 %934  ;;  %2948 = vmatprep.mubr.msk.f32.mxu0 %vm386_vm0, %v1093_v43  ;;  %2965 = vmatprep.mubr.msk.f32.mxu1 %vm386_vm0, %v1127_v44  ;;  %v1126_v10 = vld [vmem:[#allocation2 + $0x340] sm:$0xff]  ;;  %v903_v8 = vpop.permute.xlu1 %902  ;;  %1867 = vst.msk [vmem:[#allocation2 + $0x540] sm:$0xff] %vm386_vm0, %v3029_v1  ;;  %411 = vst.msk [vmem:[#allocation2 + $0x180] sm:$0xff] %vm386_vm0, %v3029_v1  ;;  %v3033_v44 = vld [vmem:[%s3859_s6 + $0x150] sm:$0xff] }
 0x12e   : > { %1002 = vst.msk [vmem:[#allocation2 + $0x360] sm:$0xff] %vm579_vm1, %v935_v3  ;;  %3212 = vmatpush1.bf16.msra.mxu0 %v3211_v45  ;;  %1436 = vmatmul.mubr.f32.gmra.mrb[8].mxu1 %v1126_v10  ;;  %986 = vst.msk [vmem:[#allocation2 + $0x260] sm:$0xff] %vm579_vm1, %v903_v8  ;;  %v1094_v59 = vld [vmem:[#allocation2 + $0x240] sm:$0xff]  ;;  %v3369_v45 = vld [vmem:[%s3859_s6 + $0x109] sm:$0xff] }
 0x12f   : > { %1351 = vmatmul.mubr.f32.gmra.mrb[6].mxu0 %v1092_v49  ;;  %1975 = vrot.lane.b32.xlu1 %v3926_v17, %s3593_s23  ;;  %v3088_v35 = vld [vmem:[%s3859_s6 + $0x142] sm:$0xff]  ;;  %1871 = vst.msk [vmem:[#allocation2 + $0x580] sm:$0xff] %vm386_vm0, %v3033_v44  ;;  %415 = vst.msk [vmem:[#allocation2 + $0x1c0] sm:$0xff] %vm386_vm0, %v3033_v44  ;;  %v3089_v3 = vld [vmem:[%s3859_s6 + $0x152] sm:$0xff] }
 0x130   : > { %3177 = vmatprep.subr.bf16.mxu1 %v3592_v0  ;;  %521 = vrot.lane.b32.xlu0 %v3363_v47, %s3593_s23  ;;  %2126 = vst.msk [vmem:[#allocation2 + $0x578] sm:$0xff] %vm386_vm0, %v3088_v35  ;;  %671 = vst.msk [vmem:[#allocation2 + $0x1b8] sm:$0xff] %vm386_vm0, %v3088_v35  ;;  %v2216_v49 = vld [vmem:[#allocation8 + $0x1e0] sm:$0xff]  ;;  %v1103_v10 = vld [vmem:[#allocation2 + $0x288] sm:$0xff] }
 0x131   : > { %3179 = vmatpush1.bf16.msra.mxu1 %v3178_v4  ;;  %v937_v40 = vpop.permute.xlu0 %936  ;;  %2949 = vmatprep.mubr.msk.f32.mxu0 %vm386_vm0, %v1095_v18  ;;  %v1128_v17 = vld [vmem:[#allocation2 + $0x350] sm:$0xff]  ;;  %v905_v52 = vpop.permute.xlu1 %904  ;;  %2127 = vst.msk [vmem:[#allocation2 + $0x588] sm:$0xff] %vm386_vm0, %v3089_v3  ;;  %672 = vst.msk [vmem:[#allocation2 + $0x1c8] sm:$0xff] %vm386_vm0, %v3089_v3  ;;  %v3370_v4 = vld [vmem:[%s3859_s6 + $0x139] sm:$0xff]  ;;  %v3223_v47 = vpack.c.bf16 %v2217_v51, %v2216_v49 }
 0x132   : > { %1003 = vst.msk [vmem:[#allocation2 + $0x370] sm:$0xff] %vm579_vm1, %v937_v40  ;;  %2966 = vmatprep.mubr.msk.f32.mxu1 %vm386_vm0, %v1129_v23  ;;  %3213 = vmatprep.subr.bf16.mxu0 %v3592_v0  ;;  %987 = vst.msk [vmem:[#allocation2 + $0x270] sm:$0xff] %vm579_vm1, %v905_v52  ;;  %v1096_v61 = vld [vmem:[#allocation2 + $0x250] sm:$0xff]  ;;  %v3034_v18 = vld [vmem:[%s3859_s6 + $0x158] sm:$0xff] }
 0x133   : > { %1356 = vmatmul.mubr.f32.gmra.mrb[8].mxu0 %v1094_v59  ;;  %1441 = vmatmul.mubr.f32.gmra.mrb[10].mxu1 %v1128_v17  ;;  %1872 = vst.msk [vmem:[#allocation2 + $0x590] sm:$0xff] %vm386_vm0, %v3034_v18  ;;  %416 = vst.msk [vmem:[#allocation2 + $0x1d0] sm:$0xff] %vm386_vm0, %v3034_v18  ;;  %v754_v59 = vld [vmem:[#allocation8 + $0x70] sm:$0xff]  ;;  %v1105_v40 = vld [vmem:[#allocation2 + $0x298] sm:$0xff] }
 0x134   : > { %3215 = vmatpush1.bf16.msra.mxu0 %v3214_v15  ;;  %1977 = vrot.lane.b32.xlu1 %v4394_v60, %s3593_s23  ;;  %v755_v15 = vld [vmem:[#allocation8 + $0x78] sm:$0xff]  ;;  %v2218_v17 = vld [vmem:[#allocation8 + $0x1f0] sm:$0xff]  ;;  %418 = vst.msk [vmem:[#allocation2 + $0x1f0] sm:$0xff] %vm386_vm0, %v3036_v16  ;;  %v2221_v26 = vld [vmem:[#allocation8 + $0x208] sm:$0xff] }
 0x135   : > { %523 = vrot.lane.b32.xlu0 %v3365_v5, %s3593_s23  ;;  %v939_v6 = vpop.permute.xlu0 %938  ;;  %2950 = vmatprep.mubr.msk.f32.mxu0 %vm386_vm0, %v1097_v55  ;;  %v1130_v9 = vld [vmem:[#allocation2 + $0x360] sm:$0xff]  ;;  %v907_v12 = vpop.permute.xlu1 %906  ;;  %v3226_v5 = vpack.c.bf16 %v2219_v54, %v2218_v17  ;;  %v1109_v7 = vld [vmem:[#allocation2 + $0x2b8] sm:$0xff]  ;;  %v1143_v35 = vld [vmem:[#allocation2 + $0x3c8] sm:$0xff] }
 0x136   : > { %1004 = vst.msk [vmem:[#allocation2 + $0x380] sm:$0xff] %vm579_vm1, %v939_v6  ;;  %2967 = vmatprep.mubr.msk.f32.mxu1 %vm386_vm0, %v1131_v57  ;;  %3180 = vmatprep.subr.bf16.mxu1 %v3592_v0  ;;  %988 = vst.msk [vmem:[#allocation2 + $0x280] sm:$0xff] %vm579_vm1, %v907_v12  ;;  %v1098_v25 = vld [vmem:[#allocation2 + $0x260] sm:$0xff]  ;;  %v1876_v49 = vld [vmem:[%s3867_s14 + $0x8] sm:$0xff] }
 0x137   : > { %1361 = vmatmul.mubr.f32.gmra.mrb[10].mxu0 %v1096_v61  ;;  %1446 = vmatmul.mubr.f32.gmra.mrb[12].mxu1 %v1130_v9  ;;  %v3371_v57 = vld [vmem:[%s3859_s6 + $0x141] sm:$0xff]  ;;  %v3091_v61 = vld [vmem:[%s3859_s6 + $0x16a] sm:$0xff]  ;;  %1880 = vst.msk [vmem:[#allocation2 + $0x5d0] sm:$0xff] %vm386_vm0, %v1876_v49  ;;  %v1145_v3 = vld [vmem:[#allocation2 + $0x3d8] sm:$0xff] }
 0x138   : > { %3182 = vmatpush1.bf16.msra.mxu1 %v3181_v63  ;;  %1979 = vrot.lane.b32.xlu1 %v4412_v21, %s3593_s23  ;;  %v444_v63 = vld [vmem:[%s3859_s6 + $0x129] sm:$0xff]  ;;  %v756_v6 = vld [vmem:[#allocation8 + $0x80] sm:$0xff]  ;;  %2129 = vst.msk [vmem:[#allocation2 + $0x5a8] sm:$0xff] %vm386_vm0, %v3091_v61  ;;  %674 = vst.msk [vmem:[#allocation2 + $0x1e8] sm:$0xff] %vm386_vm0, %v3091_v61 }
 0x139   : > { %3216 = vmatprep.subr.bf16.mxu0 %v3592_v0  ;;  %525 = vrot.lane.b32.xlu0 %v3367_v27, %s3593_s23  ;;  %v941_v29 = vpop.permute.xlu0 %940  ;;  %v1132_v14 = vld [vmem:[#allocation2 + $0x370] sm:$0xff]  ;;  %v909_v31 = vpop.permute.xlu1 %908  ;;  %v757_v9 = vld [vmem:[#allocation8 + $0x88] sm:$0xff]  ;;  %v1113_v28 = vld [vmem:[#allocation2 + $0x2d8] sm:$0xff] }
 0x13a   : > { %3218 = vmatpush1.bf16.msra.mxu0 %v3217_v13  ;;  %1005 = vst.msk [vmem:[#allocation2 + $0x390] sm:$0xff] %vm579_vm1, %v941_v29  ;;  %2951 = vmatprep.mubr.msk.f32.mxu0 %vm386_vm0, %v1099_v20  ;;  %989 = vst.msk [vmem:[#allocation2 + $0x290] sm:$0xff] %vm579_vm1, %v909_v31  ;;  %v1100_v46 = vld [vmem:[#allocation2 + $0x270] sm:$0xff]  ;;  %v1141_v20 = vld [vmem:[#allocation2 + $0x3b8] sm:$0xff] }
 0x13b   : > { %2968 = vmatprep.mubr.msk.f32.mxu1 %vm386_vm0, %v1133_v22  ;;  %1366 = vmatmul.mubr.f32.gmra.mrb[12].mxu0 %v1098_v25  ;;  %v3193_v25 = vpack.c.bf16 %v757_v9, %v756_v6  ;;  %v3092_v27 = vld [vmem:[%s3859_s6 + $0x172] sm:$0xff]  ;;  %v1111_v51 = vld [vmem:[#allocation2 + $0x2c8] sm:$0xff] }
 0x13c   : > { %1451 = vmatmul.mubr.f32.gmra.mrb[14].mxu1 %v1132_v14  ;;  %3183 = vmatprep.subr.bf16.mxu1 %v3592_v0  ;;  %v4491_v29 = vld [vmem:[%s3859_s6 + $0x159] sm:$0xff]  ;;  %2130 = vst.msk [vmem:[#allocation2 + $0x5b8] sm:$0xff] %vm386_vm0, %v3092_v27  ;;  %675 = vst.msk [vmem:[#allocation2 + $0x1f8] sm:$0xff] %vm386_vm0, %v3092_v27  ;;  %v758_v31 = vld [vmem:[#allocation8 + $0x90] sm:$0xff] }
 0x13d   : > { %1981 = vrot.lane.b32.xlu1 %v3368_v41, %s3593_s23  ;;  %3185 = vmatpush1.bf16.msra.mxu1 %v3184_v30  ;;  %v943_v24 = vpop.permute.xlu0 %942  ;;  %v1134_v42 = vld [vmem:[#allocation2 + $0x380] sm:$0xff]  ;;  %v911_v43 = vpop.permute.xlu1 %910  ;;  %v1147_v17 = vld [vmem:[#allocation2 + $0x3e8] sm:$0xff] }
 0x13e   : > { %527 = vrot.lane.b32.xlu0 %v3369_v45, %s3593_s23  ;;  %3219 = vmatprep.subr.bf16.mxu0 %v3592_v0  ;;  %1006 = vst.msk [vmem:[#allocation2 + $0x3a0] sm:$0xff] %vm579_vm1, %v943_v24  ;;  %990 = vst.msk [vmem:[#allocation2 + $0x2a0] sm:$0xff] %vm579_vm1, %v911_v43  ;;  %v1102_v23 = vld [vmem:[#allocation2 + $0x280] sm:$0xff]  ;;  %v4508_v24 = vld [vmem:[%s3859_s6 + $0x169] sm:$0xff] }
 0x13f   : > { %2952 = vmatprep.mubr.msk.f32.mxu0 %vm386_vm0, %v1101_v36  ;;  %2969 = vmatprep.mubr.msk.f32.mxu1 %vm386_vm0, %v1135_v37  ;;  %v445_v14 = vld [vmem:[%s3859_s6 + $0x139] sm:$0xff]  ;;  %v2222_v45 = vld [vmem:[#allocation8 + $0x210] sm:$0xff]  ;;  %v1115_v6 = vld [vmem:[#allocation2 + $0x2e8] sm:$0xff] }
 0x140   : > { %3221 = vmatpush1.bf16.msra.mxu0 %v3220_v38  ;;  %1456 = vmatmul.mubr.f32.gmra.mrb[16].mxu1 %v1134_v42  ;;  %v759_v37 = vld [vmem:[#allocation8 + $0x98] sm:$0xff]  ;;  %v446_v42 = vld [vmem:[%s3859_s6 + $0x141] sm:$0xff] }
 0x141   : > { %1371 = vmatmul.mubr.f32.gmra.mrb[14].mxu0 %v1100_v46  ;;  %1983 = vrot.lane.b32.xlu1 %v3370_v4, %s3593_s23  ;;  %v945_v8 = vpop.permute.xlu0 %944  ;;  %v913_v1 = vpop.permute.xlu1 %912  ;;  %v1136_v33 = vld [vmem:[#allocation2 + $0x390] sm:$0xff]  ;;  %v3196_v43 = vpack.c.bf16 %v759_v37, %v758_v31  ;;  %v2223_v46 = vld [vmem:[#allocation8 + $0x218] sm:$0xff] }
 0x142   : > { %3186 = vmatprep.subr.bf16.mxu1 %v3592_v0  ;;  %529 = vrot.lane.b32.xlu0 %v4394_v60, %s3593_s23  ;;  %1007 = vst.msk [vmem:[#allocation2 + $0x3b0] sm:$0xff] %vm579_vm1, %v945_v8  ;;  %991 = vst.msk [vmem:[#allocation2 + $0x2b0] sm:$0xff] %vm579_vm1, %v913_v1  ;;  %v1104_v50 = vld [vmem:[#allocation2 + $0x290] sm:$0xff]  ;;  %v3190_v60 = vpack.c.bf16 %v755_v15, %v754_v59  ;;  %v1877_v59 = vld [vmem:[%s3867_s14 + $0x18] sm:$0xff] }
 0x143   : > { %3188 = vmatpush1.bf16.msra.mxu1 %v3187_v48  ;;  %2953 = vmatprep.mubr.msk.f32.mxu0 %vm386_vm0, %v1103_v10  ;;  %v2131_v39 = vld [vmem:[%s3867_s14 + $0x2] sm:$0xff]  ;;  %v2132_v10 = vld [vmem:[%s3867_s14 + $0xa] sm:$0xff]  ;;  %1881 = vst.msk [vmem:[#allocation2 + $0x5e0] sm:$0xff] %vm386_vm0, %v1877_v59 }
 0x144   : > { %2970 = vmatprep.mubr.msk.f32.mxu1 %vm386_vm0, %v1137_v11  ;;  %3222 = vmatprep.subr.bf16.mxu0 %v3592_v0  ;;  %2135 = vst.msk [vmem:[#allocation2 + $0x5c8] sm:$0xff] %vm386_vm0, %v2131_v39  ;;  %v3232_v11 = vpack.c.bf16 %v2223_v46, %v2222_v45  ;;  %v4524_v1 = vld [vmem:[%s3859_s6 + $0x171] sm:$0xff]  ;;  %2136 = vst.msk [vmem:[#allocation2 + $0x5d8] sm:$0xff] %vm386_vm0, %v2132_v10  ;;  %v2144_v46 = vld [vmem:[#allocation2 + $0x428] sm:$0xff] }
 0x145   : > { %1376 = vmatmul.mubr.f32.gmra.mrb[16].mxu0 %v1102_v23  ;;  %1461 = vmatmul.mubr.f32.gmra.mrb[18].mxu1 %v1136_v33  ;;  %v947_v52 = vpop.permute.xlu0 %946  ;;  %v915_v55 = vpop.permute.xlu1 %914  ;;  %v1138_v58 = vld [vmem:[#allocation2 + $0x3a0] sm:$0xff]  ;;  %v761_v33 = vld [vmem:[#allocation8 + $0xa8] sm:$0xff]  ;;  %v447_v15 = vld [vmem:[%s3859_s6 + $0x151] sm:$0xff] }
 0x146   : > { %3224 = vmatpush1.bf16.msra.mxu0 %v3223_v47  ;;  %1985 = vrot.lane.b32.xlu1 %v3371_v57, %s3593_s23  ;;  %1008 = vst.msk [vmem:[#allocation2 + $0x3c0] sm:$0xff] %vm579_vm1, %v947_v52  ;;  %992 = vst.msk [vmem:[#allocation2 + $0x2c0] sm:$0xff] %vm579_vm1, %v915_v55  ;;  %v1106_v2 = vld [vmem:[#allocation2 + $0x2a0] sm:$0xff]  ;;  %v2225_v52 = vld [vmem:[#allocation8 + $0x228] sm:$0xff] }
 0x147   : > { %531 = vrot.lane.b32.xlu0 %v4412_v21, %s3593_s23  ;;  %2954 = vmatprep.mubr.msk.f32.mxu0 %vm386_vm0, %v1105_v40  ;;  %v2220_v21 = vld [vmem:[#allocation8 + $0x200] sm:$0xff]  ;;  %v2142_v39 = vld [vmem:[#allocation2 + $0x418] sm:$0xff]  ;;  %v685_v10 = vld [vmem:[#allocation2 + $0x48] sm:$0xff] }
 0x148   : > { %2971 = vmatprep.mubr.msk.f32.mxu1 %vm386_vm0, %v1139_v53  ;;  %3189 = vmatprep.subr.bf16.mxu1 %v3592_v0  ;;  %v3229_v36 = vpack.c.bf16 %v2221_v26, %v2220_v21  ;;  %v760_v23 = vld [vmem:[#allocation8 + $0xa0] sm:$0xff]  ;;  %v677_v26 = vld [vmem:[#allocation2 + $0x8] sm:$0xff]  ;;  %v683_v45 = vld [vmem:[#allocation2 + $0x38] sm:$0xff] }
 0x149   : > { %1381 = vmatmul.mubr.f32.gmra.mrb[18].mxu0 %v1104_v50  ;;  %1466 = vmatmul.mubr.f32.gmra.mrb[20].mxu1 %v1138_v58  ;;  %v949_v12 = vpop.permute.xlu0 %948  ;;  %v917_v13 = vpop.permute.xlu1 %916  ;;  %v1140_v22 = vld [vmem:[#allocation2 + $0x3b0] sm:$0xff]  ;;  %v2224_v40 = vld [vmem:[#allocation8 + $0x220] sm:$0xff]  ;;  %v3199_v56 = vpack.c.bf16 %v761_v33, %v760_v23  ;;  %v687_v23 = vld [vmem:[#allocation2 + $0x58] sm:$0xff] }
 0x14a   : > { %3191 = vmatpush1.bf16.msra.mxu1 %v3190_v60  ;;  %1987 = vrot.lane.b32.xlu1 %v3372_v19, %s3593_s23  ;;  %1009 = vst.msk [vmem:[#allocation2 + $0x3d0] sm:$0xff] %vm579_vm1, %v949_v12  ;;  %993 = vst.msk [vmem:[#allocation2 + $0x2d0] sm:$0xff] %vm579_vm1, %v917_v13  ;;  %v1108_v41 = vld [vmem:[#allocation2 + $0x2b0] sm:$0xff]  ;;  %v3235_v61 = vpack.c.bf16 %v2225_v52, %v2224_v40  ;;  %v1149_v12 = vld [vmem:[#allocation2 + $0x3f8] sm:$0xff] }
 0x14b   : > { %3225 = vmatprep.subr.bf16.mxu0 %v3592_v0  ;;  %533 = vrot.lane.b32.xlu0 %v444_v63, %s3593_s23  ;;  %v2133_v53 = vld [vmem:[%s3867_s14 + $0x1a] sm:$0xff]  ;;  %v2134_v9 = vld [vmem:[%s3867_s14 + $0x22] sm:$0xff] }
 0x14c   : > { %3227 = vmatpush1.bf16.msra.mxu0 %v3226_v5  ;;  %2955 = vmatprep.mubr.msk.f32.mxu0 %vm386_vm0, %v1107_v62  ;;  %2137 = vst.msk [vmem:[#allocation2 + $0x5e8] sm:$0xff] %vm386_vm0, %v2133_v53  ;;  %v2051_v57 = vld [vmem:[%s3867_s14 + $0x1] sm:$0xff]  ;;  %2138 = vst.msk [vmem:[#allocation2 + $0x5f8] sm:$0xff] %vm386_vm0, %v2134_v9 }
 0x14d   : > { %2972 = vmatprep.mubr.msk.f32.mxu1 %vm386_vm0, %v1141_v20  ;;  %1386 = vmatmul.mubr.f32.gmra.mrb[20].mxu0 %v1106_v2  ;;  %v1015_v30 = vpop.permute.xlu0 %1014  ;;  %v919_v32 = vpop.permute.xlu1 %918  ;;  %v1142_v38 = vld [vmem:[#allocation2 + $0x3c0] sm:$0xff]  ;;  %v762_v63 = vld [vmem:[#allocation8 + $0xb0] sm:$0xff]  ;;  %v763_v5 = vld [vmem:[#allocation8 + $0xb8] sm:$0xff] }
 0x14e   : > { %1471 = vmatmul.mubr.f32.gmra.mrb[22].mxu1 %v1140_v22  ;;  %3192 = vmatprep.subr.bf16.mxu1 %v3592_v0  ;;  %1020 = vst.msk [vmem:[#allocation2 + $0x3e0] sm:$0xff] %vm579_vm1, %v1015_v30  ;;  %994 = vst.msk [vmem:[#allocation2 + $0x2e0] sm:$0xff] %vm579_vm1, %v919_v32  ;;  %v1110_v4 = vld [vmem:[#allocation2 + $0x2c0] sm:$0xff]  ;;  %v3202_v16 = vpack.c.bf16 %v763_v5, %v762_v63  ;;  %v2226_v19 = vld [vmem:[#allocation8 + $0x230] sm:$0xff] }
 0x14f   : > { %1989 = vrot.lane.b32.xlu1 %v4491_v29, %s3593_s23  ;;  %3194 = vmatpush1.bf16.msra.mxu1 %v3193_v25  ;;  %v1878_v60 = vld [vmem:[%s3867_s14 + $0x20] sm:$0xff]  ;;  %v2227_v20 = vld [vmem:[#allocation8 + $0x238] sm:$0xff]  ;;  %v2148_v33 = vld [vmem:[#allocation2 + $0x448] sm:$0xff] }
 0x150   : > { %535 = vrot.lane.b32.xlu0 %v445_v14, %s3593_s23  ;;  %3228 = vmatprep.subr.bf16.mxu0 %v3592_v0  ;;  %1882 = vst.msk [vmem:[#allocation2 + $0x5f0] sm:$0xff] %vm386_vm0, %v1878_v60  ;;  %v2052_v22 = vld [vmem:[%s3867_s14 + $0x9] sm:$0xff]  ;;  %v3238_v27 = vpack.c.bf16 %v2227_v20, %v2226_v19  ;;  %v2053_v32 = vld [vmem:[%s3867_s14 + $0x19] sm:$0xff] }
 0x151   : > { %2956 = vmatprep.mubr.msk.f32.mxu0 %vm386_vm0, %v1109_v7  ;;  %2973 = vmatprep.mubr.msk.f32.mxu1 %vm386_vm0, %v1143_v35  ;;  %v1017_v44 = vpop.permute.xlu0 %1016  ;;  %v921_v48 = vpop.permute.xlu1 %920  ;;  %v1144_v8 = vld [vmem:[#allocation2 + $0x3d0] sm:$0xff]  ;;  %v1117_v25 = vld [vmem:[#allocation2 + $0x2f8] sm:$0xff]  ;;  %v689_v40 = vld [vmem:[#allocation2 + $0x68] sm:$0xff] }
 0x152   : > { %3230 = vmatpush1.bf16.msra.mxu0 %v3229_v36  ;;  %1476 = vmatmul.mubr.f32.gmra.mrb[24].mxu1 %v1142_v38  ;;  %1021 = vst.msk [vmem:[#allocation2 + $0x3f0] sm:$0xff] %vm579_vm1, %v1017_v44  ;;  %995 = vst.msk [vmem:[#allocation2 + $0x2f0] sm:$0xff] %vm579_vm1, %v921_v48  ;;  %v1112_v54 = vld [vmem:[#allocation2 + $0x2d0] sm:$0xff]  ;;  %v679_v7 = vld [vmem:[#allocation2 + $0x18] sm:$0xff] }
 0x153   : > { %1391 = vmatmul.mubr.f32.gmra.mrb[22].mxu0 %v1108_v41  ;;  %1991 = vrot.lane.b32.xlu1 %v4508_v24, %s3593_s23  ;;  %v2054_v38 = vld [vmem:[%s3867_s14 + $0x21] sm:$0xff] }
 0x154   : > { %3195 = vmatprep.subr.bf16.mxu1 %v3592_v0  ;;  %537 = vrot.lane.b32.xlu0 %v446_v42, %s3593_s23  ;;  %v681_v41 = vld [vmem:[#allocation2 + $0x28] sm:$0xff]  ;;  %v2154_v5 = vld [vmem:[#allocation2 + $0x478] sm:$0xff] }
 0x155   : > { %3197 = vmatpush1.bf16.msra.mxu1 %v3196_v43  ;;  %2957 = vmatprep.mubr.msk.f32.mxu0 %vm386_vm0, %v1111_v51  ;;  %v484_v18 = vpop.permute.xlu0 %483  ;;  %v1940_v47 = vpop.permute.xlu1 %1939  ;;  %v1146_v55 = vld [vmem:[#allocation2 + $0x3e0] sm:$0xff]  ;;  %v693_v63 = vld [vmem:[#allocation2 + $0x88] sm:$0xff] }
 0x156   : > { %2974 = vmatprep.mubr.msk.f32.mxu1 %vm386_vm0, %v1145_v3  ;;  %3231 = vmatprep.subr.bf16.mxu0 %v3592_v0  ;;  %580 = vst.msk [vmem:[#allocation2] sm:$0xff] %vm579_vm1, %v484_v18  ;;  %2023 = vst.msk [vmem:[#allocation2 + $0x400] sm:$0xff] %vm579_vm1, %v1940_v47  ;;  %v1114_v62 = vld [vmem:[#allocation2 + $0x2e0] sm:$0xff] }
 0x157   : > { %1396 = vmatmul.mubr.f32.gmra.mrb[24].mxu0 %v1110_v4  ;;  %1481 = vmatmul.mubr.f32.gmra.mrb[26].mxu1 %v1144_v8  ;;  %v2146_v4 = vld [vmem:[#allocation2 + $0x438] sm:$0xff] }
 0x158   : > { %3233 = vmatpush1.bf16.msra.mxu0 %v3232_v11  ;;  %1993 = vrot.lane.b32.xlu1 %v4524_v1, %s3593_s23 }
 0x159   : > { %539 = vrot.lane.b32.xlu0 %v447_v15, %s3593_s23  ;;  %2958 = vmatprep.mubr.msk.f32.mxu0 %vm386_vm0, %v1113_v28  ;;  %v486_v50 = vpop.permute.xlu0 %485  ;;  %v1942_v58 = vpop.permute.xlu1 %1941  ;;  %v1148_v13 = vld [vmem:[#allocation2 + $0x3f0] sm:$0xff] }
 0x15a   : > { %2975 = vmatprep.mubr.msk.f32.mxu1 %vm386_vm0, %v1147_v17  ;;  %3198 = vmatprep.subr.bf16.mxu1 %v3592_v0  ;;  %581 = vst.msk [vmem:[#allocation2 + $0x10] sm:$0xff] %vm579_vm1, %v486_v50  ;;  %2024 = vst.msk [vmem:[#allocation2 + $0x410] sm:$0xff] %vm579_vm1, %v1942_v58  ;;  %v1116_v31 = vld [vmem:[#allocation2 + $0x2f0] sm:$0xff]  ;;  %v2150_v17 = vld [vmem:[#allocation2 + $0x458] sm:$0xff] }
 0x15b   : > { %1401 = vmatmul.mubr.f32.gmra.mrb[26].mxu0 %v1112_v54  ;;  %1486 = vmatmul.mubr.f32.gmra.mrb[28].mxu1 %v1146_v55 }
 0x15c   : > { %3200 = vmatpush1.bf16.msra.mxu1 %v3199_v56  ;;  %2059 = vrot.lane.b32.xlu1 %v2051_v57, %s3593_s23  ;;  %v691_v56 = vld [vmem:[#allocation2 + $0x78] sm:$0xff]  ;;  %v2152_v57 = vld [vmem:[#allocation2 + $0x468] sm:$0xff] }
 0x15d   : > { %3234 = vmatprep.subr.bf16.mxu0 %v3592_v0  ;;  %541 = vrot.lane.b32.xlu0 %v4491_v29, %s3593_s23  ;;  %v488_v2 = vpop.permute.xlu0 %487  ;;  %v1944_v21 = vpop.permute.xlu1 %1943  ;;  %v676_v29 = vld [vmem:[#allocation2] sm:$0xff] }
 0x15e   : > { %3236 = vmatpush1.bf16.msra.mxu0 %v3235_v61  ;;  %2959 = vmatprep.mubr.msk.f32.mxu0 %vm386_vm0, %v1115_v6  ;;  %582 = vst.msk [vmem:[#allocation2 + $0x20] sm:$0xff] %vm579_vm1, %v488_v2  ;;  %2025 = vst.msk [vmem:[#allocation2 + $0x420] sm:$0xff] %vm579_vm1, %v1944_v21  ;;  %v2139_v37 = vld [vmem:[#allocation2 + $0x400] sm:$0xff] }
 0x15f   : > { %2976 = vmatprep.mubr.msk.f32.mxu1 %vm386_vm0, %v1149_v12  ;;  %1406 = vmatmul.mubr.f32.gmra.mrb[28].mxu0 %v1114_v62 }
 0x160   : > { %1491 = vmatmul.mubr.f32.gmra.mrb[30].mxu1 %v1148_v13  ;;  %3201 = vmatprep.subr.bf16.mxu1 %v3592_v0  ;;  %v695_v13 = vld [vmem:[#allocation2 + $0x98] sm:$0xff] }
 0x161   : > { %2061 = vrot.lane.b32.xlu1 %v2052_v22, %s3593_s23  ;;  %3203 = vmatpush1.bf16.msra.mxu1 %v3202_v16  ;;  %v490_v14 = vpop.permute.xlu0 %489  ;;  %v1946_v30 = vpop.permute.xlu1 %1945  ;;  %v678_v35 = vld [vmem:[#allocation2 + $0x10] sm:$0xff]  ;;  %v2156_v16 = vld [vmem:[#allocation2 + $0x488] sm:$0xff] }
 0x162   : > { %543 = vrot.lane.b32.xlu0 %v4508_v24, %s3593_s23  ;;  %3237 = vmatprep.subr.bf16.mxu0 %v3592_v0  ;;  %583 = vst.msk [vmem:[#allocation2 + $0x30] sm:$0xff] %vm579_vm1, %v490_v14  ;;  %2026 = vst.msk [vmem:[#allocation2 + $0x430] sm:$0xff] %vm579_vm1, %v1946_v30  ;;  %v2141_v44 = vld [vmem:[#allocation2 + $0x410] sm:$0xff]  ;;  %v697_v22 = vld [vmem:[#allocation2 + $0xa8] sm:$0xff] }
 0x163   : > { %2960 = vmatprep.mubr.msk.f32.mxu0 %vm386_vm0, %v1117_v25  ;;  %2977 = vmatprep.mubr.msk.f32.mxu1 %vm386_vm0, %v677_v26  ;;  %v2158_v25 = vld [vmem:[#allocation2 + $0x498] sm:$0xff] }
 0x164   : > { %3239 = vmatpush1.bf16.msra.mxu0 %v3238_v27  ;;  %1657 = vmatmul.mubr.f32.vlgmr.msra.gmra.mrb[32].mxu1 %v676_v29  ;;  %v699_v30 = vld [vmem:[#allocation2 + $0xb8] sm:$0xff] }
 0x165   : > { %1411 = vmatmul.mubr.f32.gmra.mrb[30].mxu0 %v1116_v31  ;;  %2063 = vrot.lane.b32.xlu1 %v2053_v32, %s3593_s23  ;;  %v492_v0 = vpop.permute.xlu0 %491  ;;  %v1948_v36 = vpop.permute.xlu1 %1947  ;;  %v680_v24 = vld [vmem:[#allocation2 + $0x20] sm:$0xff]  ;;  %v2160_v31 = vld [vmem:[#allocation2 + $0x4a8] sm:$0xff] }
 0x166   : > { %545 = vrot.lane.b32.xlu0 %v4524_v1, %s3593_s23  ;;  %3093 = vmatprep.mubr.msk.f32.mxu0 %vm386_vm0, %v2140_v34  ;;  %584 = vst.msk [vmem:[#allocation2 + $0x40] sm:$0xff] %vm579_vm1, %v492_v0  ;;  %2027 = vst.msk [vmem:[#allocation2 + $0x440] sm:$0xff] %vm579_vm1, %v1948_v36  ;;  %v2143_v3 = vld [vmem:[#allocation2 + $0x420] sm:$0xff]  ;;  %v701_v0 = vld [vmem:[#allocation2 + $0xc8] sm:$0xff] }
 0x167   : > { %2978 = vmatprep.mubr.msk.f32.mxu1 %vm386_vm0, %v679_v7  ;;  %v2162_v36 = vld [vmem:[#allocation2 + $0x4b8] sm:$0xff] }
 0x168   : > { %1662 = vmatmul.mubr.f32.gmra.mrb[34].mxu1 %v678_v35 }
 0x169   : > { %2389 = vmatmul.mubr.f32.vlgmr.msra.gmra.mrb[32].mxu0 %v2139_v37  ;;  %2065 = vrot.lane.b32.xlu1 %v2054_v38, %s3593_s23  ;;  %v494_v42 = vpop.permute.xlu0 %493  ;;  %v1950_v43 = vpop.permute.xlu1 %1949  ;;  %v682_v48 = vld [vmem:[#allocation2 + $0x30] sm:$0xff] }
 0x16a   : > { %3094 = vmatprep.mubr.msk.f32.mxu0 %vm386_vm0, %v2142_v39  ;;  %2979 = vmatprep.mubr.msk.f32.mxu1 %vm386_vm0, %v681_v41  ;;  %585 = vst.msk [vmem:[#allocation2 + $0x50] sm:$0xff] %vm579_vm1, %v494_v42  ;;  %2028 = vst.msk [vmem:[#allocation2 + $0x450] sm:$0xff] %vm579_vm1, %v1950_v43  ;;  %v2145_v18 = vld [vmem:[#allocation2 + $0x430] sm:$0xff]  ;;  %v703_v41 = vld [vmem:[#allocation2 + $0xd8] sm:$0xff] }
 0x16b   : > { %v2164_v42 = vld [vmem:[#allocation2 + $0x4c8] sm:$0xff] }
 0x16c   : > { %1667 = vmatmul.mubr.f32.gmra.mrb[36].mxu1 %v680_v24 }
 0x16d   : > { %2394 = vmatmul.mubr.f32.gmra.mrb[34].mxu0 %v2141_v44  ;;  %2980 = vmatprep.mubr.msk.f32.mxu1 %vm386_vm0, %v683_v45  ;;  %v496_v49 = vpop.permute.xlu0 %495  ;;  %v1952_v51 = vpop.permute.xlu1 %1951  ;;  %v684_v8 = vld [vmem:[#allocation2 + $0x40] sm:$0xff] }
 0x16e   : > { %3095 = vmatprep.mubr.msk.f32.mxu0 %vm386_vm0, %v2144_v46  ;;  %586 = vst.msk [vmem:[#allocation2 + $0x60] sm:$0xff] %vm579_vm1, %v496_v49  ;;  %2029 = vst.msk [vmem:[#allocation2 + $0x460] sm:$0xff] %vm579_vm1, %v1952_v51  ;;  %v2147_v28 = vld [vmem:[#allocation2 + $0x440] sm:$0xff]  ;;  %v705_v46 = vld [vmem:[#allocation2 + $0xe8] sm:$0xff] }
 0x170   : > { %1672 = vmatmul.mubr.f32.gmra.mrb[38].mxu1 %v682_v48  ;;  %v2166_v48 = vld [vmem:[#allocation2 + $0x4d8] sm:$0xff] }
 0x171   : > { %2399 = vmatmul.mubr.f32.gmra.mrb[36].mxu0 %v2143_v3  ;;  %2981 = vmatprep.mubr.msk.f32.mxu1 %vm386_vm0, %v685_v10  ;;  %v498_v11 = vpop.permute.xlu0 %497  ;;  %v1954_v1 = vpop.permute.xlu1 %1953  ;;  %v686_v47 = vld [vmem:[#allocation2 + $0x50] sm:$0xff] }
 0x172   : > { %3096 = vmatprep.mubr.msk.f32.mxu0 %vm386_vm0, %v2146_v4  ;;  %587 = vst.msk [vmem:[#allocation2 + $0x70] sm:$0xff] %vm579_vm1, %v498_v11  ;;  %2030 = vst.msk [vmem:[#allocation2 + $0x470] sm:$0xff] %vm579_vm1, %v1954_v1  ;;  %v2149_v55 = vld [vmem:[#allocation2 + $0x450] sm:$0xff]  ;;  %v707_v4 = vld [vmem:[#allocation2 + $0xf8] sm:$0xff] }
 0x174   : > { %1677 = vmatmul.mubr.f32.gmra.mrb[40].mxu1 %v684_v8  ;;  %v2168_v8 = vld [vmem:[#allocation2 + $0x4e8] sm:$0xff] }
 0x175   : > { %2404 = vmatmul.mubr.f32.gmra.mrb[38].mxu0 %v2145_v18  ;;  %2982 = vmatprep.mubr.msk.f32.mxu1 %vm386_vm0, %v687_v23  ;;  %v500_v59 = vpop.permute.xlu0 %499  ;;  %v1956_v15 = vpop.permute.xlu1 %1955  ;;  %v688_v52 = vld [vmem:[#allocation2 + $0x60] sm:$0xff] }
 0x176   : > { %3097 = vmatprep.mubr.msk.f32.mxu0 %vm386_vm0, %v2148_v33  ;;  %588 = vst.msk [vmem:[#allocation2 + $0x80] sm:$0xff] %vm579_vm1, %v500_v59  ;;  %2031 = vst.msk [vmem:[#allocation2 + $0x480] sm:$0xff] %vm579_vm1, %v1956_v15  ;;  %v2151_v61 = vld [vmem:[#allocation2 + $0x460] sm:$0xff]  ;;  %v709_v33 = vld [vmem:[#allocation2 + $0x108] sm:$0xff] }
 0x178   : > { %1682 = vmatmul.mubr.f32.gmra.mrb[42].mxu1 %v686_v47  ;;  %v2170_v47 = vld [vmem:[#allocation2 + $0x4f8] sm:$0xff] }
 0x179   : > { %2409 = vmatmul.mubr.f32.gmra.mrb[40].mxu0 %v2147_v28  ;;  %2983 = vmatprep.mubr.msk.f32.mxu1 %vm386_vm0, %v689_v40  ;;  %v502_v53 = vpop.permute.xlu0 %501  ;;  %v1958_v54 = vpop.permute.xlu1 %1957  ;;  %v690_v50 = vld [vmem:[#allocation2 + $0x70] sm:$0xff] }
 0x17a   : > { %3098 = vmatprep.mubr.msk.f32.mxu0 %vm386_vm0, %v2150_v17  ;;  %589 = vst.msk [vmem:[#allocation2 + $0x90] sm:$0xff] %vm579_vm1, %v502_v53  ;;  %2032 = vst.msk [vmem:[#allocation2 + $0x490] sm:$0xff] %vm579_vm1, %v1958_v54  ;;  %v2153_v62 = vld [vmem:[#allocation2 + $0x470] sm:$0xff]  ;;  %v711_v17 = vld [vmem:[#allocation2 + $0x118] sm:$0xff] }
 0x17c   : > { %1687 = vmatmul.mubr.f32.gmra.mrb[44].mxu1 %v688_v52  ;;  %v2172_v52 = vld [vmem:[#allocation2 + $0x508] sm:$0xff] }
 0x17d   : > { %2414 = vmatmul.mubr.f32.gmra.mrb[42].mxu0 %v2149_v55  ;;  %2984 = vmatprep.mubr.msk.f32.mxu1 %vm386_vm0, %v691_v56  ;;  %v504_v58 = vpop.permute.xlu0 %503  ;;  %v1960_v60 = vpop.permute.xlu1 %1959  ;;  %v692_v6 = vld [vmem:[#allocation2 + $0x80] sm:$0xff]  ;;  %v713_v56 = vld [vmem:[#allocation2 + $0x128] sm:$0xff] }
 0x17e   : > { %3099 = vmatprep.mubr.msk.f32.mxu0 %vm386_vm0, %v2152_v57  ;;  %590 = vst.msk [vmem:[#allocation2 + $0xa0] sm:$0xff] %vm579_vm1, %v504_v58  ;;  %2033 = vst.msk [vmem:[#allocation2 + $0x4a0] sm:$0xff] %vm579_vm1, %v1960_v60  ;;  %v2155_v21 = vld [vmem:[#allocation2 + $0x480] sm:$0xff]  ;;  %v2174_v57 = vld [vmem:[#allocation2 + $0x518] sm:$0xff] }
 0x180   : > { %1692 = vmatmul.mubr.f32.gmra.mrb[46].mxu1 %v690_v50 }
 0x181   : > { %2419 = vmatmul.mubr.f32.gmra.mrb[44].mxu0 %v2151_v61  ;;  %2985 = vmatprep.mubr.msk.f32.mxu1 %vm386_vm0, %v693_v63  ;;  %v506_v9 = vpop.permute.xlu0 %505  ;;  %v1962_v12 = vpop.permute.xlu1 %1961  ;;  %v694_v19 = vld [vmem:[#allocation2 + $0x90] sm:$0xff]  ;;  %v715_v63 = vld [vmem:[#allocation2 + $0x138] sm:$0xff] }
 0x182   : > { %3100 = vmatprep.mubr.msk.f32.mxu0 %vm386_vm0, %v2154_v5  ;;  %591 = vst.msk [vmem:[#allocation2 + $0xb0] sm:$0xff] %vm579_vm1, %v506_v9  ;;  %2034 = vst.msk [vmem:[#allocation2 + $0x4b0] sm:$0xff] %vm579_vm1, %v1962_v12  ;;  %v2157_v14 = vld [vmem:[#allocation2 + $0x490] sm:$0xff]  ;;  %v2176_v5 = vld [vmem:[#allocation2 + $0x528] sm:$0xff] }
 0x184   : > { %1697 = vmatmul.mubr.f32.gmra.mrb[48].mxu1 %v692_v6 }
 0x185   : > { %2424 = vmatmul.mubr.f32.gmra.mrb[46].mxu0 %v2153_v62  ;;  %2986 = vmatprep.mubr.msk.f32.mxu1 %vm386_vm0, %v695_v13  ;;  %v508_v20 = vpop.permute.xlu0 %507  ;;  %v1964_v2 = vpop.permute.xlu1 %1963  ;;  %v696_v26 = vld [vmem:[#allocation2 + $0xa0] sm:$0xff]  ;;  %v717_v62 = vld [vmem:[#allocation2 + $0x148] sm:$0xff] }
 0x186   : > { %3101 = vmatprep.mubr.msk.f32.mxu0 %vm386_vm0, %v2156_v16  ;;  %592 = vst.msk [vmem:[#allocation2 + $0xc0] sm:$0xff] %vm579_vm1, %v508_v20  ;;  %2035 = vst.msk [vmem:[#allocation2 + $0x4c0] sm:$0xff] %vm579_vm1, %v1964_v2  ;;  %v2159_v35 = vld [vmem:[#allocation2 + $0x4a0] sm:$0xff]  ;;  %v2178_v16 = vld [vmem:[#allocation2 + $0x538] sm:$0xff] }
 0x188   : > { %1702 = vmatmul.mubr.f32.gmra.mrb[50].mxu1 %v694_v19 }
 0x189   : > { %2429 = vmatmul.mubr.f32.gmra.mrb[48].mxu0 %v2155_v21  ;;  %2987 = vmatprep.mubr.msk.f32.mxu1 %vm386_vm0, %v697_v22  ;;  %v510_v27 = vpop.permute.xlu0 %509  ;;  %v1966_v29 = vpop.permute.xlu1 %1965  ;;  %v698_v32 = vld [vmem:[#allocation2 + $0xb0] sm:$0xff]  ;;  %v719_v21 = vld [vmem:[#allocation2 + $0x158] sm:$0xff] }
 0x18a   : > { %3102 = vmatprep.mubr.msk.f32.mxu0 %vm386_vm0, %v2158_v25  ;;  %593 = vst.msk [vmem:[#allocation2 + $0xd0] sm:$0xff] %vm579_vm1, %v510_v27  ;;  %2036 = vst.msk [vmem:[#allocation2 + $0x4d0] sm:$0xff] %vm579_vm1, %v1966_v29  ;;  %v2161_v39 = vld [vmem:[#allocation2 + $0x4b0] sm:$0xff]  ;;  %v2180_v25 = vld [vmem:[#allocation2 + $0x548] sm:$0xff] }
 0x18c   : > { %1707 = vmatmul.mubr.f32.gmra.mrb[52].mxu1 %v696_v26 }
 0x18d   : > { %2434 = vmatmul.mubr.f32.gmra.mrb[50].mxu0 %v2157_v14  ;;  %2988 = vmatprep.mubr.msk.f32.mxu1 %vm386_vm0, %v699_v30  ;;  %v512_v34 = vpop.permute.xlu0 %511  ;;  %v1968_v7 = vpop.permute.xlu1 %1967  ;;  %v700_v37 = vld [vmem:[#allocation2 + $0xc0] sm:$0xff]  ;;  %v721_v14 = vld [vmem:[#allocation2 + $0x168] sm:$0xff]  ;;  %v2182_v30 = vld [vmem:[#allocation2 + $0x558] sm:$0xff] }
 0x18e   : > { %3103 = vmatprep.mubr.msk.f32.mxu0 %vm386_vm0, %v2160_v31  ;;  %594 = vst.msk [vmem:[#allocation2 + $0xe0] sm:$0xff] %vm579_vm1, %v512_v34  ;;  %2037 = vst.msk [vmem:[#allocation2 + $0x4e0] sm:$0xff] %vm579_vm1, %v1968_v7  ;;  %v2163_v45 = vld [vmem:[#allocation2 + $0x4c0] sm:$0xff] }
 0x190   : > { %1712 = vmatmul.mubr.f32.gmra.mrb[54].mxu1 %v698_v32 }
 0x191   : > { %2439 = vmatmul.mubr.f32.gmra.mrb[52].mxu0 %v2159_v35  ;;  %2989 = vmatprep.mubr.msk.f32.mxu1 %vm386_vm0, %v701_v0  ;;  %v514_v38 = vpop.permute.xlu0 %513  ;;  %v702_v43 = vld [vmem:[#allocation2 + $0xd0] sm:$0xff]  ;;  %v723_v35 = vld [vmem:[#allocation2 + $0x178] sm:$0xff]  ;;  %v2184_v0 = vld [vmem:[#allocation2 + $0x568] sm:$0xff] }
 0x192   : > { %3104 = vmatprep.mubr.msk.f32.mxu0 %vm386_vm0, %v2162_v36  ;;  %595 = vst.msk [vmem:[#allocation2 + $0xf0] sm:$0xff] %vm579_vm1, %v514_v38  ;;  %v1970_v24 = vpop.permute.xlu1 %1969  ;;  %v2165_v10 = vld [vmem:[#allocation2 + $0x4d0] sm:$0xff] }
 0x193   : > { %2038 = vst.msk [vmem:[#allocation2 + $0x4f0] sm:$0xff] %vm579_vm1, %v1970_v24  ;;  %v2186_v24 = vld [vmem:[#allocation2 + $0x578] sm:$0xff] }
 0x194   : > { %1717 = vmatmul.mubr.f32.gmra.mrb[56].mxu1 %v700_v37 }
 0x195   : > { %2444 = vmatmul.mubr.f32.gmra.mrb[54].mxu0 %v2161_v39  ;;  %2990 = vmatprep.mubr.msk.f32.mxu1 %vm386_vm0, %v703_v41  ;;  %v516_v44 = vpop.permute.xlu0 %515  ;;  %v704_v51 = vld [vmem:[#allocation2 + $0xe0] sm:$0xff]  ;;  %v725_v41 = vld [vmem:[#allocation2 + $0x188] sm:$0xff] }
 0x196   : > { %3105 = vmatprep.mubr.msk.f32.mxu0 %vm386_vm0, %v2164_v42  ;;  %596 = vst.msk [vmem:[#allocation2 + $0x100] sm:$0xff] %vm579_vm1, %v516_v44  ;;  %v2167_v18 = vld [vmem:[#allocation2 + $0x4e0] sm:$0xff] }
 0x197   : > { %v1972_v49 = vpop.permute.xlu1 %1971 }
 0x198   : > { %1722 = vmatmul.mubr.f32.gmra.mrb[58].mxu1 %v702_v43  ;;  %2039 = vst.msk [vmem:[#allocation2 + $0x500] sm:$0xff] %vm579_vm1, %v1972_v49 }
 0x199   : > { %2449 = vmatmul.mubr.f32.gmra.mrb[56].mxu0 %v2163_v45  ;;  %2991 = vmatprep.mubr.msk.f32.mxu1 %vm386_vm0, %v705_v46  ;;  %v518_v3 = vpop.permute.xlu0 %517  ;;  %v706_v11 = vld [vmem:[#allocation2 + $0xf0] sm:$0xff]  ;;  %v727_v46 = vld [vmem:[#allocation2 + $0x198] sm:$0xff] }
 0x19a   : > { %3106 = vmatprep.mubr.msk.f32.mxu0 %vm386_vm0, %v2166_v48  ;;  %597 = vst.msk [vmem:[#allocation2 + $0x110] sm:$0xff] %vm579_vm1, %v518_v3  ;;  %v2169_v28 = vld [vmem:[#allocation2 + $0x4f0] sm:$0xff]  ;;  %v2188_v48 = vld [vmem:[#allocation2 + $0x588] sm:$0xff] }
 0x19c   : > { %1727 = vmatmul.mubr.f32.gmra.mrb[60].mxu1 %v704_v51 }
 0x19d   : > { %2454 = vmatmul.mubr.f32.gmra.mrb[58].mxu0 %v2165_v10  ;;  %2992 = vmatprep.mubr.msk.f32.mxu1 %vm386_vm0, %v707_v4  ;;  %v1974_v1 = vpop.permute.xlu1 %1973  ;;  %v708_v59 = vld [vmem:[#allocation2 + $0x100] sm:$0xff]  ;;  %v729_v4 = vld [vmem:[#allocation2 + $0x1a8] sm:$0xff] }
 0x19e   : > { %3107 = vmatprep.mubr.msk.f32.mxu0 %vm386_vm0, %v2168_v8  ;;  %2040 = vst.msk [vmem:[#allocation2 + $0x510] sm:$0xff] %vm579_vm1, %v1974_v1  ;;  %v520_v23 = vpop.permute.xlu0 %519  ;;  %v2190_v8 = vld [vmem:[#allocation2 + $0x598] sm:$0xff] }
 0x19f   : > { %598 = vst.msk [vmem:[#allocation2 + $0x120] sm:$0xff] %vm579_vm1, %v520_v23  ;;  %v2171_v54 = vld [vmem:[#allocation2 + $0x500] sm:$0xff]  ;;  %v731_v23 = vld [vmem:[#allocation2 + $0x1b8] sm:$0xff] }
 0x1a0   : > { %1732 = vmatmul.mubr.f32.gmra.mrb[62].mxu1 %v706_v11 }
 0x1a1   : > { %2459 = vmatmul.mubr.f32.gmra.mrb[60].mxu0 %v2167_v18  ;;  %2993 = vmatprep.mubr.msk.f32.mxu1 %vm386_vm0, %v709_v33  ;;  %v1976_v15 = vpop.permute.xlu1 %1975  ;;  %v710_v53 = vld [vmem:[#allocation2 + $0x110] sm:$0xff] }
 0x1a2   : > { %3108 = vmatprep.mubr.msk.f32.mxu0 %vm386_vm0, %v2170_v47  ;;  %2041 = vst.msk [vmem:[#allocation2 + $0x520] sm:$0xff] %vm579_vm1, %v1976_v15  ;;  %v522_v40 = vpop.permute.xlu0 %521  ;;  %v2192_v47 = vld [vmem:[#allocation2 + $0x5a8] sm:$0xff] }
 0x1a3   : > { %599 = vst.msk [vmem:[#allocation2 + $0x130] sm:$0xff] %vm579_vm1, %v522_v40  ;;  %v733_v40 = vld [vmem:[#allocation2 + $0x1c8] sm:$0xff] }
 0x1a4   : > { %1737 = vmatmul.mubr.f32.gmra.mrb[64].mxu1 %v708_v59 }
 0x1a5   : > { %2464 = vmatmul.mubr.f32.gmra.mrb[62].mxu0 %v2169_v28  ;;  %2994 = vmatprep.mubr.msk.f32.mxu1 %vm386_vm0, %v711_v17  ;;  %v2173_v60 = vld [vmem:[#allocation2 + $0x510] sm:$0xff] }
 0x1a6   : > { %3109 = vmatprep.mubr.msk.f32.mxu0 %vm386_vm0, %v2172_v52  ;;  %v1978_v55 = vpop.permute.xlu1 %1977  ;;  %v712_v58 = vld [vmem:[#allocation2 + $0x120] sm:$0xff]  ;;  %v2194_v52 = vld [vmem:[#allocation2 + $0x5b8] sm:$0xff] }
 0x1a7   : > { %2042 = vst.msk [vmem:[#allocation2 + $0x530] sm:$0xff] %vm579_vm1, %v1978_v55  ;;  %v524_v50 = vpop.permute.xlu0 %523 }
 0x1a8   : > { %1742 = vmatmul.mubr.f32.gmra.mrb[66].mxu1 %v710_v53  ;;  %600 = vst.msk [vmem:[#allocation2 + $0x140] sm:$0xff] %vm579_vm1, %v524_v50 }
 0x1a9   : > { %2469 = vmatmul.mubr.f32.gmra.mrb[64].mxu0 %v2171_v54  ;;  %2995 = vmatprep.mubr.msk.f32.mxu1 %vm386_vm0, %v713_v56  ;;  %v2175_v12 = vld [vmem:[#allocation2 + $0x520] sm:$0xff]  ;;  %v735_v54 = vld [vmem:[#allocation2 + $0x1d8] sm:$0xff] }
 0x1aa   : > { %3110 = vmatprep.mubr.msk.f32.mxu0 %vm386_vm0, %v2174_v57  ;;  %v1980_v61 = vpop.permute.xlu1 %1979  ;;  %v714_v9 = vld [vmem:[#allocation2 + $0x130] sm:$0xff]  ;;  %v2196_v57 = vld [vmem:[#allocation2 + $0x5c8] sm:$0xff] }
 0x1ab   : > { %2043 = vst.msk [vmem:[#allocation2 + $0x540] sm:$0xff] %vm579_vm1, %v1980_v61  ;;  %v526_v6 = vpop.permute.xlu0 %525 }
 0x1ac   : > { %1747 = vmatmul.mubr.f32.gmra.mrb[68].mxu1 %v712_v58  ;;  %601 = vst.msk [vmem:[#allocation2 + $0x150] sm:$0xff] %vm579_vm1, %v526_v6 }
 0x1ad   : > { %2474 = vmatmul.mubr.f32.gmra.mrb[66].mxu0 %v2173_v60  ;;  %2996 = vmatprep.mubr.msk.f32.mxu1 %vm386_vm0, %v715_v63  ;;  %v737_v60 = vld [vmem:[#allocation2 + $0x1e8] sm:$0xff] }
 0x1ae   : > { %3111 = vmatprep.mubr.msk.f32.mxu0 %vm386_vm0, %v2176_v5  ;;  %v2177_v2 = vld [vmem:[#allocation2 + $0x530] sm:$0xff]  ;;  %v2198_v5 = vld [vmem:[#allocation2 + $0x5d8] sm:$0xff] }
 0x1af   : > { %v1982_v13 = vpop.permute.xlu1 %1981  ;;  %v716_v20 = vld [vmem:[#allocation2 + $0x140] sm:$0xff] }
 0x1b0   : > { %1752 = vmatmul.mubr.f32.gmra.mrb[70].mxu1 %v714_v9  ;;  %2044 = vst.msk [vmem:[#allocation2 + $0x550] sm:$0xff] %vm579_vm1, %v1982_v13  ;;  %v528_v19 = vpop.permute.xlu0 %527  ;;  %v2200_v13 = vld [vmem:[#allocation2 + $0x5e8] sm:$0xff] }
 0x1b1   : > { %2479 = vmatmul.mubr.f32.gmra.mrb[68].mxu0 %v2175_v12  ;;  %602 = vst.msk [vmem:[#allocation2 + $0x160] sm:$0xff] %vm579_vm1, %v528_v19  ;;  %2997 = vmatprep.mubr.msk.f32.mxu1 %vm386_vm0, %v717_v62  ;;  %v739_v62 = vld [vmem:[#allocation2 + $0x1f8] sm:$0xff] }
 0x1b2   : > { %3112 = vmatprep.mubr.msk.f32.mxu0 %vm386_vm0, %v2178_v16  ;;  %v2179_v29 = vld [vmem:[#allocation2 + $0x540] sm:$0xff] }
 0x1b3   : > { %v1984_v22 = vpop.permute.xlu1 %1983  ;;  %v718_v27 = vld [vmem:[#allocation2 + $0x150] sm:$0xff] }
 0x1b4   : > { %1757 = vmatmul.mubr.f32.gmra.mrb[72].mxu1 %v716_v20  ;;  %2045 = vst.msk [vmem:[#allocation2 + $0x560] sm:$0xff] %vm579_vm1, %v1984_v22  ;;  %v530_v26 = vpop.permute.xlu0 %529  ;;  %v2202_v20 = vld [vmem:[#allocation2 + $0x5f8] sm:$0xff] }
 0x1b5   : > { %2484 = vmatmul.mubr.f32.gmra.mrb[70].mxu0 %v2177_v2  ;;  %603 = vst.msk [vmem:[#allocation2 + $0x170] sm:$0xff] %vm579_vm1, %v530_v26  ;;  %2998 = vmatprep.mubr.msk.f32.mxu1 %vm386_vm0, %v719_v21 }
 0x1b6   : > { %3113 = vmatprep.mubr.msk.f32.mxu0 %vm386_vm0, %v2180_v25 }
 0x1b7   : > { %v2181_v7 = vld [vmem:[#allocation2 + $0x550] sm:$0xff] }
 0x1b8   : > { %1762 = vmatmul.mubr.f32.gmra.mrb[74].mxu1 %v718_v27  ;;  %v1986_v31 = vpop.permute.xlu1 %1985  ;;  %v720_v34 = vld [vmem:[#allocation2 + $0x160] sm:$0xff] }
 0x1b9   : > { %2489 = vmatmul.mubr.f32.gmra.mrb[72].mxu0 %v2179_v29  ;;  %2046 = vst.msk [vmem:[#allocation2 + $0x570] sm:$0xff] %vm579_vm1, %v1986_v31  ;;  %v532_v32 = vpop.permute.xlu0 %531  ;;  %2999 = vmatprep.mubr.msk.f32.mxu1 %vm386_vm0, %v721_v14 }
 0x1ba   : > { %3114 = vmatprep.mubr.msk.f32.mxu0 %vm386_vm0, %v2182_v30  ;;  %604 = vst.msk [vmem:[#allocation2 + $0x180] sm:$0xff] %vm579_vm1, %v532_v32 }
 0x1bb   : > { %v2183_v39 = vld [vmem:[#allocation2 + $0x560] sm:$0xff] }
 0x1bc   : > { %1767 = vmatmul.mubr.f32.gmra.mrb[76].mxu1 %v720_v34  ;;  %v1988_v36 = vpop.permute.xlu1 %1987  ;;  %v722_v38 = vld [vmem:[#allocation2 + $0x170] sm:$0xff] }
 0x1bd   : > { %2494 = vmatmul.mubr.f32.gmra.mrb[74].mxu0 %v2181_v7  ;;  %2047 = vst.msk [vmem:[#allocation2 + $0x580] sm:$0xff] %vm579_vm1, %v1988_v36  ;;  %v534_v37 = vpop.permute.xlu0 %533  ;;  %3000 = vmatprep.mubr.msk.f32.mxu1 %vm386_vm0, %v723_v35 }
 0x1be   : > { %3115 = vmatprep.mubr.msk.f32.mxu0 %vm386_vm0, %v2184_v0  ;;  %605 = vst.msk [vmem:[#allocation2 + $0x190] sm:$0xff] %vm579_vm1, %v534_v37 }
 0x1c0   : > { %1772 = vmatmul.mubr.f32.gmra.mrb[78].mxu1 %v722_v38  ;;  %v2185_v45 = vld [vmem:[#allocation2 + $0x570] sm:$0xff] }
 0x1c1   : > { %2499 = vmatmul.mubr.f32.gmra.mrb[76].mxu0 %v2183_v39  ;;  %v1990_v42 = vpop.permute.xlu1 %1989  ;;  %3001 = vmatprep.mubr.msk.f32.mxu1 %vm386_vm0, %v725_v41  ;;  %v724_v43 = vld [vmem:[#allocation2 + $0x180] sm:$0xff] }
 0x1c2   : > { %2048 = vst.msk [vmem:[#allocation2 + $0x590] sm:$0xff] %vm579_vm1, %v1990_v42  ;;  %3116 = vmatprep.mubr.msk.f32.mxu0 %vm386_vm0, %v2186_v24  ;;  %v536_v44 = vpop.permute.xlu0 %535 }
 0x1c3   : > { %606 = vst.msk [vmem:[#allocation2 + $0x1a0] sm:$0xff] %vm579_vm1, %v536_v44 }
 0x1c4   : > { %1777 = vmatmul.mubr.f32.gmra.mrb[80].mxu1 %v724_v43  ;;  %v2187_v10 = vld [vmem:[#allocation2 + $0x580] sm:$0xff] }
 0x1c5   : > { %2504 = vmatmul.mubr.f32.gmra.mrb[78].mxu0 %v2185_v45  ;;  %v1992_v49 = vpop.permute.xlu1 %1991  ;;  %3002 = vmatprep.mubr.msk.f32.mxu1 %vm386_vm0, %v727_v46  ;;  %v726_v51 = vld [vmem:[#allocation2 + $0x190] sm:$0xff] }
 0x1c6   : > { %2049 = vst.msk [vmem:[#allocation2 + $0x5a0] sm:$0xff] %vm579_vm1, %v1992_v49  ;;  %3117 = vmatprep.mubr.msk.f32.mxu0 %vm386_vm0, %v2188_v48  ;;  %v538_v3 = vpop.permute.xlu0 %537 }
 0x1c7   : > { %607 = vst.msk [vmem:[#allocation2 + $0x1b0] sm:$0xff] %vm579_vm1, %v538_v3 }
 0x1c8   : > { %1782 = vmatmul.mubr.f32.gmra.mrb[82].mxu1 %v726_v51 }
 0x1c9   : > { %2509 = vmatmul.mubr.f32.gmra.mrb[80].mxu0 %v2187_v10  ;;  %3003 = vmatprep.mubr.msk.f32.mxu1 %vm386_vm0, %v729_v4  ;;  %v2189_v18 = vld [vmem:[#allocation2 + $0x590] sm:$0xff] }
 0x1ca   : > { %v1994_v11 = vpop.permute.xlu1 %1993  ;;  %3118 = vmatprep.mubr.msk.f32.mxu0 %vm386_vm0, %v2190_v8  ;;  %v728_v1 = vld [vmem:[#allocation2 + $0x1a0] sm:$0xff] }
 0x1cb   : > { %2050 = vst.msk [vmem:[#allocation2 + $0x5b0] sm:$0xff] %vm579_vm1, %v1994_v11  ;;  %v540_v33 = vpop.permute.xlu0 %539 }
 0x1cc   : > { %608 = vst.msk [vmem:[#allocation2 + $0x1c0] sm:$0xff] %vm579_vm1, %v540_v33  ;;  %1787 = vmatmul.mubr.f32.gmra.mrb[84].mxu1 %v728_v1 }
 0x1cd   : > { %2514 = vmatmul.mubr.f32.gmra.mrb[82].mxu0 %v2189_v18  ;;  %3004 = vmatprep.mubr.msk.f32.mxu1 %vm386_vm0, %v731_v23  ;;  %v2191_v28 = vld [vmem:[#allocation2 + $0x5a0] sm:$0xff] }
 0x1ce   : > { %v2060_v59 = vpop.permute.xlu1 %2059  ;;  %3119 = vmatprep.mubr.msk.f32.mxu0 %vm386_vm0, %v2192_v47  ;;  %v730_v15 = vld [vmem:[#allocation2 + $0x1b0] sm:$0xff] }
 0x1cf   : > { %2071 = vst.msk [vmem:[#allocation2 + $0x5c0] sm:$0xff] %vm579_vm1, %v2060_v59  ;;  %v542_v17 = vpop.permute.xlu0 %541 }
 0x1d0   : > { %609 = vst.msk [vmem:[#allocation2 + $0x1d0] sm:$0xff] %vm579_vm1, %v542_v17  ;;  %1792 = vmatmul.mubr.f32.gmra.mrb[86].mxu1 %v730_v15 }
 0x1d1   : > { %2519 = vmatmul.mubr.f32.gmra.mrb[84].mxu0 %v2191_v28  ;;  %3005 = vmatprep.mubr.msk.f32.mxu1 %vm386_vm0, %v733_v40 }
 0x1d2   : > { %3120 = vmatprep.mubr.msk.f32.mxu0 %vm386_vm0, %v2194_v52  ;;  %v2193_v53 = vld [vmem:[#allocation2 + $0x5b0] sm:$0xff] }
 0x1d3   : > { %v2062_v55 = vpop.permute.xlu1 %2061  ;;  %v732_v56 = vld [vmem:[#allocation2 + $0x1c0] sm:$0xff] }
 0x1d4   : > { %2072 = vst.msk [vmem:[#allocation2 + $0x5d0] sm:$0xff] %vm579_vm1, %v2062_v55  ;;  %v544_v50 = vpop.permute.xlu0 %543  ;;  %1797 = vmatmul.mubr.f32.gmra.mrb[88].mxu1 %v732_v56 }
 0x1d5   : > { %610 = vst.msk [vmem:[#allocation2 + $0x1e0] sm:$0xff] %vm579_vm1, %v544_v50  ;;  %2524 = vmatmul.mubr.f32.gmra.mrb[86].mxu0 %v2193_v53  ;;  %3006 = vmatprep.mubr.msk.f32.mxu1 %vm386_vm0, %v735_v54 }
 0x1d6   : > { %3121 = vmatprep.mubr.msk.f32.mxu0 %vm386_vm0, %v2196_v57  ;;  %v2195_v58 = vld [vmem:[#allocation2 + $0x5c0] sm:$0xff] }
 0x1d7   : > { %v2064_v61 = vpop.permute.xlu1 %2063  ;;  %v734_v63 = vld [vmem:[#allocation2 + $0x1d0] sm:$0xff] }
 0x1d8   : > { %2073 = vst.msk [vmem:[#allocation2 + $0x5e0] sm:$0xff] %vm579_vm1, %v2064_v61  ;;  %v546_v6 = vpop.permute.xlu0 %545  ;;  %1802 = vmatmul.mubr.f32.gmra.mrb[90].mxu1 %v734_v63 }
 0x1d9   : > { %611 = vst.msk [vmem:[#allocation2 + $0x1f0] sm:$0xff] %vm579_vm1, %v546_v6  ;;  %2529 = vmatmul.mubr.f32.gmra.mrb[88].mxu0 %v2195_v58  ;;  %3007 = vmatprep.mubr.msk.f32.mxu1 %vm386_vm0, %v737_v60 }
 0x1da   : > { %3122 = vmatprep.mubr.msk.f32.mxu0 %vm386_vm0, %v2198_v5 }
 0x1db   : > { %v2066_v9 = vpop.permute.xlu1 %2065  ;;  %v2197_v12 = vld [vmem:[#allocation2 + $0x5d0] sm:$0xff] }
 0x1dc   : > { %2074 = vst.msk [vmem:[#allocation2 + $0x5f0] sm:$0xff] %vm579_vm1, %v2066_v9  ;;  %v736_v16 = vld [vmem:[#allocation2 + $0x1e0] sm:$0xff] }
 0x1dd   : > { %1807 = vmatmul.mubr.f32.gmra.mrb[92].mxu1 %v736_v16  ;;  %2534 = vmatmul.mubr.f32.gmra.mrb[90].mxu0 %v2197_v12 }
 0x1de   : > { %3008 = vmatprep.mubr.msk.f32.mxu1 %vm386_vm0, %v739_v62  ;;  %3123 = vmatprep.mubr.msk.f32.mxu0 %vm386_vm0, %v2200_v13 }
 0x1df   : > { %v2199_v19 = vld [vmem:[#allocation2 + $0x5e0] sm:$0xff] }
 0x1e0   : > { %v738_v2 = vld [vmem:[#allocation2 + $0x1f0] sm:$0xff] }
 0x1e1   : > { %1812 = vmatmul.mubr.f32.gmra.mrb[94].mxu1 %v738_v2  ;;  %2539 = vmatmul.mubr.f32.gmra.mrb[92].mxu0 %v2199_v19 }
 0x1e2   : > { %3124 = vmatprep.mubr.msk.f32.mxu0 %vm386_vm0, %v2202_v20 }
 0x1e3   : > { %v2201_v21 = vld [vmem:[#allocation2 + $0x5f0] sm:$0xff] }
 0x1e5   : > { %2544 = vmatmul.mubr.f32.gmra.mrb[94].mxu0 %v2201_v21 }
 0x1f1   : > { %v4693_v22 = vpop.f32.mrb[0].mxu1 }
 0x1f2   : > { %v1419_v25 = vpop.f32.mrb[1].mxu1 }
 0x1f5   : > { %v1337_v26 = vpop.f32.mrb[0].mxu0  ;;  %v4695_v27 = vpop.f32.mrb[2].mxu1 }
 0x1f6   : > { %v1339_v29 = vpop.f32.mrb[1].mxu0  ;;  %v1424_v14 = vpop.f32.mrb[3].mxu1 }
 0x1f9   : > { %v1342_v30 = vpop.f32.mrb[2].mxu0  ;;  %v4697_v31 = vpop.f32.mrb[4].mxu1 }
 0x1fa   : > { %v1344_v32 = vpop.f32.mrb[3].mxu0  ;;  %v1429_v34 = vpop.f32.mrb[5].mxu1 }
 0x1fd   : > { %v4699_v7 = vpop.f32.mrb[4].mxu0  ;;  %v4701_v35 = vpop.f32.mrb[6].mxu1 }
 0x1fe   : > { %v1349_v0 = vpop.f32.mrb[5].mxu0  ;;  %v1434_v36 = vpop.f32.mrb[7].mxu1 }
 0x1ff   : > { %v4753_v36 = vld [vmem:[#allocation9] ss:$0 sm:$0xff] }
 0x201   : > { %v4703_v37 = vpop.f32.mrb[8].mxu1 }
 0x202   : > { %v4705_v38 = vpop.f32.mrb[6].mxu0  ;;  %v1439_v39 = vpop.f32.mrb[9].mxu1 }
 0x203   : > { %v1354_v41 = vpop.f32.mrb[7].mxu0 }
 0x206   : > { %v4707_v24 = vpop.f32.mrb[8].mxu0  ;;  %v4709_v42 = vpop.f32.mrb[10].mxu1 }
 0x207   : > { %v1359_v43 = vpop.f32.mrb[9].mxu0  ;;  %v1444_v44 = vpop.f32.mrb[11].mxu1 }
 0x20a   : > { %v4711_v45 = vpop.f32.mrb[10].mxu0  ;;  %v4713_v46 = vpop.f32.mrb[12].mxu1 }
 0x20b   : > { %v1364_v48 = vpop.f32.mrb[11].mxu0  ;;  %v1449_v49 = vpop.f32.mrb[13].mxu1 }
 0x20e   : > { %v4715_v51 = vpop.f32.mrb[12].mxu0 }
 0x20f   : > { %v1369_v3 = vpop.f32.mrb[13].mxu0  ;;  %v4717_v10 = vpop.f32.mrb[14].mxu1 }
 0x210   : > { %v1454_v4 = vpop.f32.mrb[15].mxu1 }
 0x213   : > { %v4719_v8 = vpop.f32.mrb[16].mxu1 }
 0x214   : > { %v4721_v11 = vpop.f32.mrb[14].mxu0  ;;  %v1459_v1 = vpop.f32.mrb[17].mxu1 }
 0x215   : > { %v1374_v18 = vpop.f32.mrb[15].mxu0 }
 0x218   : > { %v4723_v23 = vpop.f32.mrb[16].mxu0  ;;  %v4725_v33 = vpop.f32.mrb[18].mxu1 }
 0x219   : > { %v1379_v47 = vpop.f32.mrb[17].mxu0  ;;  %v1464_v59 = vpop.f32.mrb[19].mxu1 }
 0x21c   : > { %v4727_v15 = vpop.f32.mrb[18].mxu0  ;;  %v4729_v28 = vpop.f32.mrb[20].mxu1 }
 0x21d   : > { %v1384_v40 = vpop.f32.mrb[19].mxu0  ;;  %v1469_v17 = vpop.f32.mrb[21].mxu1 }
 0x220   : > { %v4731_v52 = vpop.f32.mrb[20].mxu0 }
 0x221   : > { %v1389_v53 = vpop.f32.mrb[21].mxu0  ;;  %v4733_v54 = vpop.f32.mrb[22].mxu1 }
 0x222   : > { %v1474_v55 = vpop.f32.mrb[23].mxu1 }
 0x225   : > { %v4735_v56 = vpop.f32.mrb[24].mxu1 }
 0x226   : > { %v4737_v57 = vpop.f32.mrb[22].mxu0  ;;  %v1479_v50 = vpop.f32.mrb[25].mxu1 }
 0x227   : > { %v1394_v58 = vpop.f32.mrb[23].mxu0 }
 0x22a   : > { %v4739_v60 = vpop.f32.mrb[24].mxu0  ;;  %v4741_v61 = vpop.f32.mrb[26].mxu1 }
 0x22b   : > { %v1399_v63 = vpop.f32.mrb[25].mxu0  ;;  %v1484_v5 = vpop.f32.mrb[27].mxu1 }
 0x22e   : > { %v4743_v6 = vpop.f32.mrb[26].mxu0  ;;  %v4745_v9 = vpop.f32.mrb[28].mxu1 }
 0x22f   : > { %v1404_v12 = vpop.f32.mrb[27].mxu0  ;;  %v1489_v62 = vpop.f32.mrb[29].mxu1 }
 0x232   : > { %v4747_v13 = vpop.f32.mrb[28].mxu0 }
 0x233   : > { %v1409_v16 = vpop.f32.mrb[29].mxu0  ;;  %v4749_v19 = vpop.f32.mrb[30].mxu1 }
 0x234   : > { %v1494_v20 = vpop.f32.mrb[31].mxu1 }
 0x237   : > { %v1658_v2 = vpop.f32.mrb[32].mxu1 }
 0x238   : > { %v4751_v21 = vpop.f32.mrb[30].mxu0  ;;  %v1659_v25 = vadd.f32 %v1658_v2, %v1337_v26  ;;  %v1660_v29 = vpop.f32.mrb[33].mxu1 }
 0x239   : > { %v1414_v14 = vpop.f32.mrb[31].mxu0 }
 0x23b   : > { %v1663_v32 = vpop.f32.mrb[34].mxu1 }
 0x23c   : > { %v1664_v34 = vadd.f32 %v1663_v32, %v1342_v30  ;;  %v2390_v0 = vpop.f32.mrb[32].mxu0  ;;  %v1665_v39 = vpop.f32.mrb[35].mxu1 }
 0x23d   : > { %v2549_v41 = vadd.f32 %v2390_v0, %v1659_v25  ;;  %v2392_v43 = vpop.f32.mrb[33].mxu0 }
 0x23f   : > { %v2588_v44 = vadd.f32 %v4753_v36, %v2549_v41  ;;  %v1668_v48 = vpop.f32.mrb[36].mxu1 }
 0x240   : > { %v1669_v49 = vadd.f32 %v1668_v48, %v4699_v7  ;;  %v2395_v3 = vpop.f32.mrb[34].mxu0  ;;  %v1670_v4 = vpop.f32.mrb[37].mxu1 }
 0x241   : > { %v2620_v1 = vmax.f32 %v2588_v44, 0.0  ;;  %v2550_v26 = vadd.f32 %v2395_v3, %v1664_v34  ;;  %v2397_v18 = vpop.f32.mrb[35].mxu0 }
 0x243   : > { %2652 = vst [vmem:[%s4758_s26] sm:$0xff] %v2620_v1  ;;  %v2589_v30 = vadd.f32 %v4753_v36, %v2550_v26  ;;  %v1673_v47 = vpop.f32.mrb[38].mxu1 }
 0x244   : > { %v1674_v59 = vadd.f32 %v1673_v47, %v4705_v38  ;;  %v2400_v40 = vpop.f32.mrb[36].mxu0  ;;  %v1675_v17 = vpop.f32.mrb[39].mxu1 }
 0x245   : > { %v2621_v53 = vmax.f32 %v2589_v30, 0.0  ;;  %v2551_v7 = vadd.f32 %v2400_v40, %v1669_v49  ;;  %v2402_v55 = vpop.f32.mrb[37].mxu0 }
 0x247   : > { %2653 = vst [vmem:[%s4758_s26 + $0x8] sm:$0xff] %v2621_v53  ;;  %v2590_v50 = vadd.f32 %v4753_v36, %v2551_v7  ;;  %v1678_v58 = vpop.f32.mrb[40].mxu1 }
 0x248   : > { %v1679_v63 = vadd.f32 %v1678_v58, %v4707_v24  ;;  %v2405_v5 = vpop.f32.mrb[38].mxu0  ;;  %v1680_v12 = vpop.f32.mrb[41].mxu1 }
 0x249   : > { %v2622_v62 = vmax.f32 %v2590_v50, 0.0  ;;  %v2552_v16 = vadd.f32 %v2405_v5, %v1674_v59  ;;  %v2407_v20 = vpop.f32.mrb[39].mxu0 }
 0x24b   : > { %2654 = vst [vmem:[%s4758_s26 + $0x10] sm:$0xff] %v2622_v62  ;;  %v2591_v38 = vadd.f32 %v4753_v36, %v2552_v16  ;;  %v1683_v2 = vpop.f32.mrb[42].mxu1 }
 0x24c   : > { %v1684_v25 = vadd.f32 %v1683_v2, %v4711_v45  ;;  %v2410_v29 = vpop.f32.mrb[40].mxu0  ;;  %v1685_v14 = vpop.f32.mrb[43].mxu1 }
 0x24d   : > { %v2623_v32 = vmax.f32 %v2591_v38, 0.0  ;;  %v2553_v34 = vadd.f32 %v2410_v29, %v1679_v63  ;;  %v2412_v0 = vpop.f32.mrb[41].mxu0 }
 0x24f   : > { %2655 = vst [vmem:[%s4758_s26 + $0x18] sm:$0xff] %v2623_v32  ;;  %v2592_v24 = vadd.f32 %v4753_v36, %v2553_v34  ;;  %v1688_v39 = vpop.f32.mrb[44].mxu1 }
 0x250   : > { %v1689_v41 = vadd.f32 %v1688_v39, %v4715_v51  ;;  %v2415_v43 = vpop.f32.mrb[42].mxu0  ;;  %v1690_v44 = vpop.f32.mrb[45].mxu1 }
 0x251   : > { %v2624_v48 = vmax.f32 %v2592_v24, 0.0  ;;  %v2554_v49 = vadd.f32 %v2415_v43, %v1684_v25  ;;  %v2417_v3 = vpop.f32.mrb[43].mxu0 }
 0x253   : > { %2656 = vst [vmem:[%s4758_s26 + $0x20] sm:$0xff] %v2624_v48  ;;  %v2593_v45 = vadd.f32 %v4753_v36, %v2554_v49  ;;  %v1693_v4 = vpop.f32.mrb[46].mxu1 }
 0x254   : > { %v1694_v1 = vadd.f32 %v1693_v4, %v4721_v11  ;;  %v2420_v26 = vpop.f32.mrb[44].mxu0  ;;  %v1695_v18 = vpop.f32.mrb[47].mxu1 }
 0x255   : > { %v2625_v30 = vmax.f32 %v2593_v45, 0.0  ;;  %v2555_v47 = vadd.f32 %v2420_v26, %v1689_v41  ;;  %v2422_v59 = vpop.f32.mrb[45].mxu0 }
 0x257   : > { %2657 = vst [vmem:[%s4758_s26 + $0x28] sm:$0xff] %v2625_v30  ;;  %v2594_v51 = vadd.f32 %v4753_v36, %v2555_v47  ;;  %v1698_v40 = vpop.f32.mrb[48].mxu1 }
 0x258   : > { %v1699_v17 = vadd.f32 %v1698_v40, %v4723_v23  ;;  %v2425_v53 = vpop.f32.mrb[46].mxu0  ;;  %v1700_v7 = vpop.f32.mrb[49].mxu1 }
 0x259   : > { %v2626_v55 = vmax.f32 %v2594_v51, 0.0  ;;  %v2556_v50 = vadd.f32 %v2425_v53, %v1694_v1  ;;  %v2427_v58 = vpop.f32.mrb[47].mxu0 }
 0x25b   : > { %2658 = vst [vmem:[%s4758_s26 + $0x30] sm:$0xff] %v2626_v55  ;;  %v2595_v11 = vadd.f32 %v4753_v36, %v2556_v50  ;;  %v1703_v63 = vpop.f32.mrb[50].mxu1 }
 0x25c   : > { %v1704_v5 = vadd.f32 %v1703_v63, %v4727_v15  ;;  %v2430_v12 = vpop.f32.mrb[48].mxu0  ;;  %v1705_v62 = vpop.f32.mrb[51].mxu1 }
 0x25d   : > { %v2627_v16 = vmax.f32 %v2595_v11, 0.0  ;;  %v2557_v20 = vadd.f32 %v2430_v12, %v1699_v17  ;;  %v2432_v38 = vpop.f32.mrb[49].mxu0 }
 0x25f   : > { %2659 = vst [vmem:[%s4758_s26 + $0x38] sm:$0xff] %v2627_v16  ;;  %v2596_v23 = vadd.f32 %v4753_v36, %v2557_v20  ;;  %v1708_v2 = vpop.f32.mrb[52].mxu1 }
 0x260   : > { %v1709_v25 = vadd.f32 %v1708_v2, %v4731_v52  ;;  %v2435_v29 = vpop.f32.mrb[50].mxu0  ;;  %v1710_v14 = vpop.f32.mrb[53].mxu1 }
 0x261   : > { %v2628_v32 = vmax.f32 %v2596_v23, 0.0  ;;  %v2558_v34 = vadd.f32 %v2435_v29, %v1704_v5  ;;  %v2437_v0 = vpop.f32.mrb[51].mxu0 }
 0x263   : > { %2660 = vst [vmem:[%s4758_s26 + $0x40] sm:$0xff] %v2628_v32  ;;  %v2597_v15 = vadd.f32 %v4753_v36, %v2558_v34  ;;  %v1713_v24 = vpop.f32.mrb[54].mxu1 }
 0x264   : > { %v1714_v39 = vadd.f32 %v1713_v24, %v4737_v57  ;;  %v2440_v41 = vpop.f32.mrb[52].mxu0  ;;  %v1715_v43 = vpop.f32.mrb[55].mxu1 }
 0x265   : > { %v2629_v44 = vmax.f32 %v2597_v15, 0.0  ;;  %v2559_v48 = vadd.f32 %v2440_v41, %v1709_v25  ;;  %v2442_v49 = vpop.f32.mrb[53].mxu0 }
 0x267   : > { %2661 = vst [vmem:[%s4758_s26 + $0x48] sm:$0xff] %v2629_v44  ;;  %v2598_v52 = vadd.f32 %v4753_v36, %v2559_v48  ;;  %v1718_v3 = vpop.f32.mrb[56].mxu1 }
 0x268   : > { %v1719_v45 = vadd.f32 %v1718_v3, %v4739_v60  ;;  %v2445_v4 = vpop.f32.mrb[54].mxu0  ;;  %v1720_v1 = vpop.f32.mrb[57].mxu1 }
 0x269   : > { %v2630_v26 = vmax.f32 %v2598_v52, 0.0  ;;  %v2560_v18 = vadd.f32 %v2445_v4, %v1714_v39  ;;  %v2447_v30 = vpop.f32.mrb[55].mxu0 }
 0x26b   : > { %2662 = vst [vmem:[%s4758_s26 + $0x50] sm:$0xff] %v2630_v26  ;;  %v2599_v57 = vadd.f32 %v4753_v36, %v2560_v18  ;;  %v1723_v47 = vpop.f32.mrb[58].mxu1 }
 0x26c   : > { %v1724_v59 = vadd.f32 %v1723_v47, %v4743_v6  ;;  %v2450_v51 = vpop.f32.mrb[56].mxu0  ;;  %v1725_v40 = vpop.f32.mrb[59].mxu1 }
 0x26d   : > { %v2631_v17 = vmax.f32 %v2599_v57, 0.0  ;;  %v2561_v53 = vadd.f32 %v2450_v51, %v1719_v45  ;;  %v2452_v7 = vpop.f32.mrb[57].mxu0 }
 0x26f   : > { %2663 = vst [vmem:[%s4758_s26 + $0x58] sm:$0xff] %v2631_v17  ;;  %v2600_v60 = vadd.f32 %v4753_v36, %v2561_v53  ;;  %v1728_v55 = vpop.f32.mrb[60].mxu1 }
 0x270   : > { %v1729_v50 = vadd.f32 %v1728_v55, %v4747_v13  ;;  %v2455_v58 = vpop.f32.mrb[58].mxu0  ;;  %v1730_v11 = vpop.f32.mrb[61].mxu1 }
 0x271   : > { %v2632_v63 = vmax.f32 %v2600_v60, 0.0  ;;  %v2562_v5 = vadd.f32 %v2455_v58, %v1724_v59  ;;  %v2457_v12 = vpop.f32.mrb[59].mxu0 }
 0x273   : > { %2664 = vst [vmem:[%s4758_s26 + $0x60] sm:$0xff] %v2632_v63  ;;  %v2601_v6 = vadd.f32 %v4753_v36, %v2562_v5  ;;  %v1733_v62 = vpop.f32.mrb[62].mxu1 }
 0x274   : > { %v1734_v16 = vadd.f32 %v1733_v62, %v4751_v21  ;;  %v2460_v20 = vpop.f32.mrb[60].mxu0  ;;  %v1735_v38 = vpop.f32.mrb[63].mxu1 }
 0x275   : > { %v2633_v23 = vmax.f32 %v2601_v6, 0.0  ;;  %v2563_v2 = vadd.f32 %v2460_v20, %v1729_v50  ;;  %v2462_v25 = vpop.f32.mrb[61].mxu0 }
 0x277   : > { %2665 = vst [vmem:[%s4758_s26 + $0x68] sm:$0xff] %v2633_v23  ;;  %v2602_v13 = vadd.f32 %v4753_v36, %v2563_v2  ;;  %v1738_v29 = vpop.f32.mrb[64].mxu1 }
 0x278   : > { %v1739_v14 = vadd.f32 %v1738_v29, %v4693_v22  ;;  %v2465_v32 = vpop.f32.mrb[62].mxu0  ;;  %v1740_v34 = vpop.f32.mrb[65].mxu1 }
 0x279   : > { %v2634_v0 = vmax.f32 %v2602_v13, 0.0  ;;  %v2564_v15 = vadd.f32 %v2465_v32, %v1734_v16  ;;  %v2467_v24 = vpop.f32.mrb[63].mxu0 }
 0x27b   : > { %2666 = vst [vmem:[%s4758_s26 + $0x70] sm:$0xff] %v2634_v0  ;;  %v2603_v21 = vadd.f32 %v4753_v36, %v2564_v15  ;;  %v1743_v39 = vpop.f32.mrb[66].mxu1 }
 0x27c   : > { %v1744_v41 = vadd.f32 %v1743_v39, %v4695_v27  ;;  %v2470_v43 = vpop.f32.mrb[64].mxu0  ;;  %v1745_v44 = vpop.f32.mrb[67].mxu1 }
 0x27d   : > { %v2635_v48 = vmax.f32 %v2603_v21, 0.0  ;;  %v2565_v49 = vadd.f32 %v2470_v43, %v1739_v14  ;;  %v2472_v52 = vpop.f32.mrb[65].mxu0 }
 0x27f   : > { %2667 = vst [vmem:[%s4758_s26 + $0x78] sm:$0xff] %v2635_v48  ;;  %v2604_v22 = vadd.f32 %v4753_v36, %v2565_v49  ;;  %v1748_v3 = vpop.f32.mrb[68].mxu1 }
 0x280   : > { %v1749_v45 = vadd.f32 %v1748_v3, %v4697_v31  ;;  %v2475_v4 = vpop.f32.mrb[66].mxu0  ;;  %v1750_v1 = vpop.f32.mrb[69].mxu1 }
 0x281   : > { %v2636_v26 = vmax.f32 %v2604_v22, 0.0  ;;  %v2566_v18 = vadd.f32 %v2475_v4, %v1744_v41  ;;  %v2477_v30 = vpop.f32.mrb[67].mxu0 }
 0x283   : > { %2668 = vst [vmem:[%s4758_s26 + $0x80] sm:$0xff] %v2636_v26  ;;  %v2605_v27 = vadd.f32 %v4753_v36, %v2566_v18  ;;  %v1753_v57 = vpop.f32.mrb[70].mxu1 }
 0x284   : > { %v1754_v47 = vadd.f32 %v1753_v57, %v4701_v35  ;;  %v2480_v59 = vpop.f32.mrb[68].mxu0  ;;  %v1755_v51 = vpop.f32.mrb[71].mxu1 }
 0x285   : > { %v2637_v40 = vmax.f32 %v2605_v27, 0.0  ;;  %v2567_v17 = vadd.f32 %v2480_v59, %v1749_v45  ;;  %v2482_v53 = vpop.f32.mrb[69].mxu0 }
 0x287   : > { %2669 = vst [vmem:[%s4758_s26 + $0x88] sm:$0xff] %v2637_v40  ;;  %v2606_v31 = vadd.f32 %v4753_v36, %v2567_v17  ;;  %v1758_v7 = vpop.f32.mrb[72].mxu1 }
 0x288   : > { %v1759_v60 = vadd.f32 %v1758_v7, %v4703_v37  ;;  %v2485_v55 = vpop.f32.mrb[70].mxu0  ;;  %v1760_v50 = vpop.f32.mrb[73].mxu1 }
 0x289   : > { %v2638_v58 = vmax.f32 %v2606_v31, 0.0  ;;  %v2568_v11 = vadd.f32 %v2485_v55, %v1754_v47  ;;  %v2487_v63 = vpop.f32.mrb[71].mxu0 }
 0x28b   : > { %2670 = vst [vmem:[%s4758_s26 + $0x90] sm:$0xff] %v2638_v58  ;;  %v2607_v35 = vadd.f32 %v4753_v36, %v2568_v11  ;;  %v1763_v5 = vpop.f32.mrb[74].mxu1 }
 0x28c   : > { %v1764_v12 = vadd.f32 %v1763_v5, %v4709_v42  ;;  %v2490_v6 = vpop.f32.mrb[72].mxu0  ;;  %v1765_v62 = vpop.f32.mrb[75].mxu1 }
 0x28d   : > { %v2639_v16 = vmax.f32 %v2607_v35, 0.0  ;;  %v2569_v20 = vadd.f32 %v2490_v6, %v1759_v60  ;;  %v2492_v38 = vpop.f32.mrb[73].mxu0 }
 0x28f   : > { %2671 = vst [vmem:[%s4758_s26 + $0x98] sm:$0xff] %v2639_v16  ;;  %v2608_v37 = vadd.f32 %v4753_v36, %v2569_v20  ;;  %v1768_v23 = vpop.f32.mrb[76].mxu1 }
 0x290   : > { %v1769_v2 = vadd.f32 %v1768_v23, %v4713_v46  ;;  %v2495_v25 = vpop.f32.mrb[74].mxu0  ;;  %v1770_v13 = vpop.f32.mrb[77].mxu1 }
 0x291   : > { %v2640_v29 = vmax.f32 %v2608_v37, 0.0  ;;  %v2570_v14 = vadd.f32 %v2495_v25, %v1764_v12  ;;  %v2497_v32 = vpop.f32.mrb[75].mxu0 }
 0x293   : > { %2672 = vst [vmem:[%s4758_s26 + $0xa0] sm:$0xff] %v2640_v29  ;;  %v2609_v42 = vadd.f32 %v4753_v36, %v2570_v14  ;;  %v1773_v34 = vpop.f32.mrb[78].mxu1 }
 0x294   : > { %v1774_v0 = vadd.f32 %v1773_v34, %v4717_v10  ;;  %v2500_v15 = vpop.f32.mrb[76].mxu0  ;;  %v1775_v24 = vpop.f32.mrb[79].mxu1 }
 0x295   : > { %v2641_v21 = vmax.f32 %v2609_v42, 0.0  ;;  %v2571_v39 = vadd.f32 %v2500_v15, %v1769_v2  ;;  %v2502_v41 = vpop.f32.mrb[77].mxu0 }
 0x297   : > { %2673 = vst [vmem:[%s4758_s26 + $0xa8] sm:$0xff] %v2641_v21  ;;  %v2610_v46 = vadd.f32 %v4753_v36, %v2571_v39  ;;  %v1778_v43 = vpop.f32.mrb[80].mxu1 }
 0x298   : > { %v1779_v44 = vadd.f32 %v1778_v43, %v4719_v8  ;;  %v2505_v48 = vpop.f32.mrb[78].mxu0  ;;  %v1780_v49 = vpop.f32.mrb[81].mxu1 }
 0x299   : > { %v2642_v52 = vmax.f32 %v2610_v46, 0.0  ;;  %v2572_v22 = vadd.f32 %v2505_v48, %v1774_v0  ;;  %v2507_v3 = vpop.f32.mrb[79].mxu0 }
 0x29b   : > { %2674 = vst [vmem:[%s4758_s26 + $0xb0] sm:$0xff] %v2642_v52  ;;  %v2611_v10 = vadd.f32 %v4753_v36, %v2572_v22  ;;  %v1783_v45 = vpop.f32.mrb[82].mxu1 }
 0x29c   : > { %v1784_v4 = vadd.f32 %v1783_v45, %v4725_v33  ;;  %v2510_v1 = vpop.f32.mrb[80].mxu0  ;;  %v1785_v26 = vpop.f32.mrb[83].mxu1 }
 0x29d   : > { %v2643_v18 = vmax.f32 %v2611_v10, 0.0  ;;  %v2573_v30 = vadd.f32 %v2510_v1, %v1779_v44  ;;  %v2512_v27 = vpop.f32.mrb[81].mxu0 }
 0x29f   : > { %2675 = vst [vmem:[%s4758_s26 + $0xb8] sm:$0xff] %v2643_v18  ;;  %v2612_v8 = vadd.f32 %v4753_v36, %v2573_v30  ;;  %v1788_v57 = vpop.f32.mrb[84].mxu1 }
 0x2a0   : > { %v1789_v47 = vadd.f32 %v1788_v57, %v4729_v28  ;;  %v2515_v59 = vpop.f32.mrb[82].mxu0  ;;  %v1790_v51 = vpop.f32.mrb[85].mxu1 }
 0x2a1   : > { %v2644_v40 = vmax.f32 %v2612_v8, 0.0  ;;  %v2574_v17 = vadd.f32 %v2515_v59, %v1784_v4  ;;  %v2517_v53 = vpop.f32.mrb[83].mxu0 }
 0x2a3   : > { %2676 = vst [vmem:[%s4758_s26 + $0xc0] sm:$0xff] %v2644_v40  ;;  %v2613_v33 = vadd.f32 %v4753_v36, %v2574_v17  ;;  %v1793_v31 = vpop.f32.mrb[86].mxu1 }
 0x2a4   : > { %v1794_v7 = vadd.f32 %v1793_v31, %v4733_v54  ;;  %v2520_v60 = vpop.f32.mrb[84].mxu0  ;;  %v1795_v55 = vpop.f32.mrb[87].mxu1 }
 0x2a5   : > { %v2645_v50 = vmax.f32 %v2613_v33, 0.0  ;;  %v2575_v58 = vadd.f32 %v2520_v60, %v1789_v47  ;;  %v2522_v11 = vpop.f32.mrb[85].mxu0 }
 0x2a7   : > { %2677 = vst [vmem:[%s4758_s26 + $0xc8] sm:$0xff] %v2645_v50  ;;  %v2614_v28 = vadd.f32 %v4753_v36, %v2575_v58  ;;  %v1798_v63 = vpop.f32.mrb[88].mxu1 }
 0x2a8   : > { %v1799_v35 = vadd.f32 %v1798_v63, %v4735_v56  ;;  %v2525_v5 = vpop.f32.mrb[86].mxu0  ;;  %v1800_v12 = vpop.f32.mrb[89].mxu1 }
 0x2a9   : > { %v2646_v6 = vmax.f32 %v2614_v28, 0.0  ;;  %v2576_v62 = vadd.f32 %v2525_v5, %v1794_v7  ;;  %v2527_v16 = vpop.f32.mrb[87].mxu0 }
 0x2ab   : > { %2678 = vst [vmem:[%s4758_s26 + $0xd0] sm:$0xff] %v2646_v6  ;;  %v2615_v54 = vadd.f32 %v4753_v36, %v2576_v62  ;;  %v1803_v20 = vpop.f32.mrb[90].mxu1 }
 0x2ac   : > { %v1804_v38 = vadd.f32 %v1803_v20, %v4741_v61  ;;  %v2530_v37 = vpop.f32.mrb[88].mxu0  ;;  %v1805_v23 = vpop.f32.mrb[91].mxu1 }
 0x2ad   : > { %v2647_v2 = vmax.f32 %v2615_v54, 0.0  ;;  %v2577_v25 = vadd.f32 %v2530_v37, %v1799_v35  ;;  %v2532_v13 = vpop.f32.mrb[89].mxu0 }
 0x2af   : > { %2679 = vst [vmem:[%s4758_s26 + $0xd8] sm:$0xff] %v2647_v2  ;;  %v2616_v56 = vadd.f32 %v4753_v36, %v2577_v25 }
 0x2b0   : > { %v1808_v29 = vpop.f32.mrb[92].mxu1  ;;  %v2535_v14 = vpop.f32.mrb[90].mxu0 }
 0x2b1   : > { %v2648_v32 = vmax.f32 %v2616_v56, 0.0  ;;  %v1809_v42 = vadd.f32 %v1808_v29, %v4745_v9  ;;  %v2578_v34 = vadd.f32 %v2535_v14, %v1804_v38  ;;  %v2537_v0 = vpop.f32.mrb[91].mxu0  ;;  %v1810_v15 = vpop.f32.mrb[93].mxu1 }
 0x2b3   : > { %2680 = vst [vmem:[%s4758_s26 + $0xe0] sm:$0xff] %v2648_v32  ;;  %v2617_v61 = vadd.f32 %v4753_v36, %v2578_v34 }
 0x2b4   : > { %v1813_v24 = vpop.f32.mrb[94].mxu1  ;;  %v2540_v21 = vpop.f32.mrb[92].mxu0 }
 0x2b5   : > { %v2649_v39 = vmax.f32 %v2617_v61, 0.0  ;;  %v1814_v41 = vadd.f32 %v1813_v24, %v4749_v19  ;;  %v2579_v46 = vadd.f32 %v2540_v21, %v1809_v42  ;;  %v2542_v43 = vpop.f32.mrb[93].mxu0  ;;  %v1815_v44 = vpop.f32.mrb[95].mxu1 }
 0x2b7   : > { %2681 = vst [vmem:[%s4758_s26 + $0xe8] sm:$0xff] %v2649_v39  ;;  %v2618_v9 = vadd.f32 %v4753_v36, %v2579_v46 }
 0x2b8   : > { %v2545_v48 = vpop.f32.mrb[94].mxu0 }
 0x2b9   : > { %v2650_v49 = vmax.f32 %v2618_v9, 0.0  ;;  %v2580_v52 = vadd.f32 %v2545_v48, %v1814_v41  ;;  %v2547_v22 = vpop.f32.mrb[95].mxu0 }
 0x2bb   : > { %2682 = vst [vmem:[%s4758_s26 + $0xf0] sm:$0xff] %v2650_v49  ;;  %v2619_v3 = vadd.f32 %v4753_v36, %v2580_v52 }
 0x2bd   : > { %v2651_v19 = vmax.f32 %v2619_v3, 0.0 }
 0x2bf   : > { %2683 = vst [vmem:[%s4758_s26 + $0xf8] sm:$0xff] %v2651_v19 }
 0x2c0   : > { %3503 = shalt.err (!%p3500_p7)
}
 0x2c1   : > { %s3504_s29 = scalar_lea.hbm %s4856_s5, 4096  ;;  %s3508_s6 = scalar_lea.hbm %s4912_s4, 8192 }
 0x2c2   : > { %p3505_p11 = scmp.ne.s32.totalorder %s4856_s5, %s3504_s29  ;;  %p3509_p12 = scmp.lt.u32.totalorder %s4856_s5, %s4912_s4 }
 0x2c3   : > { %p3510_p13 = scmp.lt.u32.totalorder %s3508_s6, %s3504_s29  ;;  %p3512_p2 = scmp.lt.u32.totalorder %s3504_s29, %s4856_s5 }
 0x2c4   : > { %p3506_p1 = pnand %p3505_p11, %p4942_p6 }
 0x2c5   : > { %p3511_p0 = por %p3510_p13, %p3509_p12 }
 0x2c6   : > { %p3507_p8 = pneg %p3506_p1 }
 0x2c7   : > { %p3513_p10 = por %p3512_p2, %p3511_p0 }
 0x2c9   : > { %p3514_p3 = pnand %p3513_p10, %p3507_p8 }
 0x2cb   : > { %3517 = shalt.err (!%p3514_p3)
}
 0x2cc   : > { %s3595_s25 = smov 128   ;;  %s3596_s14 = smov 8  }
 0x2cd   : > { %3281 = dma.vmem_to_hbm [thread:$0]  (%p4942_p6), %s4858_s13, 4096, %s4856_s5, %s2685_s9, %s3595_s25, %s3595_s25, %s3596_s14  }
 0x2ce PF: > { %s2717_s23 = sand.u32 1, %s3564_s15   ;;  %p4943_p4 = scmp.ne.s32.totalorder %s4924_s24, 0 }
 0x2cf   : > { %p4944_p9 = scmp.ge.s32.totalorder %s3584_s20, 2  ;;  %s2718_s21 = scalar_lea.sflag [#allocation5], %s2717_s23 }
 0x2d1   : > { %p3298_p5 = pnand %p4944_p9, %p4943_p4 }
 0x2d3   : > { %3559 = dma.done.wait (!%p3298_p5), %s2718_s21, 4096  }
 0x2d4   : > { %3561 = vsyncadd (!%p3298_p5), %s2718_s21, 4294963200  ;;  %s24_s20 = sadd.s32 1, %s3584_s20   ;;  %s4945_s26 = sld [smem:[#allocation18_spill]] }
 0x2d5   : > { %p21_p7 = scmp.ge.s32.totalorder %s24_s20, 4   ;;  %s4946_s28 = sld [smem:[#allocation17_spill]] }
 0x2d6   : > { %s4947_s15 = smov %s3568_s16  ;;  %s4948_s16 = smov %s3572_s17 }
 0x2d7   : > { %s4950_s18 = smov %s3580_s19  ;;  %23 = sbr.rel (!%p21_p7) target bundleno = 13 (0xd), region = 110 }
 0x2da   : > { %s4949_s17 = smov %s4945_s26 }
 0x2db   : > { %s4951_s19 = smov %s4946_s28 }
 0x2de   :  { %2723 = vsyncpa [#allocation4], 1 }
 0x2df   :  { %2725 = vsyncpa [#allocation4 + $0x1], 1 }
 0x2e0   :  { %2726 = vsyncpa [#allocation7], 1 }
 0x2e1   :  { %2728 = vsyncpa [#allocation7 + $0x1], 1 }
 0x2e2   :  { %2729 = vsyncpa [#allocation10], 1 }
 0x2e3   :  { %2730 = vsyncpa [#allocation5], 1 }
 0x2e4   :  { %2732 = vsyncpa [#allocation5 + $0x1], 1 }

</bundles_post_ra>
